<compile_context>
chip_gen: v7x
topology: tpu7x:2x2x1
jax: 0.10.0
libtpu: 0.0.40
codegen_flags: <defaults>
</compile_context>

<pallas_src>
import jax
import jax.numpy as jnp
from jax import lax
from jax.experimental import pallas as pl
from jax.experimental.pallas import tpu as pltpu

BN_EPS = 1e-5
C_PAD = 128  # TPU lane width: conv output channels padded to this for lane-dense MXU/store path


# ----------------------------------- hardware-aware sizing ------------------------------------ #
def _vmem_capacity():
    try:
        return int(pltpu.get_tpu_info().vmem_capacity_bytes)
    except Exception:
        return 64 * 1024 * 1024  # conservative (v7x-sized) fallback


def _pick_row_tile(hp, wp, target_rows):
    """Largest divisor of Hp whose row tile (th * Wp) stays under target_rows."""
    best = 1
    for cand in range(1, hp + 1):
        if hp % cand == 0 and cand * wp <= target_rows:
            best = cand
    return best


def _vmem_limit_bytes(buffer_bytes, vmem_cap):
    need = 2 * sum(int(b) for b in buffer_bytes) + (8 << 20)   # double buffers + temp headroom
    hi = max(int(0.75 * vmem_cap), 32 << 20)
    return int(min(max(need, 32 << 20), hi))


# ----------------------- one ConvBlock stage: Conv3x3 + BN(train) + ReLU ----------------------- #
def _conv3x3_bn_relu(x_tiles, w_hwio, gamma, beta, *, wp, th, halo_out, tiles_per_img,
                     total_rows):
    """3x3 conv (pad=1, no bias) + BatchNorm2d(training stats) + ReLU over overlapping row tiles.

    x_tiles : (NT, th_in, wp+2, cin) bf16, W padding and row halos baked into the layout.
              th_in = th+4 if this stage must also emit 1-row output halos, else th+2.
    returns : (NT, th+2, wp+2, 128) bf16 (halo layout, feeds the next conv) if halo_out
              else (NT, th, wp, 128) bf16 (plain lane-dense tiles).
    """
    nt, th_in, wpad, cin = x_tiles.shape
    cout = w_hwio.shape[-1]
    cin_w = w_hwio.shape[2]
    assert wpad == wp + 2
    assert th_in == (th + 4 if halo_out else th + 2)
    assert cout <= C_PAD and cin_w <= cin

    # ---- weight / affine packing (zero-padded channels stay exactly zero end-to-end) ----
    single_dot = (9 * cin <= C_PAD)          # small-K stage: one im2col dot, K zero-padded to 128
    w_full = jnp.pad(w_hwio.astype(jnp.float32),
                     ((0, 0), (0, 0), (0, cin - cin_w), (0, C_PAD - cout)))   # (3,3,cin,128)
    if single_dot:
        wk = jnp.pad(w_full.reshape(9 * cin, C_PAD),
                     ((0, C_PAD - 9 * cin), (0, 0))).astype(jnp.bfloat16)     # (128, 128)
        w_block, w_map = (C_PAD, C_PAD), (lambda p, t: (0, 0))
    else:
        wk = w_full.reshape(3, 3 * cin, C_PAD).astype(jnp.bfloat16)           # (3, 3*cin, 128)
        w_block, w_map = (3, 3 * cin, C_PAD), (lambda p, t: (0, 0, 0))

    gk = jnp.pad(gamma.astype(jnp.float32), (0, C_PAD - cout)).reshape(1, C_PAD)
    bk = jnp.pad(beta.astype(jnp.float32), (0, C_PAD - cout)).reshape(1, C_PAD)

    out_rows = th + 2 if halo_out else th
    out_width = wp + 2 if halo_out else wp
    out_block = (1, out_rows, out_width, C_PAD)
    out_shape = jax.ShapeDtypeStruct((nt, out_rows, out_width, C_PAD), jnp.bfloat16)
    inv_n = 1.0 / float(total_rows)

    def conv_rows(x, j0, nrows, w_ref):
        """Conv output rows [j0, j0+nrows) of this tile; returns (nrows*wp, 128) f32."""
        rows = nrows * wp
        if single_dot:
            taps = [x[j0 + dy:j0 + dy + nrows, dx:dx + wp, :].reshape(rows, cin)
                    for dy in range(3) for dx in range(3)]
            if 9 * cin < C_PAD:
                taps.append(jnp.zeros((rows, C_PAD - 9 * cin), x.dtype))  # pad K to 128 (MXU fill)
            patches = jnp.concatenate(taps, axis=-1)                       # (rows, 128) bf16
            return jnp.dot(patches, w_ref[...], preferred_element_type=jnp.float32)
        # per-dy accumulated dots (K = 3*cin): no full (rows, 9*cin) im2col temp.
        acc = jnp.zeros((rows, C_PAD), jnp.float32)
        for dy in range(3):
            slab = x[j0 + dy:j0 + dy + nrows, :, :]                        # (nrows, wp+2, cin)
            pat = jnp.concatenate([slab[:, dx:dx + wp, :] for dx in range(3)],
                                  axis=-1).reshape(rows, 3 * cin)
            acc = acc + jnp.dot(pat, w_ref[dy], preferred_element_type=jnp.float32)
        return acc

    def kernel(x_ref, w_ref, g_ref, b_ref, o_ref, sum_ref, ssq_ref):
        p = pl.program_id(0)   # 0: global-stats pass, 1: normalize/store pass
        t = pl.program_id(1)   # row tile

        @pl.when(jnp.logical_and(p == 0, t == 0))
        def _init():
            sum_ref[...] = jnp.zeros_like(sum_ref)
            ssq_ref[...] = jnp.zeros_like(ssq_ref)

        x = x_ref[0]                                                       # (th_in, wp+2, cin)

        @pl.when(p == 0)
        def _stats():
            # interior rows only (halo rows are duplicates / conv padding -> excluded)
            acc = conv_rows(x, 1 if halo_out else 0, th, w_ref)           # (th*wp, 128) f32
            sum_ref[...] += jnp.sum(acc, axis=0, keepdims=True)
            ssq_ref[...] += jnp.sum(acc * acc, axis=0, keepdims=True)

        @pl.when(p == 1)
        def _norm():
            mu = sum_ref[...] * inv_n
            var = jnp.maximum(ssq_ref[...] * inv_n - mu * mu, 0.0)        # biased batch variance
            scale = g_ref[...] * lax.rsqrt(var + BN_EPS)
            shift = b_ref[...] - mu * scale
            acc = conv_rows(x, 0, out_rows, w_ref)                        # recompute (no HBM RT)
            y = jnp.maximum(acc * scale + shift, 0.0).reshape(out_rows, wp, C_PAD)
            if halo_out:
                # rows 0 / th+1 are the next conv's zero padding at image top/bottom boundaries
                ti = t % tiles_per_img
                rid = lax.broadcasted_iota(jnp.int32, (out_rows, 1, 1), 0)
                kill = jnp.logical_or(jnp.logical_and(ti == 0, rid == 0),
                                      jnp.logical_and(ti == tiles_per_img - 1,
                                                      rid == out_rows - 1))
                y = jnp.where(kill, 0.0, y)
                yb = y.astype(o_ref.dtype)
                zcol = jnp.zeros((out_rows, 1, C_PAD), o_ref.dtype)       # halo-only W padding
                o_ref[0] = jnp.concatenate([zcol, yb, zcol], axis=1)
            else:
                o_ref[0] = y.astype(o_ref.dtype)

    # ---- VMEM budget / cost estimate derived from the actual block shapes ----
    vmem_cap = _vmem_capacity()
    xblk = th_in * wpad * cin * 2
    oblk = out_rows * out_width * C_PAD * 2
    temp = 6 * th_in * wp * C_PAD * 4                     # patches / f32 acc headroom per tile
    vmem_limit = _vmem_limit_bytes([xblk, oblk, wk.size * 2, temp], vmem_cap)
    flops = 2 * nt * (th + out_rows) * wp * (9 * cin) * C_PAD
    bytes_accessed = 2 * x_tiles.size * 2 + nt * out_rows * out_width * C_PAD * 2 + wk.size * 2

    return pl.pallas_call(
        kernel,
        out_shape=out_shape,
        grid_spec=pltpu.PrefetchScalarGridSpec(
            num_scalar_prefetch=0,
            grid=(2, nt),                                  # (phase, row tile)
            in_specs=[
                pl.BlockSpec((1, th_in, wpad, cin), lambda p, t: (t, 0, 0, 0)),
                pl.BlockSpec(w_block, w_map),              # weights resident in VMEM
                pl.BlockSpec((1, C_PAD), lambda p, t: (0, 0)),
                pl.BlockSpec((1, C_PAD), lambda p, t: (0, 0)),
            ],
            # phase 0 parks on block 0 (never flushed unwritten); phase 1 writes block t.
            out_specs=pl.BlockSpec(out_block, lambda p, t: (p * t, 0, 0, 0)),
            scratch_shapes=[pltpu.VMEM((1, C_PAD), jnp.float32),    # per-channel sum
                            pltpu.VMEM((1, C_PAD), jnp.float32)],   # per-channel sum of squares
        ),
        compiler_params=pltpu.CompilerParams(
            dimension_semantics=("arbitrary", "arbitrary"),
            vmem_limit_bytes=vmem_limit),
        cost_estimate=pl.CostEstimate(flops=int(flops), transcendentals=int(nt * C_PAD),
                                      bytes_accessed=int(bytes_accessed)),
    )(x_tiles, wk, gk, bk)


# ------------------------------------------ wrapper -------------------------------------------- #
@jax.jit
def encoder_block_forward(x_nchw, params):
    n, cin, h, w = x_nchw.shape
    assert h % 2 == 0 and w % 2 == 0, "MaxPool2d(2) path assumes even H, W"
    hp, wp = h // 2, w // 2
    mid = params["w1"].shape[-1]
    cout = params["w2"].shape[-1]
    assert mid <= C_PAD and cout <= C_PAD

    vmem_cap = _vmem_capacity()
    target_rows = 1024 if vmem_cap >= (100 << 20) else 512     # smaller tiles on 64 MiB (v7x)
    th = _pick_row_tile(hp, wp, target_rows)
    tiles_per_img = hp // th
    nt = n * tiles_per_img
    total_rows = n * hp * wp                                   # BN denominator (global stats)

    # ---- MaxPool2d(2) + overlapping-tile layout prep (wrapper side, NCHW f32 interface) ----
    xh = jnp.transpose(x_nchw, (0, 2, 3, 1)).astype(jnp.bfloat16)
    pooled = xh.reshape(n, hp, 2, wp, 2, cin).max(axis=(2, 4))            # (N, Hp, Wp, Cin)
    xpad = jnp.pad(pooled, ((0, 0), (2, 2), (1, 1), (0, 0)))              # (N, Hp+4, Wp+2, Cin)
    x1 = jnp.stack([xpad[:, i * th:i * th + th + 4] for i in range(tiles_per_img)], axis=1)
    x1 = x1.reshape(nt, th + 4, wp + 2, cin)                              # overlapping row tiles

    # ---- stage 1: Conv3x3 + BN + ReLU -> stage-2 input tiles (halos + W padding baked in) ----
    h1 = _conv3x3_bn_relu(x1, params["w1"], params["g1"], params["b1"],
                          wp=wp, th=th, halo_out=True,
                          tiles_per_img=tiles_per_img, total_rows=total_rows)

    # ---- stage 2: Conv3x3 + BN + ReLU -> plain lane-dense bf16 output tiles ----
    y = _conv3x3_bn_relu(h1, params["w2"], params["g2"], params["b2"],
                         wp=wp, th=th, halo_out=False,
                         tiles_per_img=tiles_per_img, total_rows=total_rows)

    # ---- epilogue: back to PyTorch NCHW / f32 (would vanish in an NHWC end-to-end pipeline) ----
    out = y.reshape(n, tiles_per_img, th, wp, C_PAD).reshape(n, hp, wp, C_PAD)[..., :cout]
    return jnp.transpose(out, (0, 3, 1, 2)).astype(jnp.float32)


# ------------------------------------------ module glue ---------------------------------------- #
def init_encoder_block_params(key, in_channels, out_channels):
    # EncoderBlock(in, out) = MaxPool2d(2) + ConvBlock(in, out) with mid_channels = out.
    mid = out_channels
    k1, k2 = jax.random.split(key)
    w1 = 0.1 * jax.random.normal(k1, (3, 3, in_channels, mid), jnp.float32)   # conv1 (HWIO)
    w2 = 0.1 * jax.random.normal(k2, (3, 3, mid, out_channels), jnp.float32)  # conv2 (HWIO)
    return dict(w1=w1, g1=jnp.ones((mid,), jnp.float32), b1=jnp.zeros((mid,), jnp.float32),
                w2=w2, g2=jnp.ones((out_channels,), jnp.float32),
                b2=jnp.zeros((out_channels,), jnp.float32))


def _reference_forward(x_nchw, params):
    # Pure-JAX reference with the same bf16-operand / f32-accumulate / bf16-activation policy.
    x = jnp.transpose(x_nchw, (0, 2, 3, 1))
    n, h, w_, c = x.shape
    x = x.reshape(n, h // 2, 2, w_ // 2, 2, c).max(axis=(2, 4)).astype(jnp.bfloat16)

    def stage(y, w, g, b):
        y = lax.conv_general_dilated(
            y.astype(jnp.bfloat16), w.astype(jnp.bfloat16), (1, 1), "SAME",
            dimension_numbers=("NHWC", "HWIO", "NHWC"),
            preferred_element_type=jnp.float32)
        mu = y.mean(axis=(0, 1, 2), keepdims=True)
        var = ((y - mu) ** 2).mean(axis=(0, 1, 2), keepdims=True)
        y = (y - mu) * lax.rsqrt(var + BN_EPS) * g + b
        return jnp.maximum(y, 0.0)

    h1 = stage(x, params["w1"], params["g1"], params["b1"]).astype(jnp.bfloat16)
    h2 = stage(h1, params["w2"], params["g2"], params["b2"]).astype(jnp.bfloat16)
    return jnp.transpose(h2.astype(jnp.float32), (0, 3, 1, 2))


if __name__ == "__main__":
    key = jax.random.PRNGKey(0)
    kx, kp, kx2, kp2 = jax.random.split(key, 4)

    # primary (small) shape matching the module interface: NCHW like PyTorch
    in_channels, out_channels = 4, 8
    x = jax.random.normal(kx, (2, in_channels, 16, 16), jnp.float32)
    params = init_encoder_block_params(kp, in_channels, out_channels)
    out = jax.block_until_ready(encoder_block_forward(x, params))
    assert out.shape == (2, out_channels, 8, 8), out.shape
    ref = _reference_forward(x, params)
    err = float(jnp.max(jnp.abs(out - ref)))
    assert err < 2.5e-2, f"mismatch vs reference: {err}"

    # secondary check exercising the multi-row-tile grid (tiles_per_img > 1) and global BN stats
    x2 = jax.random.normal(kx2, (1, 3, 64, 128), jnp.float32)
    params2 = init_encoder_block_params(kp2, 3, 16)
    out2 = jax.block_until_ready(encoder_block_forward(x2, params2))
    assert out2.shape == (1, 16, 32, 64), out2.shape
    ref2 = _reference_forward(x2, params2)
    err2 = float(jnp.max(jnp.abs(out2 - ref2)))
    assert err2 < 2.5e-2, f"mismatch vs reference (tiled case): {err2}"

    print("KERNEL_OK")
</pallas_src>

<mosaic_0001>
module attributes {stable_mosaic.version = 11 : i64} {
  func.func @kernel(%arg0: i32, %arg1: i32, %arg2: memref<1x12x10x4xbf16, #tpu.memory_space<vmem>>, %arg3: memref<128x128xbf16, #tpu.memory_space<vmem>>, %arg4: memref<1x128xf32, #tpu.memory_space<vmem>>, %arg5: memref<1x128xf32, #tpu.memory_space<vmem>>, %arg6: memref<1x10x10x128xbf16, #tpu.memory_space<vmem>>, %arg7: memref<1x128xf32, #tpu.memory_space<vmem>>, %arg8: memref<1x128xf32, #tpu.memory_space<vmem>>) attributes {dimension_semantics = [#tpu.dimension_semantics<arbitrary>, #tpu.dimension_semantics<arbitrary>], iteration_bounds = array<i64: 2, 2>, scalar_prefetch = 0 : i64, scratch_operands = 2 : i64, tpu.core_type = #tpu.core_type<tc>, window_params = [{transform_indices = @transform_0, window_bounds = array<i64: 1, 12, 10, 4>}, {pipeline_mode = #tpu.pipeline_mode<synchronous>, transform_indices = @transform_1, window_bounds = array<i64: 128, 128>}, {pipeline_mode = #tpu.pipeline_mode<synchronous>, transform_indices = @transform_2, window_bounds = array<i64: 1, 128>}, {pipeline_mode = #tpu.pipeline_mode<synchronous>, transform_indices = @transform_3, window_bounds = array<i64: 1, 128>}, {transform_indices = @transform_4, window_bounds = array<i64: 1, 10, 10, 128>}]} {
    %c0_i32 = arith.constant 0 : i32
    %0 = arith.cmpi eq, %arg0, %c0_i32 : i32
    %c0_i32_0 = arith.constant 0 : i32
    %1 = arith.cmpi eq, %arg1, %c0_i32_0 : i32
    %2 = arith.andi %0, %1 : i1
    %3 = arith.extui %2 : i1 to i32
    %c0_i32_1 = arith.constant 0 : i32
    %4 = arith.cmpi ne, %3, %c0_i32_1 : i32
    scf.if %4 {
      %cst = arith.constant 0.000000e+00 : f32
      %13 = vector.broadcast %cst : f32 to vector<1x128xf32>
      %c0_8 = arith.constant 0 : index
      %c0_9 = arith.constant 0 : index
      %14 = vector.load %arg7[%c0_8, %c0_9] : memref<1x128xf32, #tpu.memory_space<vmem>>, vector<1x128xf32>
      tpu.vector_store %arg7[%c0_8, %c0_9], %13 {strides = array<i32>} : memref<1x128xf32, #tpu.memory_space<vmem>>, vector<1x128xf32>,
      %cst_10 = arith.constant 0.000000e+00 : f32
      %15 = vector.broadcast %cst_10 : f32 to vector<1x128xf32>
      %c0_11 = arith.constant 0 : index
      %c0_12 = arith.constant 0 : index
      %16 = vector.load %arg8[%c0_11, %c0_12] : memref<1x128xf32, #tpu.memory_space<vmem>>, vector<1x128xf32>
      tpu.vector_store %arg8[%c0_11, %c0_12], %15 {strides = array<i32>} : memref<1x128xf32, #tpu.memory_space<vmem>>, vector<1x128xf32>,
    } else {
    }
    %c0 = arith.constant 0 : index
    %c0_2 = arith.constant 0 : index
    %c0_3 = arith.constant 0 : index
    %c0_4 = arith.constant 0 : index
    %5 = vector.load %arg2[%c0, %c0_2, %c0_3, %c0_4] : memref<1x12x10x4xbf16, #tpu.memory_space<vmem>>, vector<1x12x10x4xbf16>
    %6 = vector.shape_cast %5 : vector<1x12x10x4xbf16> to vector<12x10x4xbf16>
    %c0_i32_5 = arith.constant 0 : i32
    %7 = arith.cmpi eq, %arg0, %c0_i32_5 : i32
    %8 = arith.extui %7 : i1 to i32
    %c0_i32_6 = arith.constant 0 : i32
    %9 = arith.cmpi ne, %8, %c0_i32_6 : i32
    scf.if %9 {
      %13 = vector.extract_strided_slice %6 {offsets = [1, 0, 0], sizes = [8, 8, 4], strides = [1, 1, 1]} : vector<12x10x4xbf16> to vector<8x8x4xbf16>
      %14 = vector.shape_cast %13 : vector<8x8x4xbf16> to vector<64x4xbf16>
      %15 = vector.extract_strided_slice %6 {offsets = [1, 1, 0], sizes = [8, 8, 4], strides = [1, 1, 1]} : vector<12x10x4xbf16> to vector<8x8x4xbf16>
      %16 = vector.shape_cast %15 : vector<8x8x4xbf16> to vector<64x4xbf16>
      %17 = vector.extract_strided_slice %6 {offsets = [1, 2, 0], sizes = [8, 8, 4], strides = [1, 1, 1]} : vector<12x10x4xbf16> to vector<8x8x4xbf16>
      %18 = vector.shape_cast %17 : vector<8x8x4xbf16> to vector<64x4xbf16>
      %19 = vector.extract_strided_slice %6 {offsets = [2, 0, 0], sizes = [8, 8, 4], strides = [1, 1, 1]} : vector<12x10x4xbf16> to vector<8x8x4xbf16>
      %20 = vector.shape_cast %19 : vector<8x8x4xbf16> to vector<64x4xbf16>
      %21 = vector.extract_strided_slice %6 {offsets = [2, 1, 0], sizes = [8, 8, 4], strides = [1, 1, 1]} : vector<12x10x4xbf16> to vector<8x8x4xbf16>
      %22 = vector.shape_cast %21 : vector<8x8x4xbf16> to vector<64x4xbf16>
      %23 = vector.extract_strided_slice %6 {offsets = [2, 2, 0], sizes = [8, 8, 4], strides = [1, 1, 1]} : vector<12x10x4xbf16> to vector<8x8x4xbf16>
      %24 = vector.shape_cast %23 : vector<8x8x4xbf16> to vector<64x4xbf16>
      %25 = vector.extract_strided_slice %6 {offsets = [3, 0, 0], sizes = [8, 8, 4], strides = [1, 1, 1]} : vector<12x10x4xbf16> to vector<8x8x4xbf16>
      %26 = vector.shape_cast %25 : vector<8x8x4xbf16> to vector<64x4xbf16>
      %27 = vector.extract_strided_slice %6 {offsets = [3, 1, 0], sizes = [8, 8, 4], strides = [1, 1, 1]} : vector<12x10x4xbf16> to vector<8x8x4xbf16>
      %28 = vector.shape_cast %27 : vector<8x8x4xbf16> to vector<64x4xbf16>
      %29 = vector.extract_strided_slice %6 {offsets = [3, 2, 0], sizes = [8, 8, 4], strides = [1, 1, 1]} : vector<12x10x4xbf16> to vector<8x8x4xbf16>
      %30 = vector.shape_cast %29 : vector<8x8x4xbf16> to vector<64x4xbf16>
      %cst = arith.constant 0.000000e+00 : bf16
      %31 = vector.broadcast %cst : bf16 to vector<64x92xbf16>
      %32 = tpu.concatenate %14, %16, %18, %20, %22, %24, %26, %28, %30, %31 in 1 : vector<64x4xbf16>, vector<64x4xbf16>, vector<64x4xbf16>, vector<64x4xbf16>, vector<64x4xbf16>, vector<64x4xbf16>, vector<64x4xbf16>, vector<64x4xbf16>, vector<64x4xbf16>, vector<64x92xbf16> -> vector<64x128xbf16>
      %c0_8 = arith.constant 0 : index
      %c0_9 = arith.constant 0 : index
      %33 = vector.load %arg3[%c0_8, %c0_9] : memref<128x128xbf16, #tpu.memory_space<vmem>>, vector<128x128xbf16>
      %cst_10 = arith.constant dense<0.000000e+00> : vector<64x128xf32>
      %34 = tpu.matmul %32, %33, %cst_10 {dimension_numbers = #tpu.dot_dimension_numbers<[1], [0], [0], [1], [0, 0, 1, 1], [], []>} : vector<64x128xbf16>, vector<128x128xbf16>, vector<64x128xf32> -> vector<64x128xf32>
      %c0_11 = arith.constant 0 : index
      %c0_12 = arith.constant 0 : index
      %35 = vector.load %arg7[%c0_11, %c0_12] : memref<1x128xf32, #tpu.memory_space<vmem>>, vector<1x128xf32>
      %cst_13 = arith.constant dense<0.000000e+00> : vector<128xf32>
      %36 = vector.multi_reduction <add>, %34, %cst_13 [0] : vector<64x128xf32> to vector<128xf32>
      %37 = vector.shape_cast %36 : vector<128xf32> to vector<1x128xf32>
      %38 = arith.addf %35, %37 : vector<1x128xf32>
      %c0_14 = arith.constant 0 : index
      %c0_15 = arith.constant 0 : index
      %39 = vector.load %arg7[%c0_14, %c0_15] : memref<1x128xf32, #tpu.memory_space<vmem>>, vector<1x128xf32>
      tpu.vector_store %arg7[%c0_14, %c0_15], %38 {strides = array<i32>} : memref<1x128xf32, #tpu.memory_space<vmem>>, vector<1x128xf32>,
      %c0_16 = arith.constant 0 : index
      %c0_17 = arith.constant 0 : index
      %40 = vector.load %arg8[%c0_16, %c0_17] : memref<1x128xf32, #tpu.memory_space<vmem>>, vector<1x128xf32>
      %41 = arith.mulf %34, %34 : vector<64x128xf32>
      %cst_18 = arith.constant dense<0.000000e+00> : vector<128xf32>
      %42 = vector.multi_reduction <add>, %41, %cst_18 [0] : vector<64x128xf32> to vector<128xf32>
      %43 = vector.shape_cast %42 : vector<128xf32> to vector<1x128xf32>
      %44 = arith.addf %40, %43 : vector<1x128xf32>
      %c0_19 = arith.constant 0 : index
      %c0_20 = arith.constant 0 : index
      %45 = vector.load %arg8[%c0_19, %c0_20] : memref<1x128xf32, #tpu.memory_space<vmem>>, vector<1x128xf32>
      tpu.vector_store %arg8[%c0_19, %c0_20], %44 {strides = array<i32>} : memref<1x128xf32, #tpu.memory_space<vmem>>, vector<1x128xf32>,
    } else {
    }
    %c1_i32 = arith.constant 1 : i32
    %10 = arith.cmpi eq, %arg0, %c1_i32 : i32
    %11 = arith.extui %10 : i1 to i32
    %c0_i32_7 = arith.constant 0 : i32
    %12 = arith.cmpi ne, %11, %c0_i32_7 : i32
    scf.if %12 {
      %c0_8 = arith.constant 0 : index
      %c0_9 = arith.constant 0 : index
      %13 = vector.load %arg7[%c0_8, %c0_9] : memref<1x128xf32, #tpu.memory_space<vmem>>, vector<1x128xf32>
      %cst = arith.constant 7.812500e-03 : f32
      %14 = vector.broadcast %cst : f32 to vector<1x128xf32>
      %15 = arith.mulf %13, %14 : vector<1x128xf32>
      %c0_10 = arith.constant 0 : index
      %c0_11 = arith.constant 0 : index
      %16 = vector.load %arg8[%c0_10, %c0_11] : memref<1x128xf32, #tpu.memory_space<vmem>>, vector<1x128xf32>
      %cst_12 = arith.constant 7.812500e-03 : f32
      %17 = vector.broadcast %cst_12 : f32 to vector<1x128xf32>
      %18 = arith.mulf %16, %17 : vector<1x128xf32>
      %19 = arith.mulf %15, %15 : vector<1x128xf32>
      %20 = arith.subf %18, %19 : vector<1x128xf32>
      %cst_13 = arith.constant 0.000000e+00 : f32
      %21 = vector.broadcast %cst_13 : f32 to vector<1x128xf32>
      %22 = arith.maximumf %20, %21 : vector<1x128xf32>
      %c0_14 = arith.constant 0 : index
      %c0_15 = arith.constant 0 : index
      %23 = vector.load %arg4[%c0_14, %c0_15] : memref<1x128xf32, #tpu.memory_space<vmem>>, vector<1x128xf32>
      %cst_16 = arith.constant 9.99999974E-6 : f32
      %24 = vector.broadcast %cst_16 : f32 to vector<1x128xf32>
      %25 = arith.addf %22, %24 : vector<1x128xf32>
      %26 = math.rsqrt %25 : vector<1x128xf32>
      %27 = arith.mulf %23, %26 : vector<1x128xf32>
      %c0_17 = arith.constant 0 : index
      %c0_18 = arith.constant 0 : index
      %28 = vector.load %arg5[%c0_17, %c0_18] : memref<1x128xf32, #tpu.memory_space<vmem>>, vector<1x128xf32>
      %29 = arith.mulf %15, %27 : vector<1x128xf32>
      %30 = arith.subf %28, %29 : vector<1x128xf32>
      %31 = vector.extract_strided_slice %6 {offsets = [0, 0, 0], sizes = [10, 8, 4], strides = [1, 1, 1]} : vector<12x10x4xbf16> to vector<10x8x4xbf16>
      %32 = vector.shape_cast %31 : vector<10x8x4xbf16> to vector<80x4xbf16>
      %33 = vector.extract_strided_slice %6 {offsets = [0, 1, 0], sizes = [10, 8, 4], strides = [1, 1, 1]} : vector<12x10x4xbf16> to vector<10x8x4xbf16>
      %34 = vector.shape_cast %33 : vector<10x8x4xbf16> to vector<80x4xbf16>
      %35 = vector.extract_strided_slice %6 {offsets = [0, 2, 0], sizes = [10, 8, 4], strides = [1, 1, 1]} : vector<12x10x4xbf16> to vector<10x8x4xbf16>
      %36 = vector.shape_cast %35 : vector<10x8x4xbf16> to vector<80x4xbf16>
      %37 = vector.extract_strided_slice %6 {offsets = [1, 0, 0], sizes = [10, 8, 4], strides = [1, 1, 1]} : vector<12x10x4xbf16> to vector<10x8x4xbf16>
      %38 = vector.shape_cast %37 : vector<10x8x4xbf16> to vector<80x4xbf16>
      %39 = vector.extract_strided_slice %6 {offsets = [1, 1, 0], sizes = [10, 8, 4], strides = [1, 1, 1]} : vector<12x10x4xbf16> to vector<10x8x4xbf16>
      %40 = vector.shape_cast %39 : vector<10x8x4xbf16> to vector<80x4xbf16>
      %41 = vector.extract_strided_slice %6 {offsets = [1, 2, 0], sizes = [10, 8, 4], strides = [1, 1, 1]} : vector<12x10x4xbf16> to vector<10x8x4xbf16>
      %42 = vector.shape_cast %41 : vector<10x8x4xbf16> to vector<80x4xbf16>
      %43 = vector.extract_strided_slice %6 {offsets = [2, 0, 0], sizes = [10, 8, 4], strides = [1, 1, 1]} : vector<12x10x4xbf16> to vector<10x8x4xbf16>
      %44 = vector.shape_cast %43 : vector<10x8x4xbf16> to vector<80x4xbf16>
      %45 = vector.extract_strided_slice %6 {offsets = [2, 1, 0], sizes = [10, 8, 4], strides = [1, 1, 1]} : vector<12x10x4xbf16> to vector<10x8x4xbf16>
      %46 = vector.shape_cast %45 : vector<10x8x4xbf16> to vector<80x4xbf16>
      %47 = vector.extract_strided_slice %6 {offsets = [2, 2, 0], sizes = [10, 8, 4], strides = [1, 1, 1]} : vector<12x10x4xbf16> to vector<10x8x4xbf16>
      %48 = vector.shape_cast %47 : vector<10x8x4xbf16> to vector<80x4xbf16>
      %cst_19 = arith.constant 0.000000e+00 : bf16
      %49 = vector.broadcast %cst_19 : bf16 to vector<80x92xbf16>
      %50 = tpu.concatenate %32, %34, %36, %38, %40, %42, %44, %46, %48, %49 in 1 : vector<80x4xbf16>, vector<80x4xbf16>, vector<80x4xbf16>, vector<80x4xbf16>, vector<80x4xbf16>, vector<80x4xbf16>, vector<80x4xbf16>, vector<80x4xbf16>, vector<80x4xbf16>, vector<80x92xbf16> -> vector<80x128xbf16>
      %c0_20 = arith.constant 0 : index
      %c0_21 = arith.constant 0 : index
      %51 = vector.load %arg3[%c0_20, %c0_21] : memref<128x128xbf16, #tpu.memory_space<vmem>>, vector<128x128xbf16>
      %cst_22 = arith.constant dense<0.000000e+00> : vector<80x128xf32>
      %52 = tpu.matmul %50, %51, %cst_22 {dimension_numbers = #tpu.dot_dimension_numbers<[1], [0], [0], [1], [0, 0, 1, 1], [], []>} : vector<80x128xbf16>, vector<128x128xbf16>, vector<80x128xf32> -> vector<80x128xf32>
      %53 = vector.broadcast %27 : vector<1x128xf32> to vector<80x128xf32>
      %54 = arith.mulf %52, %53 : vector<80x128xf32>
      %55 = vector.broadcast %30 : vector<1x128xf32> to vector<80x128xf32>
      %56 = arith.addf %54, %55 : vector<80x128xf32>
      %cst_23 = arith.constant 0.000000e+00 : f32
      %57 = vector.broadcast %cst_23 : f32 to vector<80x128xf32>
      %58 = arith.maximumf %56, %57 : vector<80x128xf32>
      %59 = vector.shape_cast %58 : vector<80x128xf32> to vector<10x8x128xf32>
      %c1_i32_24 = arith.constant 1 : i32
      %c0_i32_25 = arith.constant 0 : i32
      %60 = arith.cmpi eq, %c1_i32_24, %c0_i32_25 : i32
      %c1_i32_26 = arith.constant 1 : i32
      %61 = arith.select %60, %c1_i32_26, %c1_i32_24 : i32
      %62 = arith.remsi %arg1, %61 : i32
      %c0_i32_27 = arith.constant 0 : i32
      %63 = arith.cmpi ne, %62, %c0_i32_27 : i32
      %c0_i32_28 = arith.constant 0 : i32
      %64 = arith.cmpi slt, %62, %c0_i32_28 : i32
      %c0_i32_29 = arith.constant 0 : i32
      %65 = arith.cmpi slt, %61, %c0_i32_29 : i32
      %66 = arith.xori %64, %65 : i1
      %67 = arith.andi %66, %63 : i1
      %68 = arith.addi %62, %61 : i32
      %69 = arith.select %67, %68, %62 : i32
      %70 = tpu.iota {dimensions = array<i32: 0>} : vector<10x1x1xi32>
      %c0_i32_30 = arith.constant 0 : i32
      %71 = arith.cmpi eq, %69, %c0_i32_30 : i32
      %c0_i32_31 = arith.constant 0 : i32
      %72 = vector.broadcast %c0_i32_31 : i32 to vector<10x1x1xi32>
      %73 = arith.cmpi eq, %70, %72 : vector<10x1x1xi32>
      %74 = vector.broadcast %71 : i1 to vector<10x1x1xi1>
      %75 = arith.andi %74, %73 : vector<10x1x1xi1>
      %c0_i32_32 = arith.constant 0 : i32
      %76 = arith.cmpi eq, %69, %c0_i32_32 : i32
      %c9_i32 = arith.constant 9 : i32
      %77 = vector.broadcast %c9_i32 : i32 to vector<10x1x1xi32>
      %78 = arith.cmpi eq, %70, %77 : vector<10x1x1xi32>
      %79 = vector.broadcast %76 : i1 to vector<10x1x1xi1>
      %80 = arith.andi %79, %78 : vector<10x1x1xi1>
      %81 = arith.ori %75, %80 : vector<10x1x1xi1>
      %cst_33 = arith.constant 0.000000e+00 : f32
      %82 = vector.shape_cast %81 : vector<10x1x1xi1> to vector<10x1x1xi1>
      %83 = vector.broadcast %82 : vector<10x1x1xi1> to vector<10x8x128xi1>
      %84 = vector.broadcast %cst_33 : f32 to vector<10x8x128xf32>
      %85 = arith.select %83, %84, %59 : vector<10x8x128xi1>, vector<10x8x128xf32>
      %86 = arith.truncf %85 : vector<10x8x128xf32> to vector<10x8x128xbf16>
      %cst_34 = arith.constant 0.000000e+00 : bf16
      %87 = vector.broadcast %cst_34 : bf16 to vector<10x1x128xbf16>
      %88 = tpu.concatenate %87, %86, %87 in 1 : vector<10x1x128xbf16>, vector<10x8x128xbf16>, vector<10x1x128xbf16> -> vector<10x10x128xbf16>
      %c0_35 = arith.constant 0 : index
      %c0_36 = arith.constant 0 : index
      %c0_37 = arith.constant 0 : index
      %c0_38 = arith.constant 0 : index
      %89 = vector.load %arg6[%c0_35, %c0_36, %c0_37, %c0_38] : memref<1x10x10x128xbf16, #tpu.memory_space<vmem>>, vector<1x10x10x128xbf16>
      %90 = vector.shape_cast %89 : vector<1x10x10x128xbf16> to vector<10x10x128xbf16>
      %91 = vector.shape_cast %88 : vector<10x10x128xbf16> to vector<1x10x10x128xbf16>
      tpu.vector_store %arg6[%c0_35, %c0_36, %c0_37, %c0_38], %91 {strides = array<i32>} : memref<1x10x10x128xbf16, #tpu.memory_space<vmem>>, vector<1x10x10x128xbf16>,
    } else {
    }
    return
  }
  func.func @transform_0(%arg0: i32, %arg1: i32) -> (i32, i32, i32, i32) {
    %c0_i32 = arith.constant 0 : i32
    %c0_i32_0 = arith.constant 0 : i32
    %c0_i32_1 = arith.constant 0 : i32
    %c0_i32_2 = arith.constant 0 : i32
    return %arg1, %c0_i32, %c0_i32_0, %c0_i32_1 : i32, i32, i32, i32
  }
  func.func @transform_1(%arg0: i32, %arg1: i32) -> (i32, i32) {
    %c0_i32 = arith.constant 0 : i32
    %c0_i32_0 = arith.constant 0 : i32
    %c0_i32_1 = arith.constant 0 : i32
    return %c0_i32, %c0_i32_0 : i32, i32
  }
  func.func @transform_2(%arg0: i32, %arg1: i32) -> (i32, i32) {
    %c0_i32 = arith.constant 0 : i32
    %c0_i32_0 = arith.constant 0 : i32
    %c0_i32_1 = arith.constant 0 : i32
    return %c0_i32, %c0_i32_0 : i32, i32
  }
  func.func @transform_3(%arg0: i32, %arg1: i32) -> (i32, i32) {
    %c0_i32 = arith.constant 0 : i32
    %c0_i32_0 = arith.constant 0 : i32
    %c0_i32_1 = arith.constant 0 : i32
    return %c0_i32, %c0_i32_0 : i32, i32
  }
  func.func @transform_4(%arg0: i32, %arg1: i32) -> (i32, i32, i32, i32) {
    %0 = arith.muli %arg0, %arg1 : i32
    %c0_i32 = arith.constant 0 : i32
    %c0_i32_0 = arith.constant 0 : i32
    %c0_i32_1 = arith.constant 0 : i32
    %c0_i32_2 = arith.constant 0 : i32
    return %0, %c0_i32, %c0_i32_0, %c0_i32_1 : i32, i32, i32, i32
  }
}

module attributes {stable_mosaic.version = 11 : i64} {
  func.func @kernel(%arg0: i32, %arg1: i32, %arg2: memref<1x10x10x128xbf16, #tpu.memory_space<vmem>>, %arg3: memref<3x384x128xbf16, #tpu.memory_space<vmem>>, %arg4: memref<1x128xf32, #tpu.memory_space<vmem>>, %arg5: memref<1x128xf32, #tpu.memory_space<vmem>>, %arg6: memref<1x8x8x128xbf16, #tpu.memory_space<vmem>>, %arg7: memref<1x128xf32, #tpu.memory_space<vmem>>, %arg8: memref<1x128xf32, #tpu.memory_space<vmem>>) attributes {dimension_semantics = [#tpu.dimension_semantics<arbitrary>, #tpu.dimension_semantics<arbitrary>], iteration_bounds = array<i64: 2, 2>, scalar_prefetch = 0 : i64, scratch_operands = 2 : i64, tpu.core_type = #tpu.core_type<tc>, window_params = [{transform_indices = @transform_0, window_bounds = array<i64: 1, 10, 10, 128>}, {pipeline_mode = #tpu.pipeline_mode<synchronous>, transform_indices = @transform_1, window_bounds = array<i64: 3, 384, 128>}, {pipeline_mode = #tpu.pipeline_mode<synchronous>, transform_indices = @transform_2, window_bounds = array<i64: 1, 128>}, {pipeline_mode = #tpu.pipeline_mode<synchronous>, transform_indices = @transform_3, window_bounds = array<i64: 1, 128>}, {transform_indices = @transform_4, window_bounds = array<i64: 1, 8, 8, 128>}]} {
    %c0_i32 = arith.constant 0 : i32
    %0 = arith.cmpi eq, %arg0, %c0_i32 : i32
    %c0_i32_0 = arith.constant 0 : i32
    %1 = arith.cmpi eq, %arg1, %c0_i32_0 : i32
    %2 = arith.andi %0, %1 : i1
    %3 = arith.extui %2 : i1 to i32
    %c0_i32_1 = arith.constant 0 : i32
    %4 = arith.cmpi ne, %3, %c0_i32_1 : i32
    scf.if %4 {
      %cst = arith.constant 0.000000e+00 : f32
      %13 = vector.broadcast %cst : f32 to vector<1x128xf32>
      %c0_8 = arith.constant 0 : index
      %c0_9 = arith.constant 0 : index
      %14 = vector.load %arg7[%c0_8, %c0_9] : memref<1x128xf32, #tpu.memory_space<vmem>>, vector<1x128xf32>
      tpu.vector_store %arg7[%c0_8, %c0_9], %13 {strides = array<i32>} : memref<1x128xf32, #tpu.memory_space<vmem>>, vector<1x128xf32>,
      %cst_10 = arith.constant 0.000000e+00 : f32
      %15 = vector.broadcast %cst_10 : f32 to vector<1x128xf32>
      %c0_11 = arith.constant 0 : index
      %c0_12 = arith.constant 0 : index
      %16 = vector.load %arg8[%c0_11, %c0_12] : memref<1x128xf32, #tpu.memory_space<vmem>>, vector<1x128xf32>
      tpu.vector_store %arg8[%c0_11, %c0_12], %15 {strides = array<i32>} : memref<1x128xf32, #tpu.memory_space<vmem>>, vector<1x128xf32>,
    } else {
    }
    %c0 = arith.constant 0 : index
    %c0_2 = arith.constant 0 : index
    %c0_3 = arith.constant 0 : index
    %c0_4 = arith.constant 0 : index
    %5 = vector.load %arg2[%c0, %c0_2, %c0_3, %c0_4] : memref<1x10x10x128xbf16, #tpu.memory_space<vmem>>, vector<1x10x10x128xbf16>
    %6 = vector.shape_cast %5 : vector<1x10x10x128xbf16> to vector<10x10x128xbf16>
    %c0_i32_5 = arith.constant 0 : i32
    %7 = arith.cmpi eq, %arg0, %c0_i32_5 : i32
    %8 = arith.extui %7 : i1 to i32
    %c0_i32_6 = arith.constant 0 : i32
    %9 = arith.cmpi ne, %8, %c0_i32_6 : i32
    scf.if %9 {
      %cst = arith.constant 0.000000e+00 : f32
      %13 = vector.broadcast %cst : f32 to vector<64x128xf32>
      %14 = vector.extract_strided_slice %6 {offsets = [0, 0, 0], sizes = [8, 10, 128], strides = [1, 1, 1]} : vector<10x10x128xbf16> to vector<8x10x128xbf16>
      %15 = vector.extract_strided_slice %14 {offsets = [0, 0, 0], sizes = [8, 8, 128], strides = [1, 1, 1]} : vector<8x10x128xbf16> to vector<8x8x128xbf16>
      %16 = vector.extract_strided_slice %14 {offsets = [0, 1, 0], sizes = [8, 8, 128], strides = [1, 1, 1]} : vector<8x10x128xbf16> to vector<8x8x128xbf16>
      %17 = vector.extract_strided_slice %14 {offsets = [0, 2, 0], sizes = [8, 8, 128], strides = [1, 1, 1]} : vector<8x10x128xbf16> to vector<8x8x128xbf16>
      %18 = tpu.concatenate %15, %16, %17 in 2 : vector<8x8x128xbf16>, vector<8x8x128xbf16>, vector<8x8x128xbf16> -> vector<8x8x384xbf16>
      %19 = vector.shape_cast %18 : vector<8x8x384xbf16> to vector<64x384xbf16>
      %c0_8 = arith.constant 0 : index
      %c0_9 = arith.constant 0 : index
      %c0_10 = arith.constant 0 : index
      %20 = vector.load %arg3[%c0_8, %c0_9, %c0_10] : memref<3x384x128xbf16, #tpu.memory_space<vmem>>, vector<1x384x128xbf16>
      %21 = vector.shape_cast %20 : vector<1x384x128xbf16> to vector<384x128xbf16>
      %cst_11 = arith.constant dense<0.000000e+00> : vector<64x128xf32>
      %22 = tpu.matmul %19, %21, %cst_11 {dimension_numbers = #tpu.dot_dimension_numbers<[1], [0], [0], [1], [0, 0, 1, 1], [], []>} : vector<64x384xbf16>, vector<384x128xbf16>, vector<64x128xf32> -> vector<64x128xf32>
      %23 = arith.addf %13, %22 : vector<64x128xf32>
      %24 = vector.extract_strided_slice %6 {offsets = [1, 0, 0], sizes = [8, 10, 128], strides = [1, 1, 1]} : vector<10x10x128xbf16> to vector<8x10x128xbf16>
      %25 = vector.extract_strided_slice %24 {offsets = [0, 0, 0], sizes = [8, 8, 128], strides = [1, 1, 1]} : vector<8x10x128xbf16> to vector<8x8x128xbf16>
      %26 = vector.extract_strided_slice %24 {offsets = [0, 1, 0], sizes = [8, 8, 128], strides = [1, 1, 1]} : vector<8x10x128xbf16> to vector<8x8x128xbf16>
      %27 = vector.extract_strided_slice %24 {offsets = [0, 2, 0], sizes = [8, 8, 128], strides = [1, 1, 1]} : vector<8x10x128xbf16> to vector<8x8x128xbf16>
      %28 = tpu.concatenate %25, %26, %27 in 2 : vector<8x8x128xbf16>, vector<8x8x128xbf16>, vector<8x8x128xbf16> -> vector<8x8x384xbf16>
      %29 = vector.shape_cast %28 : vector<8x8x384xbf16> to vector<64x384xbf16>
      %c1 = arith.constant 1 : index
      %c0_12 = arith.constant 0 : index
      %c0_13 = arith.constant 0 : index
      %30 = vector.load %arg3[%c1, %c0_12, %c0_13] : memref<3x384x128xbf16, #tpu.memory_space<vmem>>, vector<1x384x128xbf16>
      %31 = vector.shape_cast %30 : vector<1x384x128xbf16> to vector<384x128xbf16>
      %cst_14 = arith.constant dense<0.000000e+00> : vector<64x128xf32>
      %32 = tpu.matmul %29, %31, %cst_14 {dimension_numbers = #tpu.dot_dimension_numbers<[1], [0], [0], [1], [0, 0, 1, 1], [], []>} : vector<64x384xbf16>, vector<384x128xbf16>, vector<64x128xf32> -> vector<64x128xf32>
      %33 = arith.addf %23, %32 : vector<64x128xf32>
      %34 = vector.extract_strided_slice %6 {offsets = [2, 0, 0], sizes = [8, 10, 128], strides = [1, 1, 1]} : vector<10x10x128xbf16> to vector<8x10x128xbf16>
      %35 = vector.extract_strided_slice %34 {offsets = [0, 0, 0], sizes = [8, 8, 128], strides = [1, 1, 1]} : vector<8x10x128xbf16> to vector<8x8x128xbf16>
      %36 = vector.extract_strided_slice %34 {offsets = [0, 1, 0], sizes = [8, 8, 128], strides = [1, 1, 1]} : vector<8x10x128xbf16> to vector<8x8x128xbf16>
      %37 = vector.extract_strided_slice %34 {offsets = [0, 2, 0], sizes = [8, 8, 128], strides = [1, 1, 1]} : vector<8x10x128xbf16> to vector<8x8x128xbf16>
      %38 = tpu.concatenate %35, %36, %37 in 2 : vector<8x8x128xbf16>, vector<8x8x128xbf16>, vector<8x8x128xbf16> -> vector<8x8x384xbf16>
      %39 = vector.shape_cast %38 : vector<8x8x384xbf16> to vector<64x384xbf16>
      %c2 = arith.constant 2 : index
      %c0_15 = arith.constant 0 : index
      %c0_16 = arith.constant 0 : index
      %40 = vector.load %arg3[%c2, %c0_15, %c0_16] : memref<3x384x128xbf16, #tpu.memory_space<vmem>>, vector<1x384x128xbf16>
      %41 = vector.shape_cast %40 : vector<1x384x128xbf16> to vector<384x128xbf16>
      %cst_17 = arith.constant dense<0.000000e+00> : vector<64x128xf32>
      %42 = tpu.matmul %39, %41, %cst_17 {dimension_numbers = #tpu.dot_dimension_numbers<[1], [0], [0], [1], [0, 0, 1, 1], [], []>} : vector<64x384xbf16>, vector<384x128xbf16>, vector<64x128xf32> -> vector<64x128xf32>
      %43 = arith.addf %33, %42 : vector<64x128xf32>
      %c0_18 = arith.constant 0 : index
      %c0_19 = arith.constant 0 : index
      %44 = vector.load %arg7[%c0_18, %c0_19] : memref<1x128xf32, #tpu.memory_space<vmem>>, vector<1x128xf32>
      %cst_20 = arith.constant dense<0.000000e+00> : vector<128xf32>
      %45 = vector.multi_reduction <add>, %43, %cst_20 [0] : vector<64x128xf32> to vector<128xf32>
      %46 = vector.shape_cast %45 : vector<128xf32> to vector<1x128xf32>
      %47 = arith.addf %44, %46 : vector<1x128xf32>
      %c0_21 = arith.constant 0 : index
      %c0_22 = arith.constant 0 : index
      %48 = vector.load %arg7[%c0_21, %c0_22] : memref<1x128xf32, #tpu.memory_space<vmem>>, vector<1x128xf32>
      tpu.vector_store %arg7[%c0_21, %c0_22], %47 {strides = array<i32>} : memref<1x128xf32, #tpu.memory_space<vmem>>, vector<1x128xf32>,
      %c0_23 = arith.constant 0 : index
      %c0_24 = arith.constant 0 : index
      %49 = vector.load %arg8[%c0_23, %c0_24] : memref<1x128xf32, #tpu.memory_space<vmem>>, vector<1x128xf32>
      %50 = arith.mulf %43, %43 : vector<64x128xf32>
      %cst_25 = arith.constant dense<0.000000e+00> : vector<128xf32>
      %51 = vector.multi_reduction <add>, %50, %cst_25 [0] : vector<64x128xf32> to vector<128xf32>
      %52 = vector.shape_cast %51 : vector<128xf32> to vector<1x128xf32>
      %53 = arith.addf %49, %52 : vector<1x128xf32>
      %c0_26 = arith.constant 0 : index
      %c0_27 = arith.constant 0 : index
      %54 = vector.load %arg8[%c0_26, %c0_27] : memref<1x128xf32, #tpu.memory_space<vmem>>, vector<1x128xf32>
      tpu.vector_store %arg8[%c0_26, %c0_27], %53 {strides = array<i32>} : memref<1x128xf32, #tpu.memory_space<vmem>>, vector<1x128xf32>,
    } else {
    }
    %c1_i32 = arith.constant 1 : i32
    %10 = arith.cmpi eq, %arg0, %c1_i32 : i32
    %11 = arith.extui %10 : i1 to i32
    %c0_i32_7 = arith.constant 0 : i32
    %12 = arith.cmpi ne, %11, %c0_i32_7 : i32
    scf.if %12 {
      %c0_8 = arith.constant 0 : index
      %c0_9 = arith.constant 0 : index
      %13 = vector.load %arg7[%c0_8, %c0_9] : memref<1x128xf32, #tpu.memory_space<vmem>>, vector<1x128xf32>
      %cst = arith.constant 7.812500e-03 : f32
      %14 = vector.broadcast %cst : f32 to vector<1x128xf32>
      %15 = arith.mulf %13, %14 : vector<1x128xf32>
      %c0_10 = arith.constant 0 : index
      %c0_11 = arith.constant 0 : index
      %16 = vector.load %arg8[%c0_10, %c0_11] : memref<1x128xf32, #tpu.memory_space<vmem>>, vector<1x128xf32>
      %cst_12 = arith.constant 7.812500e-03 : f32
      %17 = vector.broadcast %cst_12 : f32 to vector<1x128xf32>
      %18 = arith.mulf %16, %17 : vector<1x128xf32>
      %19 = arith.mulf %15, %15 : vector<1x128xf32>
      %20 = arith.subf %18, %19 : vector<1x128xf32>
      %cst_13 = arith.constant 0.000000e+00 : f32
      %21 = vector.broadcast %cst_13 : f32 to vector<1x128xf32>
      %22 = arith.maximumf %20, %21 : vector<1x128xf32>
      %c0_14 = arith.constant 0 : index
      %c0_15 = arith.constant 0 : index
      %23 = vector.load %arg4[%c0_14, %c0_15] : memref<1x128xf32, #tpu.memory_space<vmem>>, vector<1x128xf32>
      %cst_16 = arith.constant 9.99999974E-6 : f32
      %24 = vector.broadcast %cst_16 : f32 to vector<1x128xf32>
      %25 = arith.addf %22, %24 : vector<1x128xf32>
      %26 = math.rsqrt %25 : vector<1x128xf32>
      %27 = arith.mulf %23, %26 : vector<1x128xf32>
      %c0_17 = arith.constant 0 : index
      %c0_18 = arith.constant 0 : index
      %28 = vector.load %arg5[%c0_17, %c0_18] : memref<1x128xf32, #tpu.memory_space<vmem>>, vector<1x128xf32>
      %29 = arith.mulf %15, %27 : vector<1x128xf32>
      %30 = arith.subf %28, %29 : vector<1x128xf32>
      %cst_19 = arith.constant 0.000000e+00 : f32
      %31 = vector.broadcast %cst_19 : f32 to vector<64x128xf32>
      %32 = vector.extract_strided_slice %6 {offsets = [0, 0, 0], sizes = [8, 10, 128], strides = [1, 1, 1]} : vector<10x10x128xbf16> to vector<8x10x128xbf16>
      %33 = vector.extract_strided_slice %32 {offsets = [0, 0, 0], sizes = [8, 8, 128], strides = [1, 1, 1]} : vector<8x10x128xbf16> to vector<8x8x128xbf16>
      %34 = vector.extract_strided_slice %32 {offsets = [0, 1, 0], sizes = [8, 8, 128], strides = [1, 1, 1]} : vector<8x10x128xbf16> to vector<8x8x128xbf16>
      %35 = vector.extract_strided_slice %32 {offsets = [0, 2, 0], sizes = [8, 8, 128], strides = [1, 1, 1]} : vector<8x10x128xbf16> to vector<8x8x128xbf16>
      %36 = tpu.concatenate %33, %34, %35 in 2 : vector<8x8x128xbf16>, vector<8x8x128xbf16>, vector<8x8x128xbf16> -> vector<8x8x384xbf16>
      %37 = vector.shape_cast %36 : vector<8x8x384xbf16> to vector<64x384xbf16>
      %c0_20 = arith.constant 0 : index
      %c0_21 = arith.constant 0 : index
      %c0_22 = arith.constant 0 : index
      %38 = vector.load %arg3[%c0_20, %c0_21, %c0_22] : memref<3x384x128xbf16, #tpu.memory_space<vmem>>, vector<1x384x128xbf16>
      %39 = vector.shape_cast %38 : vector<1x384x128xbf16> to vector<384x128xbf16>
      %cst_23 = arith.constant dense<0.000000e+00> : vector<64x128xf32>
      %40 = tpu.matmul %37, %39, %cst_23 {dimension_numbers = #tpu.dot_dimension_numbers<[1], [0], [0], [1], [0, 0, 1, 1], [], []>} : vector<64x384xbf16>, vector<384x128xbf16>, vector<64x128xf32> -> vector<64x128xf32>
      %41 = arith.addf %31, %40 : vector<64x128xf32>
      %42 = vector.extract_strided_slice %6 {offsets = [1, 0, 0], sizes = [8, 10, 128], strides = [1, 1, 1]} : vector<10x10x128xbf16> to vector<8x10x128xbf16>
      %43 = vector.extract_strided_slice %42 {offsets = [0, 0, 0], sizes = [8, 8, 128], strides = [1, 1, 1]} : vector<8x10x128xbf16> to vector<8x8x128xbf16>
      %44 = vector.extract_strided_slice %42 {offsets = [0, 1, 0], sizes = [8, 8, 128], strides = [1, 1, 1]} : vector<8x10x128xbf16> to vector<8x8x128xbf16>
      %45 = vector.extract_strided_slice %42 {offsets = [0, 2, 0], sizes = [8, 8, 128], strides = [1, 1, 1]} : vector<8x10x128xbf16> to vector<8x8x128xbf16>
      %46 = tpu.concatenate %43, %44, %45 in 2 : vector<8x8x128xbf16>, vector<8x8x128xbf16>, vector<8x8x128xbf16> -> vector<8x8x384xbf16>
      %47 = vector.shape_cast %46 : vector<8x8x384xbf16> to vector<64x384xbf16>
      %c1 = arith.constant 1 : index
      %c0_24 = arith.constant 0 : index
      %c0_25 = arith.constant 0 : index
      %48 = vector.load %arg3[%c1, %c0_24, %c0_25] : memref<3x384x128xbf16, #tpu.memory_space<vmem>>, vector<1x384x128xbf16>
      %49 = vector.shape_cast %48 : vector<1x384x128xbf16> to vector<384x128xbf16>
      %cst_26 = arith.constant dense<0.000000e+00> : vector<64x128xf32>
      %50 = tpu.matmul %47, %49, %cst_26 {dimension_numbers = #tpu.dot_dimension_numbers<[1], [0], [0], [1], [0, 0, 1, 1], [], []>} : vector<64x384xbf16>, vector<384x128xbf16>, vector<64x128xf32> -> vector<64x128xf32>
      %51 = arith.addf %41, %50 : vector<64x128xf32>
      %52 = vector.extract_strided_slice %6 {offsets = [2, 0, 0], sizes = [8, 10, 128], strides = [1, 1, 1]} : vector<10x10x128xbf16> to vector<8x10x128xbf16>
      %53 = vector.extract_strided_slice %52 {offsets = [0, 0, 0], sizes = [8, 8, 128], strides = [1, 1, 1]} : vector<8x10x128xbf16> to vector<8x8x128xbf16>
      %54 = vector.extract_strided_slice %52 {offsets = [0, 1, 0], sizes = [8, 8, 128], strides = [1, 1, 1]} : vector<8x10x128xbf16> to vector<8x8x128xbf16>
      %55 = vector.extract_strided_slice %52 {offsets = [0, 2, 0], sizes = [8, 8, 128], strides = [1, 1, 1]} : vector<8x10x128xbf16> to vector<8x8x128xbf16>
      %56 = tpu.concatenate %53, %54, %55 in 2 : vector<8x8x128xbf16>, vector<8x8x128xbf16>, vector<8x8x128xbf16> -> vector<8x8x384xbf16>
      %57 = vector.shape_cast %56 : vector<8x8x384xbf16> to vector<64x384xbf16>
      %c2 = arith.constant 2 : index
      %c0_27 = arith.constant 0 : index
      %c0_28 = arith.constant 0 : index
      %58 = vector.load %arg3[%c2, %c0_27, %c0_28] : memref<3x384x128xbf16, #tpu.memory_space<vmem>>, vector<1x384x128xbf16>
      %59 = vector.shape_cast %58 : vector<1x384x128xbf16> to vector<384x128xbf16>
      %cst_29 = arith.constant dense<0.000000e+00> : vector<64x128xf32>
      %60 = tpu.matmul %57, %59, %cst_29 {dimension_numbers = #tpu.dot_dimension_numbers<[1], [0], [0], [1], [0, 0, 1, 1], [], []>} : vector<64x384xbf16>, vector<384x128xbf16>, vector<64x128xf32> -> vector<64x128xf32>
      %61 = arith.addf %51, %60 : vector<64x128xf32>
      %62 = vector.broadcast %27 : vector<1x128xf32> to vector<64x128xf32>
      %63 = arith.mulf %61, %62 : vector<64x128xf32>
      %64 = vector.broadcast %30 : vector<1x128xf32> to vector<64x128xf32>
      %65 = arith.addf %63, %64 : vector<64x128xf32>
      %cst_30 = arith.constant 0.000000e+00 : f32
      %66 = vector.broadcast %cst_30 : f32 to vector<64x128xf32>
      %67 = arith.maximumf %65, %66 : vector<64x128xf32>
      %68 = vector.shape_cast %67 : vector<64x128xf32> to vector<8x8x128xf32>
      %69 = arith.truncf %68 : vector<8x8x128xf32> to vector<8x8x128xbf16>
      %c0_31 = arith.constant 0 : index
      %c0_32 = arith.constant 0 : index
      %c0_33 = arith.constant 0 : index
      %c0_34 = arith.constant 0 : index
      %70 = vector.load %arg6[%c0_31, %c0_32, %c0_33, %c0_34] : memref<1x8x8x128xbf16, #tpu.memory_space<vmem>>, vector<1x8x8x128xbf16>
      %71 = vector.shape_cast %70 : vector<1x8x8x128xbf16> to vector<8x8x128xbf16>
      %72 = vector.shape_cast %69 : vector<8x8x128xbf16> to vector<1x8x8x128xbf16>
      tpu.vector_store %arg6[%c0_31, %c0_32, %c0_33, %c0_34], %72 {strides = array<i32>} : memref<1x8x8x128xbf16, #tpu.memory_space<vmem>>, vector<1x8x8x128xbf16>,
    } else {
    }
    return
  }
  func.func @transform_0(%arg0: i32, %arg1: i32) -> (i32, i32, i32, i32) {
    %c0_i32 = arith.constant 0 : i32
    %c0_i32_0 = arith.constant 0 : i32
    %c0_i32_1 = arith.constant 0 : i32
    %c0_i32_2 = arith.constant 0 : i32
    return %arg1, %c0_i32, %c0_i32_0, %c0_i32_1 : i32, i32, i32, i32
  }
  func.func @transform_1(%arg0: i32, %arg1: i32) -> (i32, i32, i32) {
    %c0_i32 = arith.constant 0 : i32
    %c0_i32_0 = arith.constant 0 : i32
    %c0_i32_1 = arith.constant 0 : i32
    %c0_i32_2 = arith.constant 0 : i32
    return %c0_i32, %c0_i32_0, %c0_i32_1 : i32, i32, i32
  }
  func.func @transform_2(%arg0: i32, %arg1: i32) -> (i32, i32) {
    %c0_i32 = arith.constant 0 : i32
    %c0_i32_0 = arith.constant 0 : i32
    %c0_i32_1 = arith.constant 0 : i32
    return %c0_i32, %c0_i32_0 : i32, i32
  }
  func.func @transform_3(%arg0: i32, %arg1: i32) -> (i32, i32) {
    %c0_i32 = arith.constant 0 : i32
    %c0_i32_0 = arith.constant 0 : i32
    %c0_i32_1 = arith.constant 0 : i32
    return %c0_i32, %c0_i32_0 : i32, i32
  }
  func.func @transform_4(%arg0: i32, %arg1: i32) -> (i32, i32, i32, i32) {
    %0 = arith.muli %arg0, %arg1 : i32
    %c0_i32 = arith.constant 0 : i32
    %c0_i32_0 = arith.constant 0 : i32
    %c0_i32_1 = arith.constant 0 : i32
    %c0_i32_2 = arith.constant 0 : i32
    return %0, %c0_i32, %c0_i32_0, %c0_i32_1 : i32, i32, i32, i32
  }
}

</mosaic_0001>

<bundles_post_ra>
// kernel: encoder_block_forward.2
= control target key start
LH: loop header
LB: loop body
LE: loop exit
PB: predicated region body
PF: predicated region fallthrough
CT: control target
= control target key end

     0   :  { %s2236_s15 = smov 0   ;;  %s2238_s16 = smov 0   ;;  %s3036_s0 = inlined_call_operand.vmem [shape: bf16[2,12,10,4], index: 0, kind: input, shape index: {}]   ;;  %s3037_s1 = inlined_call_operand.vmem [shape: bf16[128,128], index: 1, kind: input, shape index: {}]   ;;  %s3038_s2 = inlined_call_operand.vmem [shape: f32[1,128], index: 2, kind: input, shape index: {}]   ;;  %s3039_s3 = inlined_call_operand.vmem [shape: f32[1,128], index: 3, kind: input, shape index: {}]   ;;  %s3040_s4 = inlined_call_operand.vmem [shape: bf16[2,10,10,128], index: 4, kind: output, shape index: {}]  }
   0x1   :  { %s2240_s17 = smov 0   ;;  %s2242_s18 = smov 0  }
   0x2   :  { %s2244_s19 = smov 0  }
   0x3 LB: > { %s23_s20 = sadd.s32 1, %s2181_s17  ;;  %s26_s21 = sadd.s32 1, %s2185_s18  ;;  %s2189_s19 = sphi %s2244_s19, %s14_s19   ;;  %s2185_s18 = sphi %s2242_s18, %s3056_s18   ;;  %s2181_s17 = sphi %s2240_s17, %s3055_s17   ;;  %s2177_s16 = sphi %s2238_s16, %s3054_s16   ;;  %s2173_s15 = sphi %s2236_s15, %s3053_s15  }
   0x4   : > { %p24_p0 = scmp.ge.s32.totalorder %s23_s20, 2  ;;  %p1820_p1 = scmp.ge.s32.totalorder %s2189_s19, 1 }
   0x5   : > { %p176_p2 = scmp.lt.s32.totalorder %s2189_s19, 5 }
   0x6   : > { %s3058_s20 = smov (%p24_p0, %s23_s20), 0  ;;  %s3060_s21 = smov (!%p24_p0, %s26_s21), %s2185_s18 }
   0x7   : > { %p177_p3 = pnand %p1820_p1, %p176_p2  ;;  %p28_p4 = scmp.ge.s32.totalorder %s3060_s21, 2 }
   0x8   : > { %p203_p5 = scmp.lt.s32.totalorder (!%p177_p3), %s2173_s15, 1  ;;  %s208_s22 = smul.u32 (!%p177_p3), %s2173_s15, %s2177_s16 }
   0x9   : > { %s3062_s21 = smov (%p28_p4, %s3060_s21), 0  ;;  %180 = sbr.rel (%p177_p3) target bundleno = 897 (0x381), region = 36 }
   0xa   : > { %p216_p6 = scmp.eq.s32.totalorder (!%p177_p3), %s2177_s16, 0  ;;  %p217_p7 = scmp.eq.s32.totalorder (!%p177_p3), %s2173_s15, 0 }
   0xb   : > { %p209_p8 = scmp.lt.s32.totalorder (!%p177_p3), %s208_s22, 1 }
   0xc   : > { %p218_p9 = pnand (!%p177_p3), %p217_p7, %p216_p6 }
  0x10   : > { %s3064_s15 = smov (!%p203_p5, %s2173_s15), 1  ;;  %s3066_s22 = smov (!%p209_p8, %s208_s22), 1 }
  0x11   : > { %s2071_s23 = smul.u32 96, %s3064_s15  ;;  %v2191_v0 = vmov (!%p218_p9), 0.0  }
  0x12   : > { %s2072_s27 = smul.u32 80, %s3066_s22  ;;  %222 = vst [vmem:[#allocation2] sm:$0x1] (!%p218_p9), %v2191_v0  ;;  %223 = vst [vmem:[#allocation3] sm:$0x1] (!%p218_p9), %v2191_v0 }
  0x13   : > { %s2273_s26 = scalar_lea.vmem %s3036_s0, %s2071_s23  ;;  %221 = sbr.rel (%p218_p9) target bundleno = 26 (0x1a), region = 40 }
  0x14   : > { %s2278_s30 = scalar_lea.vmem %s3040_s4, %s2072_s27 }
  0x1a PF: > { %v2281_v1 = vld [vmem:[%s2273_s26] sm:$0xf]  ;;  %v2284_v2 = vld [vmem:[%s2273_s26 + $0x4] sm:$0x1]  ;;  %v2287_v3 = vld [vmem:[%s2273_s26 + $0x8] sm:$0xf] }
  0x1b   : > { %v2290_v4 = vld [vmem:[%s2273_s26 + $0xc] sm:$0x1]  ;;  %v2293_v5 = vld [vmem:[%s2273_s26 + $0x10] sm:$0xf]  ;;  %v2296_v6 = vld [vmem:[%s2273_s26 + $0x14] sm:$0x1] }
  0x1c   : > { %v2299_v7 = vld [vmem:[%s2273_s26 + $0x18] sm:$0xf]  ;;  %v2302_v8 = vld [vmem:[%s2273_s26 + $0x1c] sm:$0x1]  ;;  %v2305_v9 = vld [vmem:[%s2273_s26 + $0x20] sm:$0xf] }
  0x1d   : > { %v2308_v10 = vld [vmem:[%s2273_s26 + $0x24] sm:$0x1]  ;;  %v2311_v11 = vld [vmem:[%s2273_s26 + $0x28] sm:$0xf]  ;;  %v2314_v12 = vld [vmem:[%s2273_s26 + $0x2c] sm:$0x1] }
  0x1e   : > { %v2317_v13 = vld [vmem:[%s2273_s26 + $0x30] sm:$0xf]  ;;  %v2320_v14 = vld [vmem:[%s2273_s26 + $0x34] sm:$0x1]  ;;  %v2323_v15 = vld [vmem:[%s2273_s26 + $0x38] sm:$0xf] }
  0x1f   : > { %v2326_v16 = vld [vmem:[%s2273_s26 + $0x3c] sm:$0x1]  ;;  %v2329_v17 = vld [vmem:[%s2273_s26 + $0x40] sm:$0xf]  ;;  %v2332_v18 = vld [vmem:[%s2273_s26 + $0x44] sm:$0x1] }
  0x20   : > { %v2335_v19 = vld [vmem:[%s2273_s26 + $0x48] sm:$0xf]  ;;  %v2338_v20 = vld [vmem:[%s2273_s26 + $0x4c] sm:$0x1]  ;;  %v2341_v21 = vld [vmem:[%s2273_s26 + $0x50] sm:$0xf] }
  0x21   : > { %v2344_v22 = vld [vmem:[%s2273_s26 + $0x54] sm:$0x1]  ;;  %v2347_v23 = vld [vmem:[%s2273_s26 + $0x58] sm:$0xf]  ;;  %v2350_v24 = vld [vmem:[%s2273_s26 + $0x5c] sm:$0x1] }
  0x22   : > { %p1823_p10 = scmp.ne.s32.totalorder %s2177_s16, 0 }
  0x23   : > { %vm382_vm0 = vcmask (!%p1823_p10), 1042432   ;;  %vm383_vm1 = vcmask (!%p1823_p10), 1046532   ;;  %v1824_v25 = vrot.slane (!%p1823_p10), %v2287_v3, 9  ;;  %v387_v26 = vrot.slane (!%p1823_p10), %v2290_v4, 5  ;;  %s2192_s5 = smov (!%p1823_p10), 12   ;;  %v2133_v41 = vld [vmem:[%s3037_s1] sm:$0xff] (!%p1823_p10)  }
  0x24   : > { %250 = sbr.rel (%p1823_p10) target bundleno = 462 (0x1ce), region = 44  ;;  %vm2355_vm2 = vmor (!%p1823_p10), %vm382_vm0, %vm383_vm1  ;;  %v1825_v28 = vrot.slane (!%p1823_p10), %v2293_v5, 9  ;;  %v391_v29 = vrot.slane (!%p1823_p10), %v2296_v6, 5  ;;  %v1826_v30 = vrot.slane (!%p1823_p10), %v2299_v7, 9  ;;  %v395_v31 = vrot.slane (!%p1823_p10), %v2302_v8, 5  ;;  %v2134_v46 = vld [vmem:[%s3037_s1 + $0x8] sm:$0xff] (!%p1823_p10)   ;;  %1979 = vmatprep.subr.bf16.mxu0 (!%p1823_p10), %v2133_v41  ;;  %2039 = vmatprep.subr.bf16.mxu1 (!%p1823_p10), %v2133_v41 }
  0x25   : > { %v388_v32 = vsel (!%p1823_p10), %vm2355_vm2, %v1824_v25, %v387_v26  ;;  %v1846_v33 = vcombine.low (!%p1823_p10), %v2293_v5, %v2299_v7  ;;  %v1827_v34 = vrot.slane (!%p1823_p10), %v2305_v9, 9  ;;  %v399_v35 = vrot.slane (!%p1823_p10), %v2308_v10, 5  ;;  %s2193_s10 = smov (!%p1823_p10), 8   ;;  %1980 = vmatpush3.bf16.msra.mxu0 (!%p1823_p10), %v2133_v41  ;;  %2047 = vmatpush3.bf16.msra.mxu1 (!%p1823_p10), %v2133_v41  ;;  %v2135_v63 = vld [vmem:[%s3037_s1 + $0x10] sm:$0xff] (!%p1823_p10)   ;;  %v2136_v41 = vld [vmem:[%s3037_s1 + $0x18] sm:$0xff] (!%p1823_p10)   ;;  %s2194_s23 = smov (!%p1823_p10), 4  }
  0x26   : > { %v2371_v36 = vsel (!%p1823_p10), %vm2355_vm2, %v1825_v28, %v391_v29  ;;  %v2375_v37 = vsel (!%p1823_p10), %vm2355_vm2, %v1826_v30, %v395_v31  ;;  %vm251_vm3 = vsmask.f32 (!%p1823_p10), 3328  ;;  %vm252_vm4 = vsmask.f32 (!%p1823_p10), 7440  ;;  %1981 = vmatprep.subr.bf16.mxu0 (!%p1823_p10), %v2134_v46  ;;  %2040 = vmatprep.subr.bf16.mxu1 (!%p1823_p10), %v2134_v46  ;;  %s2195_s26 = smov (!%p1823_p10), 16   ;;  %s2196_s29 = smov (!%p1823_p10), 20  }
  0x27   : > { %v1842_v38 = vcombine.low (!%p1823_p10), %v388_v32, %v2371_v36  ;;  %514 = vrot.lane.b32.xlu0 (!%p1823_p10), %v1846_v33, %s2192_s5  ;;  %v2381_v39 = vsel (!%p1823_p10), %vm2355_vm2, %v1827_v34, %v399_v35  ;;  %v255_v40 = vshrl.u32 (!%p1823_p10), %v2287_v3, 16  ;;  %v258_v43 = vshll.u32 (!%p1823_p10), %v2287_v3, 16  ;;  %vm2414_vm5 = vmor (!%p1823_p10), %vm251_vm3, %vm252_vm4  ;;  %s2197_s8 = smov (!%p1823_p10), 24   ;;  %s2198_s9 = smov (!%p1823_p10), 28  }
  0x28   : > { %v2389_v42 = vcombine.low (!%p1823_p10), %v2375_v37, %v2381_v39  ;;  %v264_v44 = vshll.u32 (!%p1823_p10), %v2290_v4, 16  ;;  %v269_v45 = vshrl.u32 (!%p1823_p10), %v2293_v5, 16  ;;  %v272_v48 = vshll.u32 (!%p1823_p10), %v2293_v5, 16  ;;  %s2199_s11 = smov (!%p1823_p10), 32  }
  0x29   : > { %501 = vrot.lane.b32.xlu1 (!%p1823_p10), %v1842_v38, %s2193_s10  ;;  %v257_v47 = vrot.slane (!%p1823_p10), %v255_v40, 4  ;;  %v278_v49 = vshll.u32 (!%p1823_p10), %v2296_v6, 16  ;;  %v1847_v50 = vcombine.low (!%p1823_p10), %v2305_v9, %v2311_v11  ;;  %v260_v51 = vrot.slane (!%p1823_p10), %v258_v43, 5  ;;  %1982 = vmatpush3.bf16.msra.mxu0 (!%p1823_p10), %v2134_v46 }
  0x2a   : > { %v266_v52 = vrot.slane (!%p1823_p10), %v264_v44, 5  ;;  %v271_v53 = vrot.slane (!%p1823_p10), %v269_v45, 4  ;;  %v283_v54 = vshrl.u32 (!%p1823_p10), %v2299_v7, 16  ;;  %v274_v55 = vrot.slane (!%p1823_p10), %v272_v48, 5  ;;  %1983 = vmatprep.subr.bf16.mxu0 (!%p1823_p10), %v2135_v63  ;;  %2048 = vmatpush3.bf16.msra.mxu1 (!%p1823_p10), %v2134_v46 }
  0x2b   : > { %v280_v56 = vrot.slane %v278_v49, 5  ;;  %v286_v57 = vshll.u32 %v2299_v7, 16  ;;  %v292_v58 = vshll.u32 %v2302_v8, 16  ;;  %v261_v59 = vor.u32 %v260_v51, %v257_v47  ;;  %2041 = vmatprep.subr.bf16.mxu1 %v2135_v63 }
  0x2c   : > { %v285_v60 = vrot.slane %v283_v54, 4  ;;  %v297_v61 = vshrl.u32 %v2305_v9, 16  ;;  %v300_v62 = vshll.u32 %v2305_v9, 16  ;;  %v275_v25 = vor.u32 %v274_v55, %v271_v53 }
  0x2d   : > { %503 = vrot.lane.b32.xlu1 %v2389_v42, %s2193_s10  ;;  %v288_v26 = vrot.slane %v286_v57, 5  ;;  %v294_v28 = vrot.slane %v292_v58, 5  ;;  %v306_v29 = vshll.u32 %v2308_v10, 16  ;;  %v262_v30 = vrot.slane %v261_v59, 4  ;;  %1984 = vmatpush3.bf16.msra.mxu0 %v2135_v63 }
  0x2e   : > { %v299_v31 = vrot.slane %v297_v61, 4  ;;  %v302_v32 = vrot.slane %v300_v62, 5  ;;  %v311_v33 = vshrl.u32 %v2311_v11, 16  ;;  %v276_v34 = vrot.slane %v275_v25, 4  ;;  %1985 = vmatprep.subr.bf16.mxu0 %v2136_v41  ;;  %2049 = vmatpush3.bf16.msra.mxu1 %v2135_v63 }
  0x2f   : > { %v289_v35 = vor.u32 %v288_v26, %v285_v60  ;;  %v308_v38 = vrot.slane %v306_v29, 5  ;;  %v314_v40 = vshll.u32 %v2311_v11, 16  ;;  %v267_v43 = vsel %vm2414_vm5, %v262_v30, %v266_v52  ;;  %v2137_v52 = vld [vmem:[%s3037_s1 + $0x20] sm:$0xff]   ;;  %2042 = vmatprep.subr.bf16.mxu1 %v2136_v41 }
  0x30   : > { %v303_v44 = vor.u32 %v302_v32, %v299_v31  ;;  %v313_v45 = vrot.slane %v311_v33, 4  ;;  %v320_v47 = vshll.u32 %v2314_v12, 16  ;;  %v281_v48 = vsel %vm2414_vm5, %v276_v34, %v280_v56  ;;  %v2138_v33 = vld [vmem:[%s3037_s1 + $0x28] sm:$0xff]  }
  0x31   : > { %516 = vrot.lane.b32.xlu1 %v1847_v50, %s2192_s5  ;;  %v290_v49 = vrot.slane %v289_v35, 4  ;;  %v316_v51 = vrot.slane %v314_v40, 5  ;;  %v1828_v53 = vrot.slane %v2311_v11, 9  ;;  %v1838_v54 = vcombine.low %v267_v43, %v281_v48  ;;  %1986 = vmatpush3.bf16.msra.mxu0 %v2136_v41 }
  0x32   : > { %v304_v55 = vrot.slane %v303_v44, 4  ;;  %v322_v46 = vrot.slane %v320_v47, 5  ;;  %v403_v57 = vrot.slane %v2314_v12, 5  ;;  %v325_v59 = vshrl.u32 %v2317_v13, 16  ;;  %1987 = vmatprep.subr.bf16.mxu0 %v2137_v52  ;;  %2050 = vmatpush3.bf16.msra.mxu1 %v2136_v41  ;;  %v2139_v41 = vld [vmem:[%s3037_s1 + $0x30] sm:$0xff]  }
  0x33   : > { %v295_v58 = vsel %vm2414_vm5, %v290_v49, %v294_v28  ;;  %v317_v56 = vor.u32 %v316_v51, %v313_v45  ;;  %481 = vrot.lane.b32.xlu0 %v1838_v54, %s2194_s23  ;;  %v328_v62 = vshll.u32 %v2317_v13, 16  ;;  %v339_v28 = vshrl.u32 %v2323_v15, 16  ;;  %2043 = vmatprep.subr.bf16.mxu1 %v2137_v52 }
  0x34   : > { %v309_v50 = vsel %vm2414_vm5, %v304_v55, %v308_v38  ;;  %v2446_v25 = vsel %vm2355_vm2, %v1828_v53, %v403_v57  ;;  %v327_v26 = vrot.slane %v325_v59, 4  ;;  %v342_v29 = vshll.u32 %v2323_v15, 16  ;;  %v2140_v57 = vld [vmem:[%s3037_s1 + $0x38] sm:$0xff]  }
  0x35   : > { %v2441_v60 = vcombine.low %v295_v58, %v309_v50  ;;  %v318_v61 = vrot.slane %v317_v56, 4  ;;  %v330_v63 = vrot.slane %v328_v62, 5  ;;  %v334_v31 = vshll.u32 %v2320_v14, 16  ;;  %1988 = vmatpush3.bf16.msra.mxu0 %v2137_v52 }
  0x36   : > { %v353_v32 = vshrl.u32 %v2329_v17, 16  ;;  %v1850_v35 = vcombine.low %v281_v48, %v295_v58  ;;  %v356_v40 = vshll.u32 %v2329_v17, 16  ;;  %v1855_v43 = vcombine.low %v2381_v39, %v2446_v25  ;;  %1989 = vmatprep.subr.bf16.mxu0 %v2138_v33  ;;  %2051 = vmatpush3.bf16.msra.mxu1 %v2137_v52 }
  0x37   : > { %v323_v30 = vsel %vm2414_vm5, %v318_v61, %v322_v46  ;;  %483 = vrot.lane.b32.xlu0 %v2441_v60, %s2194_s23  ;;  %v331_v38 = vor.u32 %v330_v63, %v327_v26  ;;  %v341_v44 = vrot.slane %v339_v28, 4  ;;  %v344_v45 = vrot.slane %v342_v29, 5  ;;  %2044 = vmatprep.subr.bf16.mxu1 %v2138_v33 }
  0x38   : > { %v1851_v34 = vcombine.low %v309_v50, %v323_v30  ;;  %v336_v49 = vrot.slane %v334_v31, 5  ;;  %v355_v51 = vrot.slane %v353_v32, 4  ;;  %v358_v53 = vrot.slane %v356_v40, 5 }
  0x39   : > { %v332_v47 = vrot.slane %v331_v38, 4  ;;  %v1854_v48 = vcombine.low %v2371_v36, %v2375_v37  ;;  %v2472_v39 = vcombine.low %v2311_v11, %v2317_v13  ;;  %v345_v54 = vor.u32 %v344_v45, %v341_v44  ;;  %1990 = vmatpush3.bf16.msra.mxu0 %v2138_v33 }
  0x3a   : > { %529 = vrot.lane.b32.xlu1 %v1851_v34, %s2195_s26  ;;  %v348_v55 = vshll.u32 %v2326_v16, 16  ;;  %v359_v36 = vor.u32 %v358_v53, %v355_v51  ;;  %v362_v37 = vshll.u32 %v2332_v18, 16  ;;  %1991 = vmatprep.subr.bf16.mxu0 %v2139_v41  ;;  %v2486_v52 = vcombine.low %v2299_v7, %v2305_v9 }
  0x3b   : > { %527 = vrot.lane.b32.xlu0 %v1850_v35, %s2195_s26  ;;  %v2477_v46 = vsel %vm2414_vm5, %v332_v47, %v336_v49  ;;  %2052 = vmatpush3.bf16.msra.mxu1 %v2138_v33  ;;  %v346_v56 = vrot.slane %v345_v54, 4  ;;  %v418_v62 = vshrl.u32 %v2335_v19, 16  ;;  %v421_v26 = vshll.u32 %v2335_v19, 16 }
  0x3c   : > { %2045 = vmatprep.subr.bf16.mxu1 %v2139_v41  ;;  %v1840_v58 = vcombine.low %v323_v30, %v2477_v46  ;;  %v350_v50 = vrot.slane %v348_v55, 5  ;;  %v360_v59 = vrot.slane %v359_v36, 4  ;;  %v364_v61 = vrot.slane %v362_v37, 5 }
  0x3d   : > { %1992 = vmatpush3.bf16.msra.mxu0 %v2139_v41  ;;  %v1829_v28 = vrot.slane %v2317_v13, 9  ;;  %v407_v29 = vrot.slane %v2320_v14, 5  ;;  %v1830_v63 = vrot.slane %v2323_v15, 9  ;;  %v411_v31 = vrot.slane %v2326_v16, 5 }
  0x3e   : > { %542 = vrot.lane.b32.xlu1 %v1855_v43, %s2196_s29  ;;  %1993 = vmatprep.subr.bf16.mxu0 %v2140_v57  ;;  %v351_v30 = vsel %vm2414_vm5, %v346_v56, %v350_v50  ;;  %v1831_v32 = vrot.slane %v2329_v17, 9  ;;  %v365_v33 = vsel %vm2414_vm5, %v360_v59, %v364_v61  ;;  %v415_v34 = vrot.slane %v2332_v18, 5 }
  0x3f   : > { %540 = vrot.lane.b32.xlu0 %v1854_v48, %s2196_s29  ;;  %2053 = vmatpush3.bf16.msra.mxu1 %v2139_v41  ;;  %v420_v35 = vrot.slane %v418_v62, 4  ;;  %v423_v38 = vrot.slane %v421_v26, 5  ;;  %v408_v40 = vsel %vm2355_vm2, %v1829_v28, %v407_v29  ;;  %v1841_v43 = vcombine.low %v351_v30, %v365_v33 }
  0x40   : > { %2046 = vmatprep.subr.bf16.mxu1 %v2140_v57  ;;  %v412_v44 = vsel %vm2355_vm2, %v1830_v63, %v411_v31  ;;  %v416_v45 = vsel %vm2355_vm2, %v1831_v32, %v415_v34  ;;  %v427_v49 = vshll.u32 %v2338_v20, 16  ;;  %v438_v48 = vshrl.u32 %v2341_v21, 16 }
  0x41   : > { %1994 = vmatpush3.bf16.msra.mxu0 %v2140_v57  ;;  %v424_v47 = vor.u32 %v423_v38, %v420_v35  ;;  %v1845_v51 = vcombine.low %v412_v44, %v416_v45  ;;  %v441_v54 = vshll.u32 %v2341_v21, 16  ;;  %v1849_v55 = vcombine.low %v2329_v17, %v2335_v19 }
  0x42   : > { %552 = vrot.lane.b32.xlu1 %v2472_v39, %s2197_s8  ;;  %v429_v41 = vrot.slane %v427_v49, 5  ;;  %v435_v36 = vrot.slane %v2338_v20, 5  ;;  %v440_v37 = vrot.slane %v438_v48, 4  ;;  %v447_v61 = vshll.u32 %v2344_v22, 16 }
  0x43   : > { %550 = vrot.lane.b32.xlu0 %v2486_v52, %s2197_s8  ;;  %2054 = vmatpush3.bf16.msra.mxu1 %v2140_v57  ;;  %v425_v53 = vrot.slane %v424_v47, 4  ;;  %v443_v57 = vrot.slane %v441_v54, 5  ;;  %v1852_v62 = vcombine.low %v2477_v46, %v351_v30  ;;  %v1856_v63 = vcombine.low %v408_v40, %v412_v44 }
  0x44   : > { %v449_v29 = vrot.slane %v447_v61, 5  ;;  %v1858_v31 = vcombine.low %v2335_v19, %v2341_v21  ;;  %v455_v46 = vrot.slane %v2344_v22, 5  ;;  %v2551_v30 = vcombine.low %v2323_v15, %v2329_v17 }
  0x45   : > { %v444_v59 = vor.u32 %v443_v57, %v440_v37  ;;  %vm578_vm6 = vcmask 31744   ;;  %vm591_vm7 = vcmask 64512   ;;  %vm600_vm8 = vcmask 97280  }
  0x46   : > { %562 = vrot.lane.b32.xlu1 %v1840_v58, %s2198_s9  ;;  %vm609_vm9 = vcmask 130048   ;;  %vm618_vm10 = vcmask 162816   ;;  %vm627_vm11 = vcmask 195584   ;;  %vm645_vm12 = vcmask 261120  }
  0x47   : > { %560 = vrot.lane.b32.xlu0 %v2441_v60, %s2198_s9  ;;  %v1844_v60 = vcombine.low %v2446_v25, %v408_v40  ;;  %v430_v25 = vsel %vm2414_vm5, %v425_v53, %v429_v41  ;;  %v445_v28 = vrot.slane %v444_v59, 4  ;;  %v1834_v53 = vcombine.low %v2287_v3, %v2293_v5 }
  0x48   : > { %v1853_v56 = vcombine.low %v365_v33, %v430_v25  ;;  %v1833_v33 = vrot.slane %v2341_v21, 9  ;;  %vm636_vm13 = vcmask 228352   ;;  %vm654_vm14 = vcmask 293888  }
  0x49   : > { %v450_v32 = vsel %vm2414_vm5, %v445_v28, %v449_v29 }
  0x4a   : > { %485 = vrot.lane.b32.xlu1 %v1840_v58, %s2194_s23  ;;  %v1848_v58 = vcombine.low %v2317_v13, %v2323_v15  ;;  %v1859_v34 = vcombine.low %v430_v25, %v450_v32  ;;  %v456_v35 = vsel %vm2355_vm2, %v1833_v33, %v455_v46 }
  0x4b   : > { %570 = vrot.lane.b32.xlu0 %v2389_v42, %s2199_s11  ;;  %v1832_v42 = vrot.slane %v2335_v19, 9 }
  0x4d   : > { %v436_v50 = vsel %vm2355_vm2, %v1832_v42, %v435_v36 }
  0x4e   : > { %487 = vrot.lane.b32.xlu1 %v1841_v43, %s2194_s23  ;;  %v1857_v26 = vcombine.low %v416_v45, %v436_v50  ;;  %v1860_v0 = vcombine.low %v436_v50, %v456_v35 }
  0x4f   : > { %572 = vrot.lane.b32.xlu0 %v1844_v60, %s2199_s11 }
  0x52   : > { %507 = vrot.lane.b32.xlu1 %v1845_v51, %s2193_s10 }
  0x53   : > { %505 = vrot.lane.b32.xlu0 %v1844_v60, %s2193_s10 }
  0x56   : > { %520 = vrot.lane.b32.xlu1 %v1849_v55, %s2192_s5 }
  0x57   : > { %518 = vrot.lane.b32.xlu0 %v1848_v58, %s2192_s5 }
  0x5a   : > { %533 = vrot.lane.b32.xlu1 %v1853_v56, %s2195_s26 }
  0x5b   : > { %531 = vrot.lane.b32.xlu0 %v1852_v62, %s2195_s26 }
  0x5e   : > { %546 = vrot.lane.b32.xlu1 %v1857_v26, %s2196_s29 }
  0x5f   : > { %544 = vrot.lane.b32.xlu0 %v1856_v63, %s2196_s29 }
  0x62   : > { %556 = vrot.lane.b32.xlu1 %v1858_v31, %s2197_s8 }
  0x63   : > { %554 = vrot.lane.b32.xlu0 %v2551_v30, %s2197_s8 }
  0x66   : > { %566 = vrot.lane.b32.xlu1 %v1859_v34, %s2198_s9 }
  0x67   : > { %564 = vrot.lane.b32.xlu0 %v1841_v43, %s2198_s9 }
  0x6a   : > { %576 = vrot.lane.b32.xlu1 %v1860_v0, %s2199_s11 }
  0x6b   : > { %574 = vrot.lane.b32.xlu0 %v1845_v51, %s2199_s11 }
  0x99   : > { %v515_v40 = vpop.permute.xlu0 %514 }
  0x9b   : > { %v502_v38 = vpop.permute.xlu1 %501 }
  0x9f   : > { %v504_v44 = vpop.permute.xlu1 %503 }
  0xa3   : > { %v517_v47 = vpop.permute.xlu1 %516 }
  0xa5   : > { %v482_v45 = vpop.permute.xlu0 %481 }
  0xa6   : > { %v581_v43 = vsel %vm578_vm6, %v1834_v53, %v482_v45 }
  0xa7   : > { %v593_v42 = vsel %vm591_vm7, %v581_v43, %v502_v38 }
  0xa8   : > { %v602_v37 = vsel %vm600_vm8, %v593_v42, %v515_v40 }
  0xa9   : > { %v484_v49 = vpop.permute.xlu0 %483 }
  0xaa   : > { %v584_v51 = vsel %vm578_vm6, %v2486_v52, %v484_v49 }
  0xab   : > { %v595_v36 = vsel %vm591_vm7, %v584_v51, %v504_v44 }
  0xac   : > { %v530_v27 = vpop.permute.xlu1 %529  ;;  %v604_v56 = vsel %vm600_vm8, %v595_v36, %v517_v47 }
  0xad   : > { %v528_v60 = vpop.permute.xlu0 %527  ;;  %v613_v26 = vsel %vm609_vm9, %v604_v56, %v530_v27 }
  0xae   : > { %v611_v58 = vsel %vm609_vm9, %v602_v37, %v528_v60 }
  0xb0   : > { %v543_v41 = vpop.permute.xlu1 %542 }
  0xb1   : > { %v541_v48 = vpop.permute.xlu0 %540  ;;  %v622_v29 = vsel %vm618_vm10, %v613_v26, %v543_v41 }
  0xb2   : > { %v620_v50 = vsel %vm618_vm10, %v611_v58, %v541_v48 }
  0xb4   : > { %v553_v54 = vpop.permute.xlu1 %552 }
  0xb5   : > { %v551_v55 = vpop.permute.xlu0 %550  ;;  %v631_v31 = vsel %vm627_vm11, %v622_v29, %v553_v54 }
  0xb6   : > { %v629_v59 = vsel %vm627_vm11, %v620_v50, %v551_v55 }
  0xb8   : > { %v563_v25 = vpop.permute.xlu1 %562 }
  0xb9   : > { %v561_v57 = vpop.permute.xlu0 %560  ;;  %v640_v32 = vsel %vm636_vm13, %v631_v31, %v563_v25 }
  0xba   : > { %v638_v61 = vsel %vm636_vm13, %v629_v59, %v561_v57 }
  0xbc   : > { %v486_v52 = vpop.permute.xlu1 %485 }
  0xbd   : > { %v571_v62 = vpop.permute.xlu0 %570  ;;  %v587_v53 = vsel %vm578_vm6, %v2472_v39, %v486_v52 }
  0xbe   : > { %v647_v28 = vsel %vm645_vm12, %v638_v61, %v571_v62 }
  0xbf   : > { %1995 = vmatprep.mubr.msk.bf16.mxu0 %vm654_vm14, %v647_v28 }
  0xc0   : > { %v488_v63 = vpop.permute.xlu1 %487 }
  0xc1   : > { %v573_v33 = vpop.permute.xlu0 %572  ;;  %v590_v60 = vsel %vm578_vm6, %v2551_v30, %v488_v63 }
  0xc2   : > { %v649_v46 = vsel %vm645_vm12, %v640_v32, %v573_v33 }
  0xc3   : > { %1996 = vmatmul.mubr.msk.bf16.vlgmr.msra.gmra.mrb[0].mxu0 %vm654_vm14, %v649_v46 }
  0xc4   : > { %v508_v34 = vpop.permute.xlu1 %507 }
  0xc5   : > { %v506_v35 = vpop.permute.xlu0 %505  ;;  %v599_v43 = vsel %vm591_vm7, %v590_v60, %v508_v34 }
  0xc6   : > { %v597_v48 = vsel %vm591_vm7, %v587_v53, %v506_v35 }
  0xc8   : > { %v521_v0 = vpop.permute.xlu1 %520 }
  0xc9   : > { %v519_v38 = vpop.permute.xlu0 %518  ;;  %v608_v55 = vsel %vm600_vm8, %v599_v43, %v521_v0 }
  0xca   : > { %v606_v54 = vsel %vm600_vm8, %v597_v48, %v519_v38 }
  0xcc   : > { %v534_v40 = vpop.permute.xlu1 %533 }
  0xcd   : > { %v532_v44 = vpop.permute.xlu0 %531  ;;  %v617_v25 = vsel %vm609_vm9, %v608_v55, %v534_v40 }
  0xce   : > { %v615_v42 = vsel %vm609_vm9, %v606_v54, %v532_v44 }
  0xd0   : > { %v547_v45 = vpop.permute.xlu1 %546 }
  0xd1   : > { %v545_v47 = vpop.permute.xlu0 %544  ;;  %v626_v30 = vsel %vm618_vm10, %v617_v25, %v547_v45 }
  0xd2   : > { %v624_v36 = vsel %vm618_vm10, %v615_v42, %v545_v47 }
  0xd4   : > { %v557_v49 = vpop.permute.xlu1 %556 }
  0xd5   : > { %v555_v27 = vpop.permute.xlu0 %554  ;;  %v635_v57 = vsel %vm627_vm11, %v626_v30, %v557_v49 }
  0xd6   : > { %v633_v39 = vsel %vm627_vm11, %v624_v36, %v555_v27 }
  0xd8   : > { %v567_v41 = vpop.permute.xlu1 %566 }
  0xd9   : > { %v565_v51 = vpop.permute.xlu0 %564  ;;  %v644_v50 = vsel %vm636_vm13, %v635_v57, %v567_v41 }
  0xda   : > { %v642_v58 = vsel %vm636_vm13, %v633_v39, %v565_v51 }
  0xdc   : > { %v577_v37 = vpop.permute.xlu1 %576 }
  0xdd   : > { %v575_v56 = vpop.permute.xlu0 %574  ;;  %v653_v59 = vsel %vm645_vm12, %v644_v50, %v577_v37 }
  0xde   : > { %v651_v52 = vsel %vm645_vm12, %v642_v58, %v575_v56 }
  0xdf   : > { %1999 = vmatprep.mubr.msk.bf16.mxu1 %vm654_vm14, %v651_v52 }
  0xe0   : > { %2000 = vmatmul.mubr.msk.bf16.vlgmr.msra.gmra.mrb[0].mxu1 %vm654_vm14, %v653_v59  ;;  %v793_v59 = vld [vmem:[#allocation2] sm:$0x1] }
 0x196   : > { %v1997_v61 = vpop.f32.mrb[0].mxu0 }
 0x197   : > { %v762_v62 = vpop.f32.mrb[1].mxu0  ;;  %v812_v32 = vmul.f32 %v1997_v61, %v1997_v61 }
 0x198   : > { %v1998_v26 = vpop.f32.mrb[2].mxu0  ;;  %v810_v29 = vmul.f32 %v762_v62, %v762_v62 }
 0x199   : > { %v765_v28 = vpop.f32.mrb[3].mxu0  ;;  %v813_v34 = vmul.f32 %v1998_v26, %v1998_v26 }
 0x19a   : > { %v794_v63 = vadd.f32 %v765_v28, %v762_v62  ;;  %v811_v31 = vmul.f32 %v765_v28, %v765_v28 }
 0x19c   : > { %v795_v33 = vadd.f32 %v1997_v61, %v794_v63  ;;  %v818_v46 = vadd.f32 %v811_v31, %v810_v29 }
 0x19e   : > { %v819_v35 = vadd.f32 %v818_v46, %v812_v32  ;;  %v796_v0 = vadd.f32 %v1998_v26, %v795_v33  ;;  %v809_v26 = vld [vmem:[#allocation3] sm:$0x1] }
 0x1a0   : > { %v820_v38 = vadd.f32 %v819_v35, %v813_v34 }
 0x1b3   : > { %v2001_v40 = vpop.f32.mrb[0].mxu1 }
 0x1b4   : > { %v778_v44 = vpop.f32.mrb[1].mxu1  ;;  %v816_v48 = vmul.f32 %v2001_v40, %v2001_v40 }
 0x1b5   : > { %v797_v45 = vadd.f32 %v796_v0, %v778_v44  ;;  %v814_v47 = vmul.f32 %v778_v44, %v778_v44  ;;  %v2002_v49 = vpop.f32.mrb[2].mxu1 }
 0x1b6   : > { %v781_v27 = vpop.f32.mrb[3].mxu1  ;;  %v817_v51 = vmul.f32 %v2002_v49, %v2002_v49 }
 0x1b7   : > { %v821_v60 = vadd.f32 %v820_v38, %v814_v47  ;;  %v798_v53 = vadd.f32 %v797_v45, %v781_v27  ;;  %v815_v41 = vmul.f32 %v781_v27, %v781_v27 }
 0x1b9   : > { %v799_v43 = vadd.f32 %v2001_v40, %v798_v53  ;;  %v822_v54 = vadd.f32 %v821_v60, %v815_v41 }
 0x1bb   : > { %v800_v55 = vadd.f32 %v2002_v49, %v799_v43  ;;  %v823_v42 = vadd.f32 %v822_v54, %v816_v48 }
 0x1bd   : > { %v801_v25 = vrot.slane %v800_v55, 4  ;;  %v824_v36 = vadd.f32 %v823_v42, %v817_v51 }
 0x1bf   : > { %v802_v30 = vadd.f32 %v801_v25, %v800_v55  ;;  %v825_v39 = vrot.slane %v824_v36, 4 }
 0x1c1   : > { %v803_v37 = vrot.slane %v802_v30, 2  ;;  %v826_v57 = vadd.f32 %v825_v39, %v824_v36 }
 0x1c3   : > { %v804_v58 = vadd.f32 %v803_v37, %v802_v30  ;;  %v827_v56 = vrot.slane %v826_v57, 2 }
 0x1c5   : > { %v805_v50 = vrot.slane %v804_v58, 1  ;;  %v828_v52 = vadd.f32 %v827_v56, %v826_v57 }
 0x1c7   : > { %v806_v61 = vadd.f32 %v805_v50, %v804_v58  ;;  %v829_v62 = vrot.slane %v828_v52, 1 }
 0x1c9   : > { %v807_v28 = vadd.f32 %v806_v61, %v793_v59  ;;  %v830_v29 = vadd.f32 %v829_v62, %v828_v52 }
 0x1cb   : > { %808 = vst [vmem:[#allocation2] sm:$0x1] %v807_v28  ;;  %v831_v63 = vadd.f32 %v830_v29, %v809_v26 }
 0x1cd   : > { %832 = vst [vmem:[#allocation3] sm:$0x1] %v831_v63 }
 0x1ce PF: > { %p1873_p11 = scmp.ne.s32.totalorder %s2177_s16, 1 }
 0x1cf   : > { %v1901_v31 = vcombine.low (!%p1873_p11), %v2287_v3, %v2293_v5  ;;  %vm1014_vm15 = vcmask (!%p1873_p11), 1042432   ;;  %vm1015_vm0 = vcmask (!%p1873_p11), 1046532   ;;  %v1874_v32 = vrot.slane (!%p1873_p11), %v2281_v1, 9  ;;  %s2200_s16 = smov (!%p1873_p11), 12   ;;  %s2201_s5 = smov (!%p1873_p11), 8  }
 0x1d0   : > { %836 = sbr.rel (%p1873_p11) target bundleno = 897 (0x381), region = 48  ;;  %vm2607_vm1 = vmor (!%p1873_p11), %vm1014_vm15, %vm1015_vm0  ;;  %v1019_v46 = vrot.slane (!%p1873_p11), %v2284_v2, 5  ;;  %v1875_v34 = vrot.slane (!%p1873_p11), %v2287_v3, 9  ;;  %v1023_v35 = vrot.slane (!%p1873_p11), %v2290_v4, 5  ;;  %v1876_v0 = vrot.slane (!%p1873_p11), %v2293_v5, 9  ;;  %s2202_s10 = smov (!%p1873_p11), 24  }
 0x1d1   : > { %1168 = vrot.lane.b32.xlu1 (!%p1873_p11), %v1901_v31, %s2200_s16  ;;  %v1027_v38 = vrot.slane (!%p1873_p11), %v2296_v6, 5  ;;  %v2619_v40 = vcombine.low (!%p1873_p11), %v2293_v5, %v2299_v7  ;;  %vm851_vm2 = vsmask.f32 (!%p1873_p11), 3328  ;;  %vm852_vm3 = vsmask.f32 (!%p1873_p11), 7440  ;;  %s2203_s12 = smov (!%p1873_p11), 20  }
 0x1d2   : > { %v1020_v44 = vsel (!%p1873_p11), %vm2607_vm1, %v1874_v32, %v1019_v46  ;;  %v1024_v45 = vsel (!%p1873_p11), %vm2607_vm1, %v1875_v34, %v1023_v35  ;;  %v869_v47 = vshrl.u32 (!%p1873_p11), %v2287_v3, 16  ;;  %v872_v49 = vshll.u32 (!%p1873_p11), %v2287_v3, 16  ;;  %vm2641_vm4 = vmor (!%p1873_p11), %vm851_vm2, %vm852_vm3  ;;  %s2204_s13 = smov (!%p1873_p11), 16   ;;  %s2205_s14 = smov (!%p1873_p11), 4  }
 0x1d3   : > { %v1028_v27 = vsel (!%p1873_p11), %vm2607_vm1, %v1876_v0, %v1027_v38  ;;  %v1896_v60 = vcombine.low (!%p1873_p11), %v1020_v44, %v1024_v45  ;;  %v878_v53 = vshll.u32 (!%p1873_p11), %v2290_v4, 16  ;;  %v883_v41 = vshrl.u32 (!%p1873_p11), %v2293_v5, 16  ;;  %s2206_s15 = smov (!%p1873_p11), 32   ;;  %s2207_s22 = smov (!%p1873_p11), 28  }
 0x1d4   : > { %v1911_v48 = vcombine.low (!%p1873_p11), %v1024_v45, %v1028_v27  ;;  %v871_v43 = vrot.slane (!%p1873_p11), %v869_v47, 4  ;;  %v874_v54 = vrot.slane (!%p1873_p11), %v872_v49, 5  ;;  %v886_v51 = vshll.u32 (!%p1873_p11), %v2293_v5, 16 }
 0x1d5   : > { %1152 = vrot.lane.b32.xlu0 (!%p1873_p11), %v1896_v60, %s2201_s5  ;;  %1212 = vrot.lane.b32.xlu1 (!%p1873_p11), %v2619_v40, %s2202_s10  ;;  %v880_v55 = vrot.slane (!%p1873_p11), %v878_v53, 5  ;;  %v885_v42 = vrot.slane (!%p1873_p11), %v883_v41, 4  ;;  %v892_v25 = vshll.u32 (!%p1873_p11), %v2296_v6, 16  ;;  %v855_v4 = vshrl.u32 (!%p1873_p11), %v2281_v1, 16 }
 0x1d6   : > { %v875_v36 = vor.u32 (!%p1873_p11), %v874_v54, %v871_v43  ;;  %v888_v30 = vrot.slane (!%p1873_p11), %v886_v51, 5  ;;  %v858_v39 = vshll.u32 (!%p1873_p11), %v2281_v1, 16  ;;  %v864_v37 = vshll.u32 (!%p1873_p11), %v2284_v2, 16 }
 0x1d7   : > { %v857_v57 = vrot.slane %v855_v4, 4  ;;  %v1877_v58 = vrot.slane %v2299_v7, 9  ;;  %v1031_v56 = vrot.slane %v2302_v8, 5  ;;  %v894_v52 = vrot.slane %v892_v25, 5 }
 0x1d8   : > { %v876_v6 = vrot.slane %v875_v36, 4  ;;  %v889_v50 = vor.u32 %v888_v30, %v885_v42  ;;  %v860_v59 = vrot.slane %v858_v39, 5  ;;  %v897_v2 = vshrl.u32 %v2299_v7, 16 }
 0x1d9   : > { %1200 = vrot.lane.b32.xlu0 %v1911_v48, %s2203_s12  ;;  %v900_v61 = vshll.u32 %v2299_v7, 16  ;;  %v906_v62 = vshll.u32 %v2302_v8, 16  ;;  %v866_v63 = vrot.slane %v864_v37, 5  ;;  %v2655_v31 = vsel %vm2607_vm1, %v1877_v58, %v1031_v56 }
 0x1da   : > { %v881_v26 = vsel %vm2641_vm4, %v876_v6, %v880_v55  ;;  %v890_v28 = vrot.slane %v889_v50, 4  ;;  %v861_v29 = vor.u32 %v860_v59, %v857_v57  ;;  %v899_v32 = vrot.slane %v897_v2, 4 }
 0x1db   : > { %v902_v46 = vrot.slane %v900_v61, 5  ;;  %v908_v34 = vrot.slane %v906_v62, 5  ;;  %v939_v38 = vshrl.u32 %v2317_v13, 16  ;;  %v942_v8 = vshll.u32 %v2317_v13, 16 }
 0x1dc   : > { %v895_v35 = vsel %vm2641_vm4, %v890_v28, %v894_v52  ;;  %v862_v0 = vrot.slane %v861_v29, 4  ;;  %v948_v47 = vshll.u32 %v2320_v14, 16  ;;  %v953_v49 = vshrl.u32 %v2323_v15, 16 }
 0x1dd   : > { %v1906_v44 = vcombine.low %v881_v26, %v895_v35  ;;  %v903_v45 = vor.u32 %v902_v46, %v899_v32  ;;  %v941_v53 = vrot.slane %v939_v38, 4  ;;  %v944_v41 = vrot.slane %v942_v8, 5 }
 0x1de   : > { %v867_v60 = vsel %vm2641_vm4, %v862_v0, %v866_v63  ;;  %v956_v48 = vshll.u32 %v2323_v15, 16  ;;  %v1897_v54 = vcombine.low %v1028_v27, %v2655_v31  ;;  %v955_v55 = vrot.slane %v953_v49, 4 }
 0x1df   : > { %1184 = vrot.lane.b32.xlu1 %v1906_v44, %s2204_s13  ;;  %v1891_v43 = vcombine.low %v867_v60, %v881_v26  ;;  %v904_v51 = vrot.slane %v903_v45, 4  ;;  %v945_v42 = vor.u32 %v944_v41, %v941_v53  ;;  %v962_v4 = vshll.u32 %v2326_v16, 16 }
 0x1e0   : > { %v958_v25 = vrot.slane %v956_v48, 5  ;;  %v911_v36 = vshrl.u32 %v2305_v9, 16  ;;  %v950_v39 = vrot.slane %v948_v47, 5  ;;  %v914_v37 = vshll.u32 %v2305_v9, 16 }
 0x1e1   : > { %1127 = vrot.lane.b32.xlu0 %v1891_v43, %s2205_s14  ;;  %v909_v30 = vsel %vm2641_vm4, %v904_v51, %v908_v34  ;;  %v920_v57 = vshll.u32 %v2308_v10, 16  ;;  %v946_v58 = vrot.slane %v945_v42, 4  ;;  %v964_v6 = vrot.slane %v962_v4, 5 }
 0x1e2   : > { %v1892_v27 = vcombine.low %v895_v35, %v909_v30  ;;  %v959_v56 = vor.u32 %v958_v25, %v955_v55  ;;  %v913_v50 = vrot.slane %v911_v36, 4  ;;  %v916_v52 = vrot.slane %v914_v37, 5 }
 0x1e3   : > { %1236 = vrot.lane.b32.xlu1 %v1897_v54, %s2206_s15  ;;  %v1880_v59 = vrot.slane %v2317_v13, 9  ;;  %v1043_v2 = vrot.slane %v2320_v14, 5  ;;  %v922_v26 = vrot.slane %v920_v57, 5  ;;  %v2681_v28 = vsel %vm2641_vm4, %v946_v58, %v950_v39 }
 0x1e4   : > { %v960_v61 = vrot.slane %v959_v56, 4  ;;  %v917_v62 = vor.u32 %v916_v52, %v913_v50  ;;  %v1881_v63 = vrot.slane %v2323_v15, 9  ;;  %v1047_v32 = vrot.slane %v2326_v16, 5 }
 0x1e5   : > { %1224 = vrot.lane.b32.xlu0 %v1892_v27, %s2207_s22  ;;  %v1902_v14 = vcombine.low %v2299_v7, %v2305_v9  ;;  %v2692_v34 = vsel %vm2607_vm1, %v1880_v59, %v1043_v2  ;;  %v1878_v35 = vrot.slane %v2305_v9, 9  ;;  %v1035_v0 = vrot.slane %v2308_v10, 5 }
 0x1e6   : > { %v965_v29 = vsel %vm2641_vm4, %v960_v61, %v964_v6  ;;  %v918_v46 = vrot.slane %v917_v62, 4  ;;  %v967_v38 = vshrl.u32 %v2329_v17, 16  ;;  %v970_v8 = vshll.u32 %v2329_v17, 16 }
 0x1e7   : > { %1154 = vrot.lane.b32.xlu1 %v1897_v54, %s2201_s5  ;;  %v2700_v16 = vcombine.low %v2681_v28, %v965_v29  ;;  %v925_v44 = vshrl.u32 %v2311_v11, 16  ;;  %v928_v45 = vshll.u32 %v2311_v11, 16  ;;  %v1048_v47 = vsel %vm2607_vm1, %v1881_v63, %v1047_v32  ;;  %v2141_v32 = vld [vmem:[%s3037_s1] sm:$0xff]  }
 0x1e8   : > { %v923_v7 = vsel %vm2641_vm4, %v918_v46, %v922_v26  ;;  %v969_v10 = vrot.slane %v967_v38, 4  ;;  %v972_v49 = vrot.slane %v970_v8, 5  ;;  %v976_v60 = vshll.u32 %v2332_v18, 16  ;;  %v2142_v38 = vld [vmem:[%s3037_s1 + $0x8] sm:$0xff]  }
 0x1e9   : > { %1129 = vrot.lane.b32.xlu0 %v1892_v27, %s2205_s14  ;;  %v1907_v53 = vcombine.low %v909_v30, %v923_v7  ;;  %v927_v41 = vrot.slane %v925_v44, 4  ;;  %v930_v48 = vrot.slane %v928_v45, 5  ;;  %v1036_v43 = vsel %vm2607_vm1, %v1878_v35, %v1035_v0 }
 0x1ea   : > { %v973_v54 = vor.u32 %v972_v49, %v969_v10  ;;  %v934_v51 = vshll.u32 %v2314_v12, 16  ;;  %v2716_v55 = vcombine.low %v2692_v34, %v1048_v47  ;;  %v981_v25 = vshrl.u32 %v2335_v19, 16 }
 0x1eb   : > { %1170 = vrot.lane.b32.xlu1 %v1902_v14, %s2200_s16  ;;  %v931_v42 = vor.u32 %v930_v48, %v927_v41  ;;  %v984_v4 = vshll.u32 %v2335_v19, 16  ;;  %v978_v30 = vrot.slane %v976_v60, 5  ;;  %v1912_v39 = vcombine.low %v2655_v31, %v1036_v43 }
 0x1ec   : > { %v974_v36 = vrot.slane %v973_v54, 4  ;;  %v936_v57 = vrot.slane %v934_v51, 5  ;;  %v983_v27 = vrot.slane %v981_v25, 4  ;;  %v1904_v56 = vcombine.low %v2323_v15, %v2329_v17  ;;  %v2145_v54 = vld [vmem:[%s3037_s1 + $0x20] sm:$0xff]   ;;  %v2146_v25 = vld [vmem:[%s3037_s1 + $0x28] sm:$0xff]  }
 0x1ed   : > { %1133 = vrot.lane.b32.xlu0 %v2700_v16, %s2205_s14  ;;  %v932_v37 = vrot.slane %v931_v42, 4  ;;  %v986_v58 = vrot.slane %v984_v4, 5  ;;  %v1882_v50 = vrot.slane %v2329_v17, 9  ;;  %v1051_v52 = vrot.slane %v2332_v18, 5 }
 0x1ee   : > { %v979_v6 = vsel %vm2641_vm4, %v974_v36, %v978_v30  ;;  %v2733_v31 = vcombine.low %v2305_v9, %v2311_v11  ;;  %v1879_v59 = vrot.slane %v2311_v11, 9  ;;  %v1039_v61 = vrot.slane %v2314_v12, 5 }
 0x1ef   : > { %1186 = vrot.lane.b32.xlu1 %v1907_v53, %s2204_s13  ;;  %v2738_v2 = vsel %vm2641_vm4, %v932_v37, %v936_v57  ;;  %v987_v62 = vor.u32 %v986_v58, %v983_v27  ;;  %v990_v26 = vshll.u32 %v2338_v20, 16  ;;  %v1909_v18 = vcombine.low %v965_v29, %v979_v6  ;;  %v2144_v53 = vld [vmem:[%s3037_s1 + $0x18] sm:$0xff]   ;;  %v2147_v37 = vld [vmem:[%s3037_s1 + $0x30] sm:$0xff]  }
 0x1f0   : > { %v1052_v63 = vsel %vm2607_vm1, %v1882_v50, %v1051_v52  ;;  %v1893_v9 = vcombine.low %v923_v7, %v2738_v2  ;;  %v2753_v12 = vsel %vm2607_vm1, %v1879_v59, %v1039_v61  ;;  %v2208_v35 = vmov 0.0  }
 0x1f1   : > { %1158 = vrot.lane.b32.xlu0 %v2716_v55, %s2201_s5  ;;  %v988_v14 = vrot.slane %v987_v62, 4  ;;  %v992_v46 = vrot.slane %v990_v26, 5  ;;  %v1914_v29 = vcombine.low %v1048_v47, %v1052_v63  ;;  %2003 = vmatprep.subr.bf16.mxu0 %v2208_v35  ;;  %v1898_v0 = vcombine.low %v1036_v43, %v2753_v12  ;;  %v2143_v47 = vld [vmem:[%s3037_s1 + $0x10] sm:$0xff]  }
 0x1f2   : > { %2055 = vmatprep.subr.bf16.mxu1 %v2208_v35  ;;  %2004 = vmatpush3.bf16.msra.mxu0 %v2141_v32  ;;  %v1883_v7 = vrot.slane %v2335_v19, 9  ;;  %v1055_v44 = vrot.slane %v2338_v20, 5  ;;  %v2773_v45 = vcombine.low %v2329_v17, %v2335_v19  ;;  %vm2209_vm5 = vmmov 0  }
 0x1f3   : > { %1202 = vrot.lane.b32.xlu1 %v1912_v39, %s2203_s12  ;;  %v2765_v8 = vsel %vm2641_vm4, %v988_v14, %v992_v46  ;;  %2005 = vmatprep.subr.bf16.mxu0 %v2208_v35  ;;  %v1058_v10 = vshrl.u32 %v2341_v21, 16  ;;  %v1061_v49 = vshll.u32 %v2341_v21, 16  ;;  %v1903_v43 = vcombine.low %v2311_v11, %v2317_v13 }
 0x1f4   : > { %2063 = vmatpush3.bf16.msra.mxu1 %v2141_v32  ;;  %2019 = vmatprep.mubr.msk.bf16.mxu0 %vm2209_vm5, %v2208_v35  ;;  %v1895_v20 = vcombine.low %v979_v6, %v2765_v8  ;;  %v2787_v17 = vsel %vm2607_vm1, %v1883_v7, %v1055_v44  ;;  %v1067_v42 = vshll.u32 %v2344_v22, 16  ;;  %v1908_v11 = vcombine.low %v2738_v2, %v2681_v28 }
 0x1f5   : > { %1174 = vrot.lane.b32.xlu0 %v1904_v56, %s2200_s16  ;;  %2056 = vmatprep.subr.bf16.mxu1 %v2208_v35  ;;  %v1900_v60 = vcombine.low %v1052_v63, %v2787_v17  ;;  %v1060_v41 = vrot.slane %v1058_v10, 4  ;;  %v1063_v48 = vrot.slane %v1061_v49, 5  ;;  %v1078_v30 = vshrl.u32 %v2347_v23, 16 }
 0x1f6   : > { %2031 = vmatprep.mubr.msk.bf16.mxu1 %vm2209_vm5, %v2208_v35  ;;  %2006 = vmatpush3.bf16.msra.mxu0 %v2142_v38  ;;  %v1069_v36 = vrot.slane %v1067_v42, 5  ;;  %v1081_v39 = vshll.u32 %v2347_v23, 16  ;;  %v1913_v28 = vcombine.low %v2753_v12, %v2692_v34  ;;  %v1905_v57 = vcombine.low %v2335_v19, %v2341_v21  ;;  %v2148_v19 = vld [vmem:[%s3037_s1 + $0x38] sm:$0xff]  }
 0x1f7   : > { %1214 = vrot.lane.b32.xlu1 %v2733_v31, %s2202_s10  ;;  %2007 = vmatprep.subr.bf16.mxu0 %v2208_v35  ;;  %v1064_v51 = vor.u32 %v1063_v48, %v1060_v41  ;;  %v1884_v27 = vrot.slane %v2341_v21, 9  ;;  %v1075_v58 = vrot.slane %v2344_v22, 5  ;;  %v1080_v56 = vrot.slane %v1078_v30, 4 }
 0x1f8   : > { %2064 = vmatpush3.bf16.msra.mxu1 %v2142_v38  ;;  %v1083_v6 = vrot.slane %v1081_v39, 5  ;;  %v2842_v50 = vcombine.low %v2317_v13, %v2323_v15  ;;  %v1087_v13 = vshll.u32 %v2350_v24, 16  ;;  %v1885_v15 = vrot.slane %v2347_v23, 9 }
 0x1f9   : > { %1190 = vrot.lane.b32.xlu0 %v1909_v18, %s2204_s13  ;;  %2057 = vmatprep.subr.bf16.mxu1 %v2208_v35  ;;  %v1065_v4 = vrot.slane %v1064_v51, 4  ;;  %v1076_v52 = vsel %vm2607_vm1, %v1884_v27, %v1075_v58  ;;  %v1095_v2 = vrot.slane %v2350_v24, 5  ;;  %v1916_v63 = vcombine.low %v2341_v21, %v2347_v23 }
 0x1fa   : > { %2008 = vmatpush3.bf16.msra.mxu0 %v2143_v47  ;;  %v1084_v59 = vor.u32 %v1083_v6, %v1080_v56  ;;  %v1915_v61 = vcombine.low %v2787_v17, %v1076_v52  ;;  %v1089_v26 = vrot.slane %v1087_v13, 5  ;;  %v1886_v21 = vcombine.low %v2281_v1, %v2287_v3 }
 0x1fb   : > { %1226 = vrot.lane.b32.xlu1 %v1893_v9, %s2207_s22  ;;  %2009 = vmatprep.subr.bf16.mxu0 %v2208_v35  ;;  %v1070_v34 = vsel %vm2641_vm4, %v1065_v4, %v1069_v36  ;;  %v1096_v18 = vsel %vm2607_vm1, %v1885_v15, %v1095_v2  ;;  %vm1246_vm6 = vcmask 31744   ;;  %vm1262_vm7 = vcmask 64512  }
 0x1fc   : > { %2065 = vmatpush3.bf16.msra.mxu1 %v2143_v47  ;;  %v1910_v22 = vcombine.low %v2765_v8, %v1070_v34  ;;  %v1085_v62 = vrot.slane %v1084_v59, 4  ;;  %vm1273_vm8 = vcmask 97280   ;;  %vm1284_vm9 = vcmask 130048  }
 0x1fd   : > { %1206 = vrot.lane.b32.xlu0 %v1914_v29, %s2203_s12  ;;  %2058 = vmatprep.subr.bf16.mxu1 %v2208_v35  ;;  %vm1295_vm10 = vcmask 162816   ;;  %vm1306_vm11 = vcmask 195584   ;;  %vm1317_vm12 = vcmask 228352   ;;  %vm1328_vm13 = vcmask 261120  }
 0x1fe   : > { %2010 = vmatpush3.bf16.msra.mxu0 %v2144_v53  ;;  %v1090_v24 = vsel %vm2641_vm4, %v1085_v62, %v1089_v26  ;;  %vm1339_vm14 = vcmask 293888   ;;  %vm1630_vm15 = vcmask 1040384   ;;  %vm1631_vm0 = vsmask.f32 256 }
 0x1ff   : > { %1238 = vrot.lane.b32.xlu1 %v1898_v0, %s2206_s15  ;;  %2011 = vmatprep.subr.bf16.mxu0 %v2208_v35  ;;  %v1917_v32 = vcombine.low %v1070_v34, %v1090_v24  ;;  %vm2931_vm1 = vmand %vm1630_vm15, %vm1631_vm0  ;;  %vm1643_vm2 = vcmask 1044480   ;;  %vm1644_vm3 = vsmask.f32 4352 }
 0x200   : > { %2066 = vmatpush3.bf16.msra.mxu1 %v2144_v53  ;;  %vm2937_vm4 = vmand %vm1643_vm2, %vm1644_vm3 }
 0x201   : > { %1218 = vrot.lane.b32.xlu0 %v2773_v45, %s2202_s10  ;;  %2059 = vmatprep.subr.bf16.mxu1 %v2208_v35 }
 0x202   : > { %2012 = vmatpush3.bf16.msra.mxu0 %v2145_v54 }
 0x203   : > { %1230 = vrot.lane.b32.xlu1 %v1895_v20, %s2207_s22  ;;  %2013 = vmatprep.subr.bf16.mxu0 %v2208_v35 }
 0x204   : > { %2067 = vmatpush3.bf16.msra.mxu1 %v2145_v54 }
 0x205   : > { %1131 = vrot.lane.b32.xlu0 %v1893_v9, %s2205_s14  ;;  %2060 = vmatprep.subr.bf16.mxu1 %v2208_v35  ;;  %v1918_v9 = vcombine.low %v1076_v52, %v1096_v18 }
 0x206   : > { %2014 = vmatpush3.bf16.msra.mxu0 %v2146_v25 }
 0x207   : > { %1242 = vrot.lane.b32.xlu1 %v1900_v60, %s2206_s15  ;;  %2015 = vmatprep.subr.bf16.mxu0 %v2208_v35 }
 0x208   : > { %2068 = vmatpush3.bf16.msra.mxu1 %v2146_v25 }
 0x209   : > { %1156 = vrot.lane.b32.xlu0 %v1898_v0, %s2201_s5  ;;  %2061 = vmatprep.subr.bf16.mxu1 %v2208_v35 }
 0x20a   : > { %2016 = vmatpush3.bf16.msra.mxu0 %v2147_v37 }
 0x20b   : > { %1172 = vrot.lane.b32.xlu1 %v1903_v43, %s2200_s16  ;;  %2017 = vmatprep.subr.bf16.mxu0 %v2208_v35 }
 0x20c   : > { %2069 = vmatpush3.bf16.msra.mxu1 %v2147_v37 }
 0x20d   : > { %1135 = vrot.lane.b32.xlu0 %v1895_v20, %s2205_s14  ;;  %2062 = vmatprep.subr.bf16.mxu1 %v2208_v35 }
 0x20e   : > { %2018 = vmatpush3.bf16.msra.mxu0 %v2148_v19 }
 0x20f   : > { %1188 = vrot.lane.b32.xlu1 %v1908_v11, %s2204_s13 }
 0x210   : > { %2070 = vmatpush3.bf16.msra.mxu1 %v2148_v19 }
 0x211   : > { %1160 = vrot.lane.b32.xlu0 %v1900_v60, %s2201_s5 }
 0x213   : > { %1204 = vrot.lane.b32.xlu1 %v1913_v28, %s2203_s12 }
 0x215   : > { %1176 = vrot.lane.b32.xlu0 %v1905_v57, %s2200_s16 }
 0x217   : > { %1216 = vrot.lane.b32.xlu1 %v2842_v50, %s2202_s10 }
 0x219   : > { %1192 = vrot.lane.b32.xlu0 %v1910_v22, %s2204_s13 }
 0x21b   : > { %1228 = vrot.lane.b32.xlu1 %v2700_v16, %s2207_s22 }
 0x21d   : > { %1208 = vrot.lane.b32.xlu0 %v1915_v61, %s2203_s12 }
 0x21f   : > { %1240 = vrot.lane.b32.xlu1 %v2716_v55, %s2206_s15 }
 0x221   : > { %1220 = vrot.lane.b32.xlu0 %v1916_v63, %s2202_s10 }
 0x223   : > { %1244 = vrot.lane.b32.xlu1 %v1918_v9, %s2206_s15 }
 0x225   : > { %1232 = vrot.lane.b32.xlu0 %v1917_v32, %s2207_s22 }
 0x243   : > { %v1169_v33 = vpop.permute.xlu1 %1168 }
 0x247   : > { %v1153_v16 = vpop.permute.xlu0 %1152  ;;  %v1213_v12 = vpop.permute.xlu1 %1212 }
 0x24b   : > { %v1201_v14 = vpop.permute.xlu0 %1200 }
 0x251   : > { %v1185_v23 = vpop.permute.xlu1 %1184 }
 0x253   : > { %v1128_v5 = vpop.permute.xlu0 %1127 }
 0x254   : > { %v1249_v55 = vsel %vm1246_vm6, %v1886_v21, %v1128_v5 }
 0x255   : > { %v1264_v46 = vsel %vm1262_vm7, %v1249_v55, %v1153_v16  ;;  %v1237_v29 = vpop.permute.xlu1 %1236 }
 0x256   : > { %v1275_v0 = vsel %vm1273_vm8, %v1264_v46, %v1169_v33 }
 0x257   : > { %v1286_v38 = vsel %vm1284_vm9, %v1275_v0, %v1185_v23  ;;  %v1225_v8 = vpop.permute.xlu0 %1224 }
 0x258   : > { %v1297_v1 = vsel %vm1295_vm10, %v1286_v38, %v1201_v14 }
 0x259   : > { %v1308_v3 = vsel %vm1306_vm11, %v1297_v1, %v1213_v12  ;;  %v1155_v7 = vpop.permute.xlu1 %1154 }
 0x25a   : > { %v1319_v44 = vsel %vm1317_vm12, %v1308_v3, %v1225_v8 }
 0x25b   : > { %v1130_v20 = vpop.permute.xlu0 %1129  ;;  %v1330_v47 = vsel %vm1328_vm13, %v1319_v44, %v1237_v29 }
 0x25c   : > { %2020 = vmatmul.mubr.msk.bf16.vlgmr.msra.gmra.mrb[0].mxu0 %vm1339_vm14, %v1330_v47  ;;  %v1252_v41 = vsel %vm1246_vm6, %v2619_v40, %v1130_v20  ;;  %v2210_v20 = vmov 0  }
 0x25d   : > { %v1171_v17 = vpop.permute.xlu1 %1170  ;;  %2023 = vmatprep.mubr.msk.bf16.mxu0 %vm2209_vm5, %v2208_v35  ;;  %v1266_v54 = vsel %vm1262_vm7, %v1252_v41, %v1155_v7  ;;  %v1553_v47 = vrot.slane %v2210_v20, 7 }
 0x25e   : > { %v1277_v42 = vsel %vm1273_vm8, %v1266_v54, %v1171_v17  ;;  %v839_v54 = vld [vmem:[#allocation3] sm:$0x1] }
 0x25f   : > { %v1134_v10 = vpop.permute.xlu0 %1133 }
 0x260   : > { %v1258_v39 = vsel %vm1246_vm6, %v2842_v50, %v1134_v10  ;;  %v1633_v10 = vsel %vm2931_vm1, 0, %v1553_v47 }
 0x261   : > { %v1187_v49 = vpop.permute.xlu1 %1186 }
 0x262   : > { %v1288_v25 = vsel %vm1284_vm9, %v1277_v42, %v1187_v49 }
 0x263   : > { %v1159_v60 = vpop.permute.xlu0 %1158 }
 0x264   : > { %v1270_v37 = vsel %vm1262_vm7, %v1258_v39, %v1159_v60  ;;  %v1646_v60 = vsel %vm2937_vm4, %v1633_v10, 0  ;;  %v1489_v39 = vlaneseq }
 0x265   : > { %v1203_v53 = vpop.permute.xlu1 %1202  ;;  %v1933_v41 = vcombine.high %v1646_v60, %v1646_v60 }
 0x266   : > { %v1299_v4 = vsel %vm1295_vm10, %v1288_v25, %v1203_v53  ;;  %v1932_v53 = vcombine.low %v1646_v60, %v1646_v60 }
 0x267   : > { %v1175_v48 = vpop.permute.xlu0 %1174  ;;  %1727 = vst [vmem:[%s2278_s30 + $0x4] sm:$0x1] %v1933_v41  ;;  %1745 = vst [vmem:[%s2278_s30 + $0x4c] sm:$0x1] %v1933_v41 }
 0x268   : > { %v1281_v27 = vsel %vm1273_vm8, %v1270_v37, %v1175_v48  ;;  %1726 = vst [vmem:[%s2278_s30] sm:$0xf] %v1932_v53  ;;  %1744 = vst [vmem:[%s2278_s30 + $0x48] sm:$0xf] %v1932_v53  ;;  %v837_v48 = vld [vmem:[#allocation2] sm:$0x1] }
 0x269   : > { %v1215_v43 = vpop.permute.xlu1 %1214 }
 0x26a   : > { %v1310_v30 = vsel %vm1306_vm11, %v1299_v4, %v1215_v43  ;;  %v838_v43 = vmul.f32 0.0078125, %v837_v48 }
 0x26b   : > { %v1191_v51 = vpop.permute.xlu0 %1190 }
 0x26c   : > { %v1292_v58 = vsel %vm1284_vm9, %v1281_v27, %v1191_v51  ;;  %v840_v51 = vmul.f32 0.0078125, %v839_v54  ;;  %v841_v42 = vmul.f32 %v838_v43, %v838_v43 }
 0x26d   : > { %v1227_v11 = vpop.permute.xlu1 %1226 }
 0x26e   : > { %v1321_v40 = vsel %vm1317_vm12, %v1310_v30, %v1227_v11  ;;  %v842_v11 = vsub.f32 %v840_v51, %v841_v42  ;;  %v844_v30 = vld [vmem:[%s3038_s2] sm:$0x1] }
 0x26f   : > { %v1207_v36 = vpop.permute.xlu0 %1206 }
 0x270   : > { %v1303_v56 = vsel %vm1295_vm10, %v1292_v58, %v1207_v36  ;;  %v843_v25 = vmax.f32 %v842_v11, 0.0 }
 0x271   : > { %v1239_v28 = vpop.permute.xlu1 %1238 }
 0x272   : > { %v1332_v57 = vsel %vm1328_vm13, %v1321_v40, %v1239_v28  ;;  %v845_v4 = vadd.f32 1e-05, %v843_v25  ;;  %v1490_v28 = vshrl.u32 %v1489_v39, 7 }
 0x273   : > { %2024 = vmatmul.mubr.msk.bf16.gmra.mrb[4].mxu0 %vm1339_vm14, %v1332_v57  ;;  %v1219_v34 = vpop.permute.xlu0 %1218  ;;  %v848_v57 = vld [vmem:[%s3039_s3] sm:$0x1] }
 0x274   : > { %2027 = vmatprep.mubr.msk.bf16.mxu0 %vm2209_vm5, %v2208_v35  ;;  %v1314_v50 = vsel %vm1306_vm11, %v1303_v56, %v1219_v34  ;;  %2149 = vrsqrt.f32 %v845_v4  ;;  %v1491_v27 = vsub.s32 0, %v1490_v28 }
 0x275   : > { %v1231_v6 = vpop.permute.xlu1 %1230 }
 0x276   : > { %v1325_v22 = vsel %vm1317_vm12, %v1314_v50, %v1231_v6 }
 0x277   : > { %v1132_v19 = vpop.permute.xlu0 %1131 }
 0x278   : > { %v1255_v63 = vsel %vm1246_vm6, %v2733_v31, %v1132_v19 }
 0x279   : > { %v1243_v52 = vpop.permute.xlu1 %1242 }
 0x27a   : > { %v1336_v59 = vsel %vm1328_vm13, %v1325_v22, %v1243_v52 }
 0x27b   : > { %2032 = vmatmul.mubr.msk.bf16.vlgmr.msra.gmra.mrb[0].mxu1 %vm1339_vm14, %v1336_v59  ;;  %v1157_v13 = vpop.permute.xlu0 %1156 }
 0x27c   : > { %2035 = vmatprep.mubr.msk.bf16.mxu1 %vm2209_vm5, %v2208_v35  ;;  %v1268_v9 = vsel %vm1262_vm7, %v1255_v63, %v1157_v13 }
 0x27d   : > { %v1173_v15 = vpop.permute.xlu1 %1172 }
 0x27e   : > { %v1279_v33 = vsel %vm1273_vm8, %v1268_v9, %v1173_v15  ;;  %v2150_v36 = vpop.eup %2149 }
 0x27f   : > { %v1136_v2 = vpop.permute.xlu0 %1135  ;;  %v847_v40 = vmul.f32 %v2150_v36, %v844_v30 }
 0x280   : > { %v1261_v31 = vsel %vm1246_vm6, %v2773_v45, %v1136_v2 }
 0x281   : > { %v1189_v61 = vpop.permute.xlu1 %1188  ;;  %v849_v37 = vmul.f32 %v847_v40, %v838_v43  ;;  %v2953_v58 = vrot.slane %v847_v40, %v1491_v27 }
 0x282   : > { %v1290_v12 = vsel %vm1284_vm9, %v1279_v33, %v1189_v61 }
 0x283   : > { %v1161_v62 = vpop.permute.xlu0 %1160  ;;  %v850_v34 = vsub.f32 %v848_v57, %v849_v37 }
 0x284   : > { %v1272_v46 = vsel %vm1262_vm7, %v1261_v31, %v1161_v62 }
 0x285   : > { %v1205_v26 = vpop.permute.xlu1 %1204  ;;  %v2955_v50 = vrot.slane %v850_v34, %v1491_v27 }
 0x286   : > { %v1301_v35 = vsel %vm1295_vm10, %v1290_v12, %v1205_v26 }
 0x287   : > { %v1177_v18 = vpop.permute.xlu0 %1176 }
 0x288   : > { %v1283_v0 = vsel %vm1273_vm8, %v1272_v46, %v1177_v18 }
 0x289   : > { %v1217_v24 = vpop.permute.xlu1 %1216 }
 0x28a   : > { %v1312_v21 = vsel %vm1306_vm11, %v1301_v35, %v1217_v24 }
 0x28b   : > { %v1193_v32 = vpop.permute.xlu0 %1192 }
 0x28c   : > { %v1294_v38 = vsel %vm1284_vm9, %v1283_v0, %v1193_v32 }
 0x28d   : > { %v1229_v16 = vpop.permute.xlu1 %1228 }
 0x28e   : > { %v1323_v23 = vsel %vm1317_vm12, %v1312_v21, %v1229_v16 }
 0x28f   : > { %v1209_v14 = vpop.permute.xlu0 %1208 }
 0x290   : > { %v1305_v8 = vsel %vm1295_vm10, %v1294_v38, %v1209_v14 }
 0x291   : > { %v1241_v5 = vpop.permute.xlu1 %1240 }
 0x292   : > { %v1334_v55 = vsel %vm1328_vm13, %v1323_v23, %v1241_v5 }
 0x293   : > { %2028 = vmatmul.mubr.msk.bf16.gmra.mrb[8].mxu0 %vm1339_vm14, %v1334_v55  ;;  %v1221_v29 = vpop.permute.xlu0 %1220 }
 0x294   : > { %v1316_v3 = vsel %vm1306_vm11, %v1305_v8, %v1221_v29 }
 0x295   : > { %v1245_v1 = vpop.permute.xlu1 %1244 }
 0x297   : > { %v1233_v7 = vpop.permute.xlu0 %1232 }
 0x298   : > { %v1327_v45 = vsel %vm1317_vm12, %v1316_v3, %v1233_v7 }
 0x299   : > { %v1338_v44 = vsel %vm1328_vm13, %v1327_v45, %v1245_v1 }
 0x29a   : > { %2036 = vmatmul.mubr.msk.bf16.gmra.mrb[4].mxu1 %vm1339_vm14, %v1338_v44 }
 0x32f   : > { %v1449_v56 = vpop.f32.mrb[0].mxu0 }
 0x330   : > { %v2021_v6 = vpop.f32.mrb[1].mxu0 }
 0x331   : > { %v1452_v19 = vpop.f32.mrb[2].mxu0 }
 0x332   : > { %v1495_v22 = vmul.f32 %v2953_v58, %v1452_v19  ;;  %v2022_v52 = vpop.f32.mrb[3].mxu0 }
 0x334   : > { %v1511_v59 = vadd.f32 %v2955_v50, %v1495_v22 }
 0x336   : > { %v1521_v13 = vmax.f32 %v1511_v59, 0.0 }
 0x338   : > { %v1541_v15 = vpack.c.bf16 %v1521_v13, %v1521_v13 }
 0x33a   : > { %v1558_v2 = vshrl.u32 %v1541_v15, 16  ;;  %v1561_v62 = vshll.u32 %v1541_v15, 16 }
 0x33c   : > { %v1560_v61 = vrot.slane %v1558_v2, 7 }
 0x33e   : > { %v1563_v26 = vor.u32 %v1561_v62, %v1560_v61 }
 0x340   : > { %v1634_v18 = vsel %vm2931_vm1, 0, %v1563_v26 }
 0x341   : > { %v1647_v63 = vsel %vm2937_vm4, %v1634_v18, 0 }
 0x342   : > { %v1934_v24 = vcombine.low %v1647_v63, %v1647_v63  ;;  %v1935_v9 = vcombine.high %v1647_v63, %v1647_v63 }
 0x344   : > { %1728 = vst [vmem:[%s2278_s30 + $0x8] sm:$0xf] %v1934_v24  ;;  %1729 = vst [vmem:[%s2278_s30 + $0xc] sm:$0x1] %v1935_v9 }
 0x346   : > { %v1457_v32 = vpop.f32.mrb[4].mxu0 }
 0x347   : > { %v1496_v33 = vmul.f32 %v2953_v58, %v1457_v32  ;;  %v2025_v16 = vpop.f32.mrb[5].mxu0 }
 0x348   : > { %v1460_v12 = vpop.f32.mrb[6].mxu0 }
 0x349   : > { %v1512_v35 = vadd.f32 %v2955_v50, %v1496_v33  ;;  %v1497_v14 = vmul.f32 %v2953_v58, %v1460_v12  ;;  %v2026_v21 = vpop.f32.mrb[7].mxu0 }
 0x34b   : > { %v1522_v23 = vmax.f32 %v1512_v35, 0.0  ;;  %v1513_v5 = vadd.f32 %v2955_v50, %v1497_v14 }
 0x34d   : > { %v1542_v31 = vpack.c.bf16 %v1522_v23, %v1522_v23  ;;  %v1523_v55 = vmax.f32 %v1513_v5, 0.0 }
 0x34e   : > { %v1473_v46 = vpop.f32.mrb[0].mxu1 }
 0x34f   : > { %v1565_v29 = vshrl.u32 %v1542_v31, 16  ;;  %v1543_v0 = vpack.c.bf16 %v1523_v55, %v1523_v55  ;;  %v1500_v38 = vmul.f32 %v2953_v58, %v1473_v46  ;;  %v2033_v8 = vpop.f32.mrb[1].mxu1  ;;  %v1568_v7 = vshll.u32 %v1542_v31, 16 }
 0x350   : > { %v1476_v1 = vpop.f32.mrb[2].mxu1 }
 0x351   : > { %v1567_v3 = vrot.slane %v1565_v29, 7  ;;  %v1572_v45 = vshrl.u32 %v1543_v0, 16  ;;  %v1516_v44 = vadd.f32 %v2955_v50, %v1500_v38  ;;  %v2034_v20 = vpop.f32.mrb[3].mxu1  ;;  %v1501_v47 = vmul.f32 %v2953_v58, %v1476_v1 }
 0x352   : > { %v1575_v53 = vshll.u32 %v1543_v0, 16 }
 0x353   : > { %v1570_v10 = vor.u32 %v1568_v7, %v1567_v3  ;;  %v1574_v60 = vrot.slane %v1572_v45, 7  ;;  %v1526_v41 = vmax.f32 %v1516_v44, 0.0  ;;  %v1517_v48 = vadd.f32 %v2955_v50, %v1501_v47 }
 0x355   : > { %v1635_v43 = vsel %vm2931_vm1, 0, %v1570_v10  ;;  %v1577_v54 = vor.u32 %v1575_v53, %v1574_v60  ;;  %v1546_v51 = vpack.c.bf16 %v1526_v41, %v1526_v41  ;;  %v1527_v11 = vmax.f32 %v1517_v48, 0.0 }
 0x356   : > { %v1648_v42 = vsel %vm2937_vm4, %v1635_v43, 0 }
 0x357   : > { %v1936_v25 = vcombine.low %v1648_v42, %v1648_v42  ;;  %v1937_v4 = vcombine.high %v1648_v42, %v1648_v42  ;;  %v1636_v36 = vsel %vm2931_vm1, 0, %v1577_v54  ;;  %v1593_v30 = vshrl.u32 %v1546_v51, 16 }
 0x358   : > { %v1649_v39 = vsel %vm2937_vm4, %v1636_v36, 0  ;;  %v1547_v40 = vpack.c.bf16 %v1527_v11, %v1527_v11  ;;  %v1596_v27 = vshll.u32 %v1546_v51, 16 }
 0x359   : > { %1730 = vst [vmem:[%s2278_s30 + $0x10] sm:$0xf] %v1936_v25  ;;  %1731 = vst [vmem:[%s2278_s30 + $0x14] sm:$0x1] %v1937_v4  ;;  %v1938_v28 = vcombine.low %v1649_v39, %v1649_v39  ;;  %v1939_v37 = vcombine.high %v1649_v39, %v1649_v39  ;;  %v1595_v57 = vrot.slane %v1593_v30, 7 }
 0x35a   : > { %v1600_v34 = vshrl.u32 %v1547_v40, 16  ;;  %v1603_v19 = vshll.u32 %v1547_v40, 16 }
 0x35b   : > { %1732 = vst [vmem:[%s2278_s30 + $0x18] sm:$0xf] %v1938_v28  ;;  %1733 = vst [vmem:[%s2278_s30 + $0x1c] sm:$0x1] %v1939_v37  ;;  %v1598_v56 = vor.u32 %v1596_v27, %v1595_v57 }
 0x35c   : > { %v1602_v6 = vrot.slane %v1600_v34, 7 }
 0x35d   : > { %v1639_v22 = vsel %vm2931_vm1, 0, %v1598_v56 }
 0x35e   : > { %v1652_v52 = vsel %vm2937_vm4, %v1639_v22, 0  ;;  %v1605_v59 = vor.u32 %v1603_v19, %v1602_v6 }
 0x35f   : > { %v1944_v13 = vcombine.low %v1652_v52, %v1652_v52  ;;  %v1945_v15 = vcombine.high %v1652_v52, %v1652_v52 }
 0x360   : > { %v1640_v2 = vsel %vm2931_vm1, 0, %v1605_v59 }
 0x361   : > { %1738 = vst [vmem:[%s2278_s30 + $0x30] sm:$0xf] %v1944_v13  ;;  %1739 = vst [vmem:[%s2278_s30 + $0x34] sm:$0x1] %v1945_v15  ;;  %v1653_v61 = vsel %vm2937_vm4, %v1640_v2, 0 }
 0x362   : > { %v1946_v62 = vcombine.low %v1653_v61, %v1653_v61  ;;  %v1947_v26 = vcombine.high %v1653_v61, %v1653_v61 }
 0x364   : > { %1740 = vst [vmem:[%s2278_s30 + $0x38] sm:$0xf] %v1946_v62  ;;  %1741 = vst [vmem:[%s2278_s30 + $0x3c] sm:$0x1] %v1947_v26 }
 0x366   : > { %v1465_v18 = vpop.f32.mrb[8].mxu0 }
 0x367   : > { %v1498_v63 = vmul.f32 %v2953_v58, %v1465_v18  ;;  %v2029_v24 = vpop.f32.mrb[9].mxu0 }
 0x368   : > { %v1468_v9 = vpop.f32.mrb[10].mxu0 }
 0x369   : > { %v1514_v32 = vadd.f32 %v2955_v50, %v1498_v63  ;;  %v1499_v33 = vmul.f32 %v2953_v58, %v1468_v9  ;;  %v2030_v16 = vpop.f32.mrb[11].mxu0 }
 0x36b   : > { %v1524_v12 = vmax.f32 %v1514_v32, 0.0  ;;  %v1515_v35 = vadd.f32 %v2955_v50, %v1499_v33 }
 0x36d   : > { %v1544_v14 = vpack.c.bf16 %v1524_v12, %v1524_v12  ;;  %v1525_v21 = vmax.f32 %v1515_v35, 0.0  ;;  %v1481_v23 = vpop.f32.mrb[4].mxu1 }
 0x36e   : > { %v1502_v5 = vmul.f32 %v2953_v58, %v1481_v23  ;;  %v2037_v31 = vpop.f32.mrb[5].mxu1 }
 0x36f   : > { %v1579_v55 = vshrl.u32 %v1544_v14, 16  ;;  %v1545_v46 = vpack.c.bf16 %v1525_v21, %v1525_v21  ;;  %v1484_v29 = vpop.f32.mrb[6].mxu1  ;;  %v1582_v1 = vshll.u32 %v1544_v14, 16 }
 0x370   : > { %v1518_v0 = vadd.f32 %v2955_v50, %v1502_v5  ;;  %v2038_v38 = vpop.f32.mrb[7].mxu1 }
 0x371   : > { %v1581_v8 = vrot.slane %v1579_v55, 7  ;;  %v1586_v3 = vshrl.u32 %v1545_v46, 16  ;;  %v1589_v20 = vshll.u32 %v1545_v46, 16 }
 0x372   : > { %v1528_v7 = vmax.f32 %v1518_v0, 0.0 }
 0x373   : > { %v1584_v45 = vor.u32 %v1582_v1, %v1581_v8  ;;  %v1588_v44 = vrot.slane %v1586_v3, 7 }
 0x374   : > { %v1548_v47 = vpack.c.bf16 %v1528_v7, %v1528_v7 }
 0x375   : > { %v1637_v58 = vsel %vm2931_vm1, 0, %v1584_v45  ;;  %v1591_v10 = vor.u32 %v1589_v20, %v1588_v44 }
 0x376   : > { %v1650_v50 = vsel %vm2937_vm4, %v1637_v58, 0  ;;  %v1607_v60 = vshrl.u32 %v1548_v47, 16  ;;  %v1610_v51 = vshll.u32 %v1548_v47, 16 }
 0x377   : > { %v1940_v53 = vcombine.low %v1650_v50, %v1650_v50  ;;  %v1941_v41 = vcombine.high %v1650_v50, %v1650_v50  ;;  %v1638_v48 = vsel %vm2931_vm1, 0, %v1591_v10 }
 0x378   : > { %v1651_v43 = vsel %vm2937_vm4, %v1638_v48, 0  ;;  %v1609_v54 = vrot.slane %v1607_v60, 7 }
 0x379   : > { %1734 = vst [vmem:[%s2278_s30 + $0x20] sm:$0xf] %v1940_v53  ;;  %1735 = vst [vmem:[%s2278_s30 + $0x24] sm:$0x1] %v1941_v41  ;;  %v1942_v42 = vcombine.low %v1651_v43, %v1651_v43  ;;  %v1943_v11 = vcombine.high %v1651_v43, %v1651_v43 }
 0x37a   : > { %v1612_v25 = vor.u32 %v1610_v51, %v1609_v54 }
 0x37b   : > { %1736 = vst [vmem:[%s2278_s30 + $0x28] sm:$0xf] %v1942_v42  ;;  %1737 = vst [vmem:[%s2278_s30 + $0x2c] sm:$0x1] %v1943_v11 }
 0x37c   : > { %v1641_v4 = vsel %vm2931_vm1, 0, %v1612_v25 }
 0x37d   : > { %v1654_v36 = vsel %vm2937_vm4, %v1641_v4, 0 }
 0x37e   : > { %v1948_v30 = vcombine.low %v1654_v36, %v1654_v36  ;;  %v1949_v39 = vcombine.high %v1654_v36, %v1654_v36 }
 0x380   : > { %1742 = vst [vmem:[%s2278_s30 + $0x40] sm:$0xf] %v1948_v30  ;;  %1743 = vst [vmem:[%s2278_s30 + $0x44] sm:$0x1] %v1949_v39 }
 0x381 PF: > { %s14_s19 = sadd.s32 1, %s2189_s19   ;;  %s3053_s15 = smov %s2181_s17 }
 0x382   : > { %p11_p12 = scmp.ge.s32.totalorder %s14_s19, 6   ;;  %s3054_s16 = smov %s2185_s18 }
 0x383   : > { %s3055_s17 = smov %s3058_s20  ;;  %s3056_s18 = smov %s3062_s21 }
 0x384   :  { %13 = sbr.rel (!%p11_p12) target bundleno = 3 (0x3), region = 78 }

// kernel: encoder_block_forward.3
= control target key start
LH: loop header
LB: loop body
LE: loop exit
PB: predicated region body
PF: predicated region fallthrough
CT: control target
= control target key end

     0   :  { %s4023_s15 = smov 0   ;;  %s4025_s16 = smov 0   ;;  %s4899_s0 = inlined_call_operand.vmem [shape: bf16[2,10,10,128], index: 0, kind: input, shape index: {}]   ;;  %s4900_s1 = inlined_call_operand.vmem [shape: bf16[3,384,128], index: 1, kind: input, shape index: {}]   ;;  %s4901_s2 = inlined_call_operand.vmem [shape: f32[1,128], index: 2, kind: input, shape index: {}]   ;;  %s4902_s3 = inlined_call_operand.vmem [shape: f32[1,128], index: 3, kind: input, shape index: {}]   ;;  %s4903_s4 = inlined_call_operand.vmem [shape: bf16[2,8,8,128], index: 4, kind: output, shape index: {}]  }
   0x1   :  { %s4027_s17 = smov 0   ;;  %s4029_s18 = smov 0  }
   0x2   :  { %s4031_s19 = smov 0  }
   0x3 LB: > { %s23_s20 = sadd.s32 1, %s3987_s17  ;;  %s26_s21 = sadd.s32 1, %s3991_s18  ;;  %s3995_s19 = sphi %s4031_s19, %s14_s19   ;;  %s3991_s18 = sphi %s4029_s18, %s4907_s18   ;;  %s3987_s17 = sphi %s4027_s17, %s4906_s17   ;;  %s3983_s16 = sphi %s4025_s16, %s4905_s16   ;;  %s3979_s15 = sphi %s4023_s15, %s4904_s15  }
   0x4   : > { %p24_p0 = scmp.ge.s32.totalorder %s23_s20, 2  ;;  %p2791_p1 = scmp.ge.s32.totalorder %s3995_s19, 1 }
   0x5   : > { %p176_p2 = scmp.lt.s32.totalorder %s3995_s19, 5 }
   0x6   : > { %s4909_s20 = smov (%p24_p0, %s23_s20), 0  ;;  %s4911_s21 = smov (!%p24_p0, %s26_s21), %s3991_s18 }
   0x7   : > { %p177_p3 = pnand %p2791_p1, %p176_p2  ;;  %p28_p4 = scmp.ge.s32.totalorder %s4911_s21, 2 }
   0x8   : > { %p203_p5 = scmp.lt.s32.totalorder (!%p177_p3), %s3979_s15, 1  ;;  %s208_s22 = smul.u32 (!%p177_p3), %s3979_s15, %s3983_s16 }
   0x9   : > { %s4913_s21 = smov (%p28_p4, %s4911_s21), 0  ;;  %180 = sbr.rel (%p177_p3) target bundleno = 747 (0x2eb), region = 36 }
   0xa   : > { %p216_p6 = scmp.eq.s32.totalorder (!%p177_p3), %s3983_s16, 0  ;;  %p217_p7 = scmp.eq.s32.totalorder (!%p177_p3), %s3979_s15, 0 }
   0xb   : > { %p209_p8 = scmp.lt.s32.totalorder (!%p177_p3), %s208_s22, 1 }
   0xc   : > { %p218_p9 = pnand (!%p177_p3), %p217_p7, %p216_p6 }
  0x10   : > { %s4915_s15 = smov (!%p203_p5, %s3979_s15), 1  ;;  %s4917_s22 = smov (!%p209_p8, %s208_s22), 1 }
  0x11   : > { %s3769_s23 = smul.u32 80, %s4915_s15  ;;  %s3209_s27 = sshll.u32 %s4917_s22, 5  ;;  %v3997_v0 = vmov (!%p218_p9), 0.0  }
  0x12   : > { %s4063_s30 = scalar_lea.vmem %s4903_s4, %s3209_s27  ;;  %221 = sbr.rel (%p218_p9) target bundleno = 25 (0x19), region = 40  ;;  %222 = vst [vmem:[#allocation2] sm:$0x1] (!%p218_p9), %v3997_v0  ;;  %223 = vst [vmem:[#allocation3] sm:$0x1] (!%p218_p9), %v3997_v0 }
  0x13   : > { %s207_s26 = scalar_lea.vmem %s4899_s0, %s3769_s23 }
  0x19 PF: > { %v4065_v1 = vld [vmem:[%s207_s26] sm:$0xf]  ;;  %v4067_v2 = vld [vmem:[%s207_s26 + $0x4] sm:$0x1]  ;;  %v4069_v3 = vld [vmem:[%s207_s26 + $0x8] sm:$0xf] }
  0x1a   : > { %v4071_v4 = vld [vmem:[%s207_s26 + $0xc] sm:$0x1]  ;;  %v4073_v5 = vld [vmem:[%s207_s26 + $0x10] sm:$0xf]  ;;  %v4075_v6 = vld [vmem:[%s207_s26 + $0x14] sm:$0x1] }
  0x1b   : > { %v4077_v7 = vld [vmem:[%s207_s26 + $0x18] sm:$0xf]  ;;  %v4079_v8 = vld [vmem:[%s207_s26 + $0x1c] sm:$0x1]  ;;  %v4081_v9 = vld [vmem:[%s207_s26 + $0x20] sm:$0xf] }
  0x1c   : > { %v4083_v10 = vld [vmem:[%s207_s26 + $0x24] sm:$0x1]  ;;  %v4085_v11 = vld [vmem:[%s207_s26 + $0x28] sm:$0xf]  ;;  %v4087_v12 = vld [vmem:[%s207_s26 + $0x2c] sm:$0x1] }
  0x1d   : > { %v4089_v13 = vld [vmem:[%s207_s26 + $0x30] sm:$0xf]  ;;  %v4091_v14 = vld [vmem:[%s207_s26 + $0x34] sm:$0x1]  ;;  %v4093_v15 = vld [vmem:[%s207_s26 + $0x38] sm:$0xf] }
  0x1e   : > { %v4095_v16 = vld [vmem:[%s207_s26 + $0x3c] sm:$0x1]  ;;  %v4097_v17 = vld [vmem:[%s207_s26 + $0x40] sm:$0xf]  ;;  %v4099_v18 = vld [vmem:[%s207_s26 + $0x44] sm:$0x1] }
  0x1f   : > { %v4101_v19 = vld [vmem:[%s207_s26 + $0x48] sm:$0xf]  ;;  %v4103_v20 = vld [vmem:[%s207_s26 + $0x4c] sm:$0x1]  ;;  %p2795_p10 = scmp.ne.s32.totalorder %s3983_s16, 0 }
  0x20   : > { %v3811_v21 = vld [vmem:[%s4900_s1 + $0x100] sm:$0xff] (!%p2795_p10)   ;;  %v4111_v22 = vcombine.low (!%p2795_p10), %v4069_v3, %v4071_v4  ;;  %v4121_v25 = vcombine.low (!%p2795_p10), %v4073_v5, %v4075_v6  ;;  %v3814_v27 = vld [vmem:[%s4900_s1 + $0x108] sm:$0xff] (!%p2795_p10)   ;;  %v3817_v33 = vld [vmem:[%s4900_s1 + $0x110] sm:$0xff] (!%p2795_p10)   ;;  %v4186_v53 = vcombine.low (!%p2795_p10), %v4077_v7, %v4079_v8  ;;  %v4193_v55 = vcombine.low (!%p2795_p10), %v4081_v9, %v4083_v10 }
  0x21   : > { %246 = sbr.rel (%p2795_p10) target bundleno = 394 (0x18a), region = 44  ;;  %v3812_v23 = vld [vmem:[%s4900_s1 + $0x140] sm:$0xff] (!%p2795_p10)   ;;  %3233 = vmatprep.subr.bf16.mxu0 (!%p2795_p10), %v3811_v21  ;;  %v3815_v29 = vld [vmem:[%s4900_s1 + $0x148] sm:$0xff] (!%p2795_p10)   ;;  %v3818_v35 = vld [vmem:[%s4900_s1 + $0x150] sm:$0xff] (!%p2795_p10)   ;;  %v4214_v21 = vcombine.low (!%p2795_p10), %v4085_v11, %v4087_v12 }
  0x22   : > { %v3813_v24 = vld [vmem:[%s4900_s1 + $0xc0] sm:$0xff] (!%p2795_p10)   ;;  %v295_v26 = vshrl.u32 (!%p2795_p10), %v4111_v22, 16  ;;  %3545 = vmatprep.subr.bf16.mxu1 (!%p2795_p10), %v3812_v23  ;;  %v297_v28 = vshll.u32 (!%p2795_p10), %v4111_v22, 16  ;;  %v302_v30 = vshrl.u32 (!%p2795_p10), %v4121_v25, 16  ;;  %v3816_v31 = vld [vmem:[%s4900_s1 + $0xc8] sm:$0xff] (!%p2795_p10)   ;;  %v304_v34 = vshll.u32 (!%p2795_p10), %v4121_v25, 16 }
  0x23   : > { %3234 = vmatpush3.bf16.msra.mxu0 (!%p2795_p10), %v3813_v24  ;;  %3546 = vmatpush3.bf16.msra.mxu1 (!%p2795_p10), %v3812_v23  ;;  %v344_v36 = vrot.slane (!%p2795_p10), %v4111_v22, 1  ;;  %v3819_v37 = vld [vmem:[%s4900_s1 + $0xd0] sm:$0xff] (!%p2795_p10)   ;;  %v3820_v40 = vld [vmem:[%s4900_s1 + $0x118] sm:$0xff] (!%p2795_p10)   ;;  %v345_v41 = vrot.slane (!%p2795_p10), %v4121_v25, 1  ;;  %v3823_v46 = vld [vmem:[%s4900_s1 + $0x120] sm:$0xff] (!%p2795_p10)   ;;  %v311_v57 = vshll.u32 (!%p2795_p10), %v4186_v53, 16 }
  0x24   : > { %3235 = vmatprep.subr.bf16.mxu0 (!%p2795_p10), %v3814_v27  ;;  %v299_v32 = vrot.slane (!%p2795_p10), %v297_v28, 1  ;;  %3547 = vmatprep.subr.bf16.mxu1 (!%p2795_p10), %v3815_v29  ;;  %v306_v39 = vrot.slane (!%p2795_p10), %v304_v34, 1  ;;  %v3821_v42 = vld [vmem:[%s4900_s1 + $0x158] sm:$0xff] (!%p2795_p10)   ;;  %v3824_v48 = vld [vmem:[%s4900_s1 + $0x160] sm:$0xff] (!%p2795_p10)   ;;  %v3826_v50 = vld [vmem:[%s4900_s1 + $0x128] sm:$0xff] (!%p2795_p10)   ;;  %v318_v58 = vshll.u32 (!%p2795_p10), %v4193_v55, 16 }
  0x25   : > { %v3822_v44 = vld [vmem:[%s4900_s1 + $0xd8] sm:$0xff] (!%p2795_p10)   ;;  %v2855_v45 = vcombine.low (!%p2795_p10), %v344_v36, %v345_v41  ;;  %v3825_v49 = vld [vmem:[%s4900_s1 + $0xe0] sm:$0xff] (!%p2795_p10)   ;;  %v3827_v51 = vld [vmem:[%s4900_s1 + $0x168] sm:$0xff] (!%p2795_p10)   ;;  %v346_v60 = vrot.slane (!%p2795_p10), %v4186_v53, 1  ;;  %v309_v62 = vshrl.u32 (!%p2795_p10), %v4186_v53, 16  ;;  %v316_v0 = vshrl.u32 (!%p2795_p10), %v4193_v55, 16 }
  0x26   : > { %v4146_v38 = vor.u32 (!%p2795_p10), %v299_v32, %v295_v26  ;;  %v4155_v43 = vor.u32 (!%p2795_p10), %v306_v39, %v302_v30  ;;  %v3828_v52 = vld [vmem:[%s4900_s1 + $0xe8] sm:$0xff] (!%p2795_p10)   ;;  %v3829_v54 = vld [vmem:[%s4900_s1 + $0x130] sm:$0xff] (!%p2795_p10)   ;;  %v3832_v61 = vld [vmem:[%s4900_s1 + $0x138] sm:$0xff] (!%p2795_p10)   ;;  %v313_v23 = vrot.slane (!%p2795_p10), %v311_v57, 1  ;;  %v320_v24 = vrot.slane (!%p2795_p10), %v318_v58, 1 }
  0x27   : > { %3236 = vmatpush3.bf16.msra.mxu0 (!%p2795_p10), %v3816_v31  ;;  %3548 = vmatpush3.bf16.msra.mxu1 (!%p2795_p10), %v3815_v29  ;;  %v3830_v56 = vld [vmem:[%s4900_s1 + $0x170] sm:$0xff] (!%p2795_p10)   ;;  %v3833_v63 = vld [vmem:[%s4900_s1 + $0x178] sm:$0xff] (!%p2795_p10)   ;;  %v4218_v26 = vcombine.low (!%p2795_p10), %v4089_v13, %v4091_v14  ;;  %v347_v28 = vrot.slane (!%p2795_p10), %v4193_v55, 1  ;;  %v3835_v29 = vld [vmem:[%s4900_s1 + $0x40] sm:$0xff] (!%p2795_p10)   ;;  %v323_v30 = vshrl.u32 (!%p2795_p10), %v4214_v21, 16  ;;  %v325_v32 = vshll.u32 (!%p2795_p10), %v4214_v21, 16 }
  0x28   : > { %3237 = vmatprep.subr.bf16.mxu0 %v3817_v33  ;;  %3549 = vmatprep.subr.bf16.mxu1 %v3818_v35  ;;  %v2854_v47 = vcombine.low %v4146_v38, %v4155_v43  ;;  %v3831_v59 = vld [vmem:[%s4900_s1 + $0xf0] sm:$0xff]   ;;  %v3834_v27 = vld [vmem:[%s4900_s1 + $0xf8] sm:$0xff]   ;;  %v3836_v31 = vld [vmem:[%s4900_s1 + $0x80] sm:$0xff]   ;;  %v4232_v33 = vor.u32 %v313_v23, %v309_v62  ;;  %v4234_v34 = vor.u32 %v320_v24, %v316_v0 }
  0x29   : > { %3561 = vmatprep.mubr.bf16.mxu1 %v2855_v45  ;;  %v2853_v39 = vcombine.low %v4069_v3, %v4073_v5  ;;  %v3838_v45 = vld [vmem:[%s4900_s1 + $0x48] sm:$0xff]   ;;  %v3842_v62 = vld [vmem:[%s4900_s1 + $0x90] sm:$0xff]   ;;  %v2892_v55 = vcombine.low %v4073_v5, %v4077_v7 }
  0x2a   : > { %679 = vmatprep.mubr.bf16.mxu0 %v2854_v47  ;;  %v3839_v47 = vld [vmem:[%s4900_s1 + $0x88] sm:$0xff]  }
  0x2b   : > { %3238 = vmatpush3.bf16.msra.mxu0 %v3819_v37  ;;  %3550 = vmatpush3.bf16.msra.mxu1 %v3818_v35  ;;  %v332_v35 = vshll.u32 %v4218_v26, 16  ;;  %v348_v37 = vrot.slane %v4214_v21, 1  ;;  %v3863_v25 = vld [vmem:[%s4900_s1 + $0x208] sm:$0xff]  }
  0x2c   : > { %3239 = vmatprep.subr.bf16.mxu0 %v3820_v40  ;;  %3551 = vmatprep.subr.bf16.mxu1 %v3821_v42  ;;  %v2858_v40 = vcombine.low %v346_v60, %v347_v28 }
  0x2d   : > { %v4388_v53 = vcombine.low %v347_v28, %v348_v37  ;;  %v3867_v28 = vld [vmem:[%s4900_s1 + $0x190] sm:$0xff]  }
  0x2f   : > { %3240 = vmatpush3.bf16.msra.mxu0 %v3822_v44  ;;  %3552 = vmatpush3.bf16.msra.mxu1 %v3821_v42  ;;  %v3837_v42 = vld [vmem:[%s4900_s1] sm:$0xff]   ;;  %v349_v44 = vrot.slane %v4218_v26, 1 }
  0x30   : > { %3241 = vmatprep.subr.bf16.mxu0 %v3823_v46  ;;  %3553 = vmatprep.subr.bf16.mxu1 %v3824_v48  ;;  %v330_v46 = vshrl.u32 %v4218_v26, 16 }
  0x33   : > { %3242 = vmatpush3.bf16.msra.mxu0 %v3825_v49  ;;  %3554 = vmatpush3.bf16.msra.mxu1 %v3824_v48  ;;  %v327_v48 = vrot.slane %v325_v32, 1  ;;  %v4257_v49 = vcombine.low %v4093_v15, %v4095_v16 }
  0x34   : > { %3243 = vmatprep.subr.bf16.mxu0 %v3826_v50  ;;  %3555 = vmatprep.subr.bf16.mxu1 %v3827_v51  ;;  %v4261_v50 = vcombine.low %v4097_v17, %v4099_v18 }
  0x35   : > { %v350_v57 = vrot.slane %v4257_v49, 1  ;;  %v4283_v0 = vor.u32 %v327_v48, %v323_v30  ;;  %v3844_v30 = vld [vmem:[%s4900_s1 + $0x58] sm:$0xff]  }
  0x36   : > { %v427_v58 = vrot.slane %v4261_v50, 1  ;;  %v423_v24 = vshll.u32 %v4261_v50, 16  ;;  %v3846_v48 = vld [vmem:[%s4900_s1 + $0x18] sm:$0xff]  }
  0x37   : > { %3244 = vmatpush3.bf16.msra.mxu0 %v3828_v52  ;;  %3556 = vmatpush3.bf16.msra.mxu1 %v3827_v51  ;;  %v3840_v51 = vld [vmem:[%s4900_s1 + $0x8] sm:$0xff]   ;;  %v2857_v52 = vcombine.low %v4232_v33, %v4234_v34  ;;  %v2900_v21 = vcombine.low %v349_v44, %v350_v57  ;;  %v2896_v26 = vcombine.low %v4234_v34, %v4283_v0 }
  0x38   : > { %3245 = vmatprep.subr.bf16.mxu0 %v3829_v54  ;;  %3557 = vmatprep.subr.bf16.mxu1 %v3830_v56  ;;  %v334_v54 = vrot.slane %v332_v35, 1  ;;  %v2864_v32 = vcombine.low %v350_v57, %v427_v58  ;;  %v337_v35 = vshrl.u32 %v4257_v49, 16  ;;  %v3872_v57 = vld [vmem:[%s4900_s1 + $0x220] sm:$0xff]   ;;  %v2895_v34 = vcombine.low %v4081_v9, %v4085_v11 }
  0x3a   : > { %v4285_v23 = vor.u32 %v334_v54, %v330_v46  ;;  %v425_v46 = vrot.slane %v423_v24, 1 }
  0x3b   : > { %3246 = vmatpush3.bf16.msra.mxu0 %v3831_v59  ;;  %3558 = vmatpush3.bf16.msra.mxu1 %v3830_v56  ;;  %v2861_v56 = vcombine.low %v348_v37, %v349_v44  ;;  %v3841_v59 = vld [vmem:[%s4900_s1 + $0x50] sm:$0xff]   ;;  %v3869_v37 = vld [vmem:[%s4900_s1 + $0x218] sm:$0xff]  }
  0x3c   : > { %3247 = vmatprep.subr.bf16.mxu0 %v3832_v61  ;;  %3559 = vmatprep.subr.bf16.mxu1 %v3833_v63  ;;  %v2796_v61 = vcombine.low %v4065_v1, %v4067_v2  ;;  %v3870_v44 = vld [vmem:[%s4900_s1 + $0x198] sm:$0xff]  }
  0x3e   : > { %v290_v54 = vshll.u32 %v2796_v61, 16 }
  0x3f   : > { %3248 = vmatpush3.bf16.msra.mxu0 %v3834_v27  ;;  %3560 = vmatpush3.bf16.msra.mxu1 %v3833_v63  ;;  %v339_v63 = vshll.u32 %v4257_v49, 16  ;;  %v343_v27 = vrot.slane %v2796_v61, 1  ;;  %v3871_v49 = vld [vmem:[%s4900_s1 + $0x1e0] sm:$0xff]  }
  0x40   : > { %3285 = vmatprep.subr.bf16.mxu0 %v3835_v29  ;;  %3569 = vmatprep.subr.bf16.mxu1 %v3836_v31  ;;  %v2856_v29 = vcombine.low %v4077_v7, %v4081_v9 }
  0x42   : > { %680 = vmatmul.mubr.bf16.vlgmr.msra.gmra.mrb[0].mxu0 %v2853_v39  ;;  %3562 = vmatmul.mubr.bf16.vlgmr.msra.gmra.mrb[0].mxu1 %v2858_v40  ;;  %v3845_v39 = vld [vmem:[%s4900_s1 + $0x98] sm:$0xff]   ;;  %v421_v40 = vshrl.u32 %v4261_v50, 16 }
  0x43   : > { %3286 = vmatpush3.bf16.msra.mxu0 %v3837_v42  ;;  %3570 = vmatpush3.bf16.msra.mxu1 %v3836_v31  ;;  %v3843_v31 = vld [vmem:[%s4900_s1 + $0x10] sm:$0xff]   ;;  %v2860_v42 = vcombine.low %v4283_v0, %v4285_v23  ;;  %v3873_v0 = vld [vmem:[%s4900_s1 + $0x1a0] sm:$0xff]  }
  0x44   : > { %3287 = vmatprep.subr.bf16.mxu0 %v3838_v45  ;;  %3571 = vmatprep.subr.bf16.mxu1 %v3839_v47  ;;  %v341_v45 = vrot.slane %v339_v63, 1  ;;  %v3851_v63 = vld [vmem:[%s4900_s1 + $0xa8] sm:$0xff]  }
  0x45   : > { %687 = vmatprep.mubr.bf16.mxu0 %v2857_v52  ;;  %3565 = vmatprep.mubr.bf16.mxu1 %v2861_v56  ;;  %v3848_v52 = vld [vmem:[%s4900_s1 + $0xa0] sm:$0xff]   ;;  %v2859_v56 = vcombine.low %v4085_v11, %v4089_v13 }
  0x46   : > { %v4318_v22 = vor.u32 %v341_v45, %v337_v35  ;;  %v2862_v35 = vcombine.low %v4093_v15, %v4097_v17 }
  0x47   : > { %3288 = vmatpush3.bf16.msra.mxu0 %v3840_v51  ;;  %3572 = vmatpush3.bf16.msra.mxu1 %v3839_v47  ;;  %v2891_v47 = vcombine.low %v343_v27, %v344_v36  ;;  %v3847_v51 = vld [vmem:[%s4900_s1 + $0x60] sm:$0xff]   ;;  %v4320_v36 = vor.u32 %v425_v46, %v421_v40  ;;  %v288_v27 = vshrl.u32 %v2796_v61, 16  ;;  %v3856_v40 = vld [vmem:[%s4900_s1 + $0x78] sm:$0xff]  }
  0x48   : > { %3289 = vmatprep.subr.bf16.mxu0 %v3841_v59  ;;  %3573 = vmatprep.subr.bf16.mxu1 %v3842_v62  ;;  %v3849_v59 = vld [vmem:[%s4900_s1 + $0x20] sm:$0xff]   ;;  %v3858_v46 = vld [vmem:[%s4900_s1 + $0x38] sm:$0xff]  }
  0x49   : > { %v2863_v24 = vcombine.low %v4318_v22, %v4320_v36 }
  0x4a   : > { %688 = vmatmul.mubr.bf16.gmra.mrb[4].mxu0 %v2856_v29  ;;  %3566 = vmatmul.mubr.bf16.gmra.mrb[4].mxu1 %v2864_v32  ;;  %v292_v29 = vrot.slane %v290_v54, 1  ;;  %v3853_v32 = vld [vmem:[%s4900_s1 + $0x70] sm:$0xff]   ;;  %v3862_v54 = vld [vmem:[%s4900_s1 + $0x1c8] sm:$0xff]  }
  0x4b   : > { %3290 = vmatpush3.bf16.msra.mxu0 %v3843_v31  ;;  %3574 = vmatpush3.bf16.msra.mxu1 %v3842_v62  ;;  %v3850_v62 = vld [vmem:[%s4900_s1 + $0x68] sm:$0xff]  }
  0x4c   : > { %3291 = vmatprep.subr.bf16.mxu0 %v3844_v30  ;;  %3575 = vmatprep.subr.bf16.mxu1 %v3845_v39  ;;  %v3852_v31 = vld [vmem:[%s4900_s1 + $0x28] sm:$0xff]   ;;  %v3854_v30 = vld [vmem:[%s4900_s1 + $0xb0] sm:$0xff]   ;;  %v293_v61 = vor.u32 %v292_v29, %v288_v27 }
  0x4d   : > { %695 = vmatprep.mubr.bf16.mxu0 %v2860_v42  ;;  %3585 = vmatprep.mubr.bf16.mxu1 %v2891_v47  ;;  %v3857_v42 = vld [vmem:[%s4900_s1 + $0xb8] sm:$0xff]   ;;  %v3859_v47 = vld [vmem:[%s4900_s1 + $0x1c0] sm:$0xff]   ;;  %v3877_v27 = vld [vmem:[%s4900_s1 + $0x1f0] sm:$0xff]  }
  0x4e   : > { %v2890_v45 = vcombine.low %v293_v61, %v4146_v38  ;;  %v2894_v38 = vcombine.low %v345_v41, %v346_v60  ;;  %v4382_v41 = vcombine.low %v4155_v43, %v4232_v33  ;;  %v3864_v60 = vld [vmem:[%s4900_s1 + $0x188] sm:$0xff]   ;;  %v3866_v43 = vld [vmem:[%s4900_s1 + $0x210] sm:$0xff]   ;;  %v3868_v33 = vld [vmem:[%s4900_s1 + $0x1d8] sm:$0xff]   ;;  %v2925_v61 = vcombine.low %v4101_v19, %v4103_v20 }
  0x4f   : > { %3292 = vmatpush3.bf16.msra.mxu0 %v3846_v48  ;;  %3576 = vmatpush3.bf16.msra.mxu1 %v3845_v39  ;;  %v3855_v39 = vld [vmem:[%s4900_s1 + $0x30] sm:$0xff]   ;;  %v3860_v48 = vld [vmem:[%s4900_s1 + $0x200] sm:$0xff]  }
  0x50   : > { %3293 = vmatprep.subr.bf16.mxu0 %v3847_v51  ;;  %3577 = vmatprep.subr.bf16.mxu1 %v3848_v52  ;;  %v2889_v51 = vcombine.low %v4065_v1, %v4069_v3  ;;  %v3878_v29 = vld [vmem:[%s4900_s1 + $0x230] sm:$0xff]  }
  0x52   : > { %696 = vmatmul.mubr.bf16.gmra.mrb[8].mxu0 %v2859_v56  ;;  %v3865_v56 = vld [vmem:[%s4900_s1 + $0x1d0] sm:$0xff]  }
  0x53   : > { %3294 = vmatpush3.bf16.msra.mxu0 %v3849_v59  ;;  %3578 = vmatpush3.bf16.msra.mxu1 %v3848_v52  ;;  %v3861_v52 = vld [vmem:[%s4900_s1 + $0x180] sm:$0xff]   ;;  %v3874_v59 = vld [vmem:[%s4900_s1 + $0x1e8] sm:$0xff]  }
  0x54   : > { %3295 = vmatprep.subr.bf16.mxu0 %v3850_v62  ;;  %3579 = vmatprep.subr.bf16.mxu1 %v3851_v63  ;;  %v3875_v62 = vld [vmem:[%s4900_s1 + $0x228] sm:$0xff]  }
  0x55   : > { %703 = vmatprep.mubr.bf16.mxu0 %v2863_v24  ;;  %v3876_v24 = vld [vmem:[%s4900_s1 + $0x1a8] sm:$0xff]  }
  0x57   : > { %3296 = vmatpush3.bf16.msra.mxu0 %v3852_v31  ;;  %3580 = vmatpush3.bf16.msra.mxu1 %v3851_v63  ;;  %v2899_v63 = vcombine.low %v4285_v23, %v4318_v22  ;;  %v2898_v23 = vcombine.low %v4089_v13, %v4093_v15  ;;  %v3879_v22 = vld [vmem:[%s4900_s1 + $0x1b0] sm:$0xff]   ;;  %v3880_v31 = vld [vmem:[%s4900_s1 + $0x1f8] sm:$0xff]  }
  0x58   : > { %3297 = vmatprep.subr.bf16.mxu0 %v3853_v32  ;;  %3581 = vmatprep.subr.bf16.mxu1 %v3854_v30  ;;  %v3881_v32 = vld [vmem:[%s4900_s1 + $0x238] sm:$0xff]  }
  0x5a   : > { %704 = vmatmul.mubr.bf16.gmra.mrb[12].mxu0 %v2862_v35  ;;  %v1087_v35 = vrot.slane %v2925_v61, 1 }
  0x5b   : > { %3298 = vmatpush3.bf16.msra.mxu0 %v3855_v39  ;;  %3582 = vmatpush3.bf16.msra.mxu1 %v3854_v30  ;;  %v3882_v30 = vld [vmem:[%s4900_s1 + $0x1b8] sm:$0xff]   ;;  %v1083_v39 = vshll.u32 %v2925_v61, 16 }
  0x5c   : > { %3299 = vmatprep.subr.bf16.mxu0 %v3856_v40  ;;  %3583 = vmatprep.subr.bf16.mxu1 %v3857_v42  ;;  %v2976_v40 = vcombine.low %v427_v58, %v1087_v35 }
  0x5d   : > { %977 = vmatprep.mubr.bf16.mxu0 %v2890_v45  ;;  %v1085_v45 = vrot.slane %v1083_v39, 1 }
  0x5f   : > { %3300 = vmatpush3.bf16.msra.mxu0 %v3858_v46  ;;  %3584 = vmatpush3.bf16.msra.mxu1 %v3857_v42  ;;  %v1081_v42 = vshrl.u32 %v2925_v61, 16 }
  0x60   : > { %3337 = vmatprep.subr.bf16.mxu0 %v3859_v47  ;;  %3593 = vmatprep.subr.bf16.mxu1 %v3860_v48 }
  0x61   : > { %v1086_v46 = vor.u32 %v1085_v45, %v1081_v42 }
  0x62   : > { %978 = vmatmul.mubr.bf16.vlgmr.msra.gmra.mrb[16].mxu0 %v2889_v51  ;;  %3586 = vmatmul.mubr.bf16.vlgmr.msra.gmra.mrb[0].mxu1 %v2894_v38 }
  0x63   : > { %3338 = vmatpush3.bf16.msra.mxu0 %v3861_v52  ;;  %3594 = vmatpush3.bf16.msra.mxu1 %v3860_v48  ;;  %v2975_v47 = vcombine.low %v4320_v36, %v1086_v46  ;;  %v2974_v48 = vcombine.low %v4097_v17, %v4101_v19 }
  0x64   : > { %3339 = vmatprep.subr.bf16.mxu0 %v3862_v54  ;;  %3595 = vmatprep.subr.bf16.mxu1 %v3863_v25 }
  0x65   : > { %985 = vmatprep.mubr.bf16.mxu0 %v4382_v41  ;;  %3589 = vmatprep.mubr.bf16.mxu1 %v4388_v53 }
  0x67   : > { %3340 = vmatpush3.bf16.msra.mxu0 %v3864_v60  ;;  %3596 = vmatpush3.bf16.msra.mxu1 %v3863_v25 }
  0x68   : > { %3341 = vmatprep.subr.bf16.mxu0 %v3865_v56  ;;  %3597 = vmatprep.subr.bf16.mxu1 %v3866_v43 }
  0x6a   : > { %986 = vmatmul.mubr.bf16.gmra.mrb[20].mxu0 %v2892_v55  ;;  %3590 = vmatmul.mubr.bf16.gmra.mrb[4].mxu1 %v2900_v21 }
  0x6b   : > { %3342 = vmatpush3.bf16.msra.mxu0 %v3867_v28  ;;  %3598 = vmatpush3.bf16.msra.mxu1 %v3866_v43 }
  0x6c   : > { %3343 = vmatprep.subr.bf16.mxu0 %v3868_v33  ;;  %3599 = vmatprep.subr.bf16.mxu1 %v3869_v37 }
  0x6d   : > { %993 = vmatprep.mubr.bf16.mxu0 %v2896_v26  ;;  %3609 = vmatprep.mubr.bf16.mxu1 %v2894_v38 }
  0x6f   : > { %3344 = vmatpush3.bf16.msra.mxu0 %v3870_v44  ;;  %3600 = vmatpush3.bf16.msra.mxu1 %v3869_v37 }
  0x70   : > { %3345 = vmatprep.subr.bf16.mxu0 %v3871_v49  ;;  %3601 = vmatprep.subr.bf16.mxu1 %v3872_v57 }
  0x72   : > { %994 = vmatmul.mubr.bf16.gmra.mrb[24].mxu0 %v2895_v34 }
  0x73   : > { %3346 = vmatpush3.bf16.msra.mxu0 %v3873_v0  ;;  %3602 = vmatpush3.bf16.msra.mxu1 %v3872_v57 }
  0x74   : > { %3347 = vmatprep.subr.bf16.mxu0 %v3874_v59  ;;  %3603 = vmatprep.subr.bf16.mxu1 %v3875_v62 }
  0x75   : > { %1001 = vmatprep.mubr.bf16.mxu0 %v2899_v63 }
  0x77   : > { %3348 = vmatpush3.bf16.msra.mxu0 %v3876_v24  ;;  %3604 = vmatpush3.bf16.msra.mxu1 %v3875_v62 }
  0x78   : > { %3349 = vmatprep.subr.bf16.mxu0 %v3877_v27  ;;  %3605 = vmatprep.subr.bf16.mxu1 %v3878_v29 }
  0x7a   : > { %1002 = vmatmul.mubr.bf16.gmra.mrb[28].mxu0 %v2898_v23 }
  0x7b   : > { %3350 = vmatpush3.bf16.msra.mxu0 %v3879_v22  ;;  %3606 = vmatpush3.bf16.msra.mxu1 %v3878_v29 }
  0x7c   : > { %3351 = vmatprep.subr.bf16.mxu0 %v3880_v31  ;;  %3607 = vmatprep.subr.bf16.mxu1 %v3881_v32 }
  0x7d   : > { %1321 = vmatprep.mubr.bf16.mxu0 %v4382_v41 }
  0x7f   : > { %3352 = vmatpush3.bf16.msra.mxu0 %v3882_v30  ;;  %3608 = vmatpush3.bf16.msra.mxu1 %v3881_v32 }
  0x82   : > { %1322 = vmatmul.mubr.bf16.vlgmr.msra.gmra.mrb[32].mxu0 %v2892_v55  ;;  %3610 = vmatmul.mubr.bf16.vlgmr.msra.gmra.mrb[0].mxu1 %v4388_v53 }
  0x83   : > { %1329 = vmatprep.mubr.bf16.mxu0 %v2896_v26  ;;  %3613 = vmatprep.mubr.bf16.mxu1 %v2900_v21 }
  0x8a   : > { %1330 = vmatmul.mubr.bf16.gmra.mrb[36].mxu0 %v2895_v34  ;;  %3614 = vmatmul.mubr.bf16.gmra.mrb[4].mxu1 %v2976_v40 }
  0x8b   : > { %1337 = vmatprep.mubr.bf16.mxu0 %v2899_v63 }
  0x92   : > { %1338 = vmatmul.mubr.bf16.gmra.mrb[40].mxu0 %v2898_v23 }
  0x93   : > { %1345 = vmatprep.mubr.bf16.mxu0 %v2975_v47 }
  0x9a   : > { %1346 = vmatmul.mubr.bf16.gmra.mrb[44].mxu0 %v2974_v48 }
 0x115   : > { %v3249_v38 = vpop.f32.mrb[0].mxu0 }
 0x116   : > { %v3250_v51 = vpop.f32.mrb[1].mxu0 }
 0x117   : > { %v3251_v52 = vadd.f32 %v3250_v51, %v3249_v38  ;;  %v3252_v54 = vpop.f32.mrb[2].mxu0 }
 0x118   : > { %v3253_v50 = vpop.f32.mrb[3].mxu0 }
 0x119   : > { %v3254_v58 = vadd.f32 %v3253_v50, %v3252_v54 }
 0x11d   : > { %v3255_v25 = vpop.f32.mrb[4].mxu0 }
 0x11e   : > { %v3256_v41 = vpop.f32.mrb[5].mxu0 }
 0x11f   : > { %v3257_v53 = vadd.f32 %v3256_v41, %v3255_v25  ;;  %v3258_v60 = vpop.f32.mrb[6].mxu0 }
 0x120   : > { %v3259_v56 = vpop.f32.mrb[7].mxu0 }
 0x121   : > { %v3260_v43 = vadd.f32 %v3259_v56, %v3258_v60 }
 0x125   : > { %v3261_v55 = vpop.f32.mrb[8].mxu0 }
 0x126   : > { %v3262_v36 = vpop.f32.mrb[9].mxu0 }
 0x127   : > { %v3263_v21 = vadd.f32 %v3262_v36, %v3261_v55  ;;  %v3264_v28 = vpop.f32.mrb[10].mxu0 }
 0x128   : > { %v3265_v33 = vpop.f32.mrb[11].mxu0 }
 0x129   : > { %v3266_v37 = vadd.f32 %v3265_v33, %v3264_v28 }
 0x12d   : > { %v3267_v26 = vpop.f32.mrb[12].mxu0 }
 0x12e   : > { %v3268_v44 = vpop.f32.mrb[13].mxu0 }
 0x12f   : > { %v3269_v49 = vadd.f32 %v3268_v44, %v3267_v26  ;;  %v3270_v57 = vpop.f32.mrb[14].mxu0 }
 0x130   : > { %v3271_v34 = vpop.f32.mrb[15].mxu0 }
 0x131   : > { %v3272_v0 = vadd.f32 %v3271_v34, %v3270_v57 }
 0x135   : > { %v3301_v59 = vpop.f32.mrb[16].mxu0 }
 0x136   : > { %v3302_v62 = vpop.f32.mrb[17].mxu0 }
 0x137   : > { %v3303_v63 = vadd.f32 %v3302_v62, %v3301_v59  ;;  %v3304_v24 = vpop.f32.mrb[18].mxu0 }
 0x138   : > { %v3305_v27 = vpop.f32.mrb[19].mxu0 }
 0x139   : > { %v3692_v29 = vadd.f32 %v3303_v63, %v3251_v52  ;;  %v3306_v23 = vadd.f32 %v3305_v27, %v3304_v24 }
 0x13b   : > { %v3698_v22 = vadd.f32 %v3306_v23, %v3254_v58 }
 0x13d   : > { %v3307_v31 = vpop.f32.mrb[20].mxu0 }
 0x13e   : > { %v3308_v32 = vpop.f32.mrb[21].mxu0 }
 0x13f   : > { %v3309_v30 = vadd.f32 %v3308_v32, %v3307_v31  ;;  %v3310_v61 = vpop.f32.mrb[22].mxu0 }
 0x140   : > { %v3311_v35 = vpop.f32.mrb[23].mxu0 }
 0x141   : > { %v3689_v39 = vadd.f32 %v3309_v30, %v3257_v53  ;;  %v3312_v40 = vadd.f32 %v3311_v35, %v3310_v61 }
 0x143   : > { %v3695_v42 = vadd.f32 %v3312_v40, %v3260_v43 }
 0x145   : > { %v3313_v45 = vpop.f32.mrb[24].mxu0 }
 0x146   : > { %v3314_v46 = vpop.f32.mrb[25].mxu0 }
 0x147   : > { %v3315_v47 = vadd.f32 %v3314_v46, %v3313_v45  ;;  %v3316_v48 = vpop.f32.mrb[26].mxu0 }
 0x148   : > { %v3317_v38 = vpop.f32.mrb[27].mxu0 }
 0x149   : > { %v3704_v51 = vadd.f32 %v3315_v47, %v3263_v21  ;;  %v3318_v54 = vadd.f32 %v3317_v38, %v3316_v48 }
 0x14b   : > { %v3710_v50 = vadd.f32 %v3318_v54, %v3266_v37 }
 0x14d   : > { %v3319_v25 = vpop.f32.mrb[28].mxu0 }
 0x14e   : > { %v3320_v52 = vpop.f32.mrb[29].mxu0 }
 0x14f   : > { %v3321_v41 = vadd.f32 %v3320_v52, %v3319_v25  ;;  %v3322_v58 = vpop.f32.mrb[30].mxu0 }
 0x150   : > { %v3323_v60 = vpop.f32.mrb[31].mxu0 }
 0x151   : > { %v3701_v56 = vadd.f32 %v3321_v41, %v3269_v49  ;;  %v3324_v55 = vadd.f32 %v3323_v60, %v3322_v58 }
 0x153   : > { %v4472_v36 = vadd.f32 %v3324_v55, %v3272_v0 }
 0x155   : > { %v3353_v53 = vpop.f32.mrb[32].mxu0  ;;  %v3611_v28 = vpop.f32.mrb[0].mxu1 }
 0x156   : > { %v3354_v43 = vpop.f32.mrb[33].mxu0  ;;  %v1388_v33 = vpop.f32.mrb[1].mxu1 }
 0x157   : > { %v3355_v26 = vadd.f32 %v3354_v43, %v3353_v53  ;;  %v3356_v44 = vpop.f32.mrb[34].mxu0  ;;  %v3612_v57 = vpop.f32.mrb[2].mxu1 }
 0x158   : > { %v3357_v34 = vpop.f32.mrb[35].mxu0  ;;  %v1391_v21 = vpop.f32.mrb[3].mxu1 }
 0x159   : > { %v3693_v59 = vadd.f32 %v3692_v29, %v3355_v26  ;;  %v3358_v37 = vadd.f32 %v3357_v34, %v3356_v44 }
 0x15b   : > { %v3694_v62 = vadd.f32 %v3693_v59, %v1388_v33  ;;  %v3699_v63 = vadd.f32 %v3698_v22, %v3358_v37 }
 0x15d   : > { %v3700_v24 = vadd.f32 %v3699_v63, %v1391_v21  ;;  %v3359_v27 = vpop.f32.mrb[36].mxu0  ;;  %v3615_v23 = vpop.f32.mrb[4].mxu1  ;;  %v1444_v0 = vmul.f32 %v3694_v62, %v3694_v62 }
 0x15e   : > { %v3360_v49 = vpop.f32.mrb[37].mxu0  ;;  %v1404_v31 = vpop.f32.mrb[5].mxu1 }
 0x15f   : > { %v1428_v32 = vadd.f32 %v3700_v24, %v3694_v62  ;;  %v1445_v30 = vmul.f32 %v3700_v24, %v3700_v24  ;;  %v3361_v61 = vadd.f32 %v3360_v49, %v3359_v27  ;;  %v3362_v35 = vpop.f32.mrb[38].mxu0  ;;  %v3616_v40 = vpop.f32.mrb[6].mxu1 }
 0x160   : > { %v3363_v45 = vpop.f32.mrb[39].mxu0  ;;  %v1407_v46 = vpop.f32.mrb[7].mxu1 }
 0x161   : > { %v1452_v47 = vadd.f32 %v1445_v30, %v1444_v0  ;;  %v3690_v48 = vadd.f32 %v3689_v39, %v3361_v61  ;;  %v3364_v38 = vadd.f32 %v3363_v45, %v3362_v35 }
 0x163   : > { %v3691_v29 = vadd.f32 %v3690_v48, %v3611_v28  ;;  %v3696_v54 = vadd.f32 %v3695_v42, %v3364_v38 }
 0x165   : > { %v1429_v25 = vadd.f32 %v3691_v29, %v1428_v32  ;;  %v1446_v22 = vmul.f32 %v3691_v29, %v3691_v29  ;;  %v3697_v52 = vadd.f32 %v3696_v54, %v3612_v57  ;;  %v3365_v41 = vpop.f32.mrb[40].mxu0 }
 0x166   : > { %v3366_v58 = vpop.f32.mrb[41].mxu0 }
 0x167   : > { %v1453_v60 = vadd.f32 %v1452_v47, %v1446_v22  ;;  %v1430_v55 = vadd.f32 %v3697_v52, %v1429_v25  ;;  %v1447_v53 = vmul.f32 %v3697_v52, %v3697_v52  ;;  %v3367_v43 = vadd.f32 %v3366_v58, %v3365_v41  ;;  %v3368_v33 = vpop.f32.mrb[42].mxu0 }
 0x168   : > { %v3369_v26 = vpop.f32.mrb[43].mxu0 }
 0x169   : > { %v1454_v44 = vadd.f32 %v1453_v60, %v1447_v53  ;;  %v3705_v34 = vadd.f32 %v3704_v51, %v3367_v43  ;;  %v3370_v21 = vadd.f32 %v3369_v26, %v3368_v33  ;;  %v1427_v53 = vld [vmem:[#allocation2] sm:$0x1] }
 0x16b   : > { %v3706_v59 = vadd.f32 %v3705_v34, %v1404_v31  ;;  %v3711_v37 = vadd.f32 %v3710_v50, %v3370_v21 }
 0x16d   : > { %v1431_v39 = vadd.f32 %v3706_v59, %v1430_v55  ;;  %v1448_v62 = vmul.f32 %v3706_v59, %v3706_v59  ;;  %v3712_v28 = vadd.f32 %v3711_v37, %v1407_v46  ;;  %v3371_v42 = vpop.f32.mrb[44].mxu0 }
 0x16e   : > { %v3372_v63 = vpop.f32.mrb[45].mxu0 }
 0x16f   : > { %v1455_v24 = vadd.f32 %v1454_v44, %v1448_v62  ;;  %v1432_v57 = vadd.f32 %v3712_v28, %v1431_v39  ;;  %v1449_v27 = vmul.f32 %v3712_v28, %v3712_v28  ;;  %v3373_v49 = vadd.f32 %v3372_v63, %v3371_v42  ;;  %v3374_v0 = vpop.f32.mrb[46].mxu0 }
 0x170   : > { %v3375_v32 = vpop.f32.mrb[47].mxu0 }
 0x171   : > { %v1456_v30 = vadd.f32 %v1455_v24, %v1449_v27  ;;  %v3702_v61 = vadd.f32 %v3701_v56, %v3373_v49  ;;  %v3376_v35 = vadd.f32 %v3375_v32, %v3374_v0 }
 0x173   : > { %v3703_v45 = vadd.f32 %v3702_v61, %v3615_v23  ;;  %v3708_v51 = vadd.f32 %v4472_v36, %v3376_v35  ;;  %v1443_v36 = vld [vmem:[#allocation3] sm:$0x1] }
 0x175   : > { %v1433_v47 = vadd.f32 %v3703_v45, %v1432_v57  ;;  %v1450_v31 = vmul.f32 %v3703_v45, %v3703_v45  ;;  %v3709_v50 = vadd.f32 %v3708_v51, %v3616_v40 }
 0x177   : > { %v1457_v48 = vadd.f32 %v1456_v30, %v1450_v31  ;;  %v1434_v38 = vadd.f32 %v3709_v50, %v1433_v47  ;;  %v1451_v46 = vmul.f32 %v3709_v50, %v3709_v50 }
 0x179   : > { %v1435_v29 = vrot.slane %v1434_v38, 4  ;;  %v1458_v54 = vadd.f32 %v1457_v48, %v1451_v46 }
 0x17b   : > { %v1436_v25 = vadd.f32 %v1435_v29, %v1434_v38  ;;  %v1459_v22 = vrot.slane %v1458_v54, 4 }
 0x17d   : > { %v1437_v52 = vrot.slane %v1436_v25, 2  ;;  %v1460_v41 = vadd.f32 %v1459_v22, %v1458_v54 }
 0x17f   : > { %v1438_v58 = vadd.f32 %v1437_v52, %v1436_v25  ;;  %v1461_v60 = vrot.slane %v1460_v41, 2 }
 0x181   : > { %v1439_v55 = vrot.slane %v1438_v58, 1  ;;  %v1462_v56 = vadd.f32 %v1461_v60, %v1460_v41 }
 0x183   : > { %v1440_v23 = vadd.f32 %v1439_v55, %v1438_v58  ;;  %v1463_v43 = vrot.slane %v1462_v56, 1 }
 0x185   : > { %v1441_v33 = vadd.f32 %v1440_v23, %v1427_v53  ;;  %v1464_v26 = vadd.f32 %v1463_v43, %v1462_v56 }
 0x187   : > { %1442 = vst [vmem:[#allocation2] sm:$0x1] %v1441_v33  ;;  %v1465_v40 = vadd.f32 %v1464_v26, %v1443_v36 }
 0x189   : > { %1466 = vst [vmem:[#allocation3] sm:$0x1] %v1465_v40 }
 0x18a PF: > { %p3001_p11 = scmp.ne.s32.totalorder %s3983_s16, 1 }
 0x18b   : > { %v3883_v44 = vld [vmem:[%s4900_s1 + $0x100] sm:$0xff] (!%p3001_p11)   ;;  %v4481_v34 = vcombine.low (!%p3001_p11), %v4069_v3, %v4071_v4  ;;  %v4491_v37 = vcombine.low (!%p3001_p11), %v4073_v5, %v4075_v6  ;;  %v3886_v4 = vld [vmem:[%s4900_s1 + $0x108] sm:$0xff] (!%p3001_p11)   ;;  %v3889_v24 = vld [vmem:[%s4900_s1 + $0x110] sm:$0xff] (!%p3001_p11)   ;;  %v4556_v22 = vcombine.low (!%p3001_p11), %v4077_v7, %v4079_v8  ;;  %v4563_v41 = vcombine.low (!%p3001_p11), %v4081_v9, %v4083_v10 }
 0x18c   : > { %1470 = sbr.rel (%p3001_p11) target bundleno = 747 (0x2eb), region = 48  ;;  %v3884_v21 = vld [vmem:[%s4900_s1 + $0x140] sm:$0xff] (!%p3001_p11)   ;;  %3389 = vmatprep.subr.bf16.mxu0 (!%p3001_p11), %v3883_v44  ;;  %v3887_v28 = vld [vmem:[%s4900_s1 + $0x148] sm:$0xff] (!%p3001_p11)   ;;  %v3890_v27 = vld [vmem:[%s4900_s1 + $0x150] sm:$0xff] (!%p3001_p11)   ;;  %v4584_v36 = vcombine.low (!%p3001_p11), %v4085_v11, %v4087_v12  ;;  %v4588_v40 = vcombine.low (!%p3001_p11), %v4089_v13, %v4091_v14 }
 0x18d   : > { %v3885_v59 = vld [vmem:[%s4900_s1 + $0xc0] sm:$0xff] (!%p3001_p11)   ;;  %v1533_v39 = vshrl.u32 (!%p3001_p11), %v4481_v34, 16  ;;  %3617 = vmatprep.subr.bf16.mxu1 (!%p3001_p11), %v3884_v21  ;;  %v1535_v62 = vshll.u32 (!%p3001_p11), %v4481_v34, 16  ;;  %v1540_v42 = vshrl.u32 (!%p3001_p11), %v4491_v37, 16  ;;  %v3888_v6 = vld [vmem:[%s4900_s1 + $0xc8] sm:$0xff] (!%p3001_p11)   ;;  %v1542_v57 = vshll.u32 (!%p3001_p11), %v4491_v37, 16 }
 0x18e   : > { %3390 = vmatpush3.bf16.msra.mxu0 (!%p3001_p11), %v3885_v59  ;;  %3618 = vmatpush3.bf16.msra.mxu1 (!%p3001_p11), %v3884_v21  ;;  %v1582_v49 = vrot.slane (!%p3001_p11), %v4481_v34, 1  ;;  %v3891_v0 = vld [vmem:[%s4900_s1 + $0xd0] sm:$0xff] (!%p3001_p11)   ;;  %v3892_v61 = vld [vmem:[%s4900_s1 + $0x118] sm:$0xff] (!%p3001_p11)   ;;  %v1583_v35 = vrot.slane (!%p3001_p11), %v4491_v37, 1  ;;  %v3895_v50 = vld [vmem:[%s4900_s1 + $0x120] sm:$0xff] (!%p3001_p11)   ;;  %v1549_v60 = vshll.u32 (!%p3001_p11), %v4556_v22, 16 }
 0x18f   : > { %3391 = vmatprep.subr.bf16.mxu0 (!%p3001_p11), %v3886_v4  ;;  %v1537_v63 = vrot.slane (!%p3001_p11), %v1535_v62, 1  ;;  %3619 = vmatprep.subr.bf16.mxu1 (!%p3001_p11), %v3887_v28  ;;  %v1544_v30 = vrot.slane (!%p3001_p11), %v1542_v57, 1  ;;  %v3893_v45 = vld [vmem:[%s4900_s1 + $0x158] sm:$0xff] (!%p3001_p11)   ;;  %v3896_v38 = vld [vmem:[%s4900_s1 + $0x160] sm:$0xff] (!%p3001_p11)   ;;  %v3898_v29 = vld [vmem:[%s4900_s1 + $0x128] sm:$0xff] (!%p3001_p11)   ;;  %v1556_v8 = vshll.u32 (!%p3001_p11), %v4563_v41, 16 }
 0x190   : > { %v3894_v47 = vld [vmem:[%s4900_s1 + $0xd8] sm:$0xff] (!%p3001_p11)   ;;  %v3061_v31 = vcombine.low (!%p3001_p11), %v1582_v49, %v1583_v35  ;;  %v3897_v46 = vld [vmem:[%s4900_s1 + $0xe0] sm:$0xff] (!%p3001_p11)   ;;  %v3899_v54 = vld [vmem:[%s4900_s1 + $0x168] sm:$0xff] (!%p3001_p11)   ;;  %v1584_v56 = vrot.slane (!%p3001_p11), %v4556_v22, 1  ;;  %v1547_v53 = vshrl.u32 (!%p3001_p11), %v4556_v22, 16  ;;  %v1554_v43 = vshrl.u32 (!%p3001_p11), %v4563_v41, 16 }
 0x191   : > { %v4516_v32 = vor.u32 (!%p3001_p11), %v1537_v63, %v1533_v39  ;;  %v4525_v51 = vor.u32 (!%p3001_p11), %v1544_v30, %v1540_v42  ;;  %v3900_v25 = vld [vmem:[%s4900_s1 + $0xe8] sm:$0xff] (!%p3001_p11)   ;;  %v3901_v52 = vld [vmem:[%s4900_s1 + $0x130] sm:$0xff] (!%p3001_p11)   ;;  %v3904_v10 = vld [vmem:[%s4900_s1 + $0x138] sm:$0xff] (!%p3001_p11)   ;;  %v1551_v33 = vrot.slane (!%p3001_p11), %v1549_v60, 1  ;;  %v1558_v26 = vrot.slane (!%p3001_p11), %v1556_v8, 1 }
 0x192   : > { %3392 = vmatpush3.bf16.msra.mxu0 (!%p3001_p11), %v3888_v6  ;;  %3620 = vmatpush3.bf16.msra.mxu1 (!%p3001_p11), %v3887_v28  ;;  %v3902_v58 = vld [vmem:[%s4900_s1 + $0x170] sm:$0xff] (!%p3001_p11)   ;;  %v3905_v23 = vld [vmem:[%s4900_s1 + $0x178] sm:$0xff] (!%p3001_p11)   ;;  %v1585_v21 = vrot.slane (!%p3001_p11), %v4563_v41, 1  ;;  %v3907_v59 = vld [vmem:[%s4900_s1 + $0x40] sm:$0xff] (!%p3001_p11)   ;;  %v1561_v12 = vshrl.u32 (!%p3001_p11), %v4584_v36, 16  ;;  %v1563_v39 = vshll.u32 (!%p3001_p11), %v4584_v36, 16  ;;  %v3059_v6 = vcombine.low (!%p3001_p11), %v4069_v3, %v4073_v5 }
 0x193   : > { %3393 = vmatprep.subr.bf16.mxu0 %v3889_v24  ;;  %3621 = vmatprep.subr.bf16.mxu1 %v3890_v27  ;;  %v3060_v48 = vcombine.low %v4516_v32, %v4525_v51  ;;  %v3903_v55 = vld [vmem:[%s4900_s1 + $0xf0] sm:$0xff]   ;;  %v3906_v44 = vld [vmem:[%s4900_s1 + $0xf8] sm:$0xff]   ;;  %v3908_v14 = vld [vmem:[%s4900_s1 + $0x80] sm:$0xff]   ;;  %v4602_v4 = vor.u32 %v1551_v33, %v1547_v53  ;;  %v4604_v62 = vor.u32 %v1558_v26, %v1554_v43  ;;  %v1570_v28 = vshll.u32 %v4588_v40, 16 }
 0x194   : > { %3633 = vmatprep.mubr.bf16.mxu1 %v3061_v31  ;;  %v1586_v42 = vrot.slane %v4584_v36, 1  ;;  %v3064_v63 = vcombine.low %v1584_v56, %v1585_v21  ;;  %v3909_v24 = vld [vmem:[%s4900_s1] sm:$0xff]   ;;  %v1587_v57 = vrot.slane %v4588_v40, 1  ;;  %v3911_v30 = vld [vmem:[%s4900_s1 + $0x88] sm:$0xff]   ;;  %v3916_v53 = vld [vmem:[%s4900_s1 + $0x58] sm:$0xff]   ;;  %v3098_v41 = vcombine.low %v4073_v5, %v4077_v7 }
 0x195   : > { %1917 = vmatprep.mubr.bf16.mxu0 %v3060_v48  ;;  %v3912_v31 = vld [vmem:[%s4900_s1 + $0x8] sm:$0xff]   ;;  %v1572_v48 = vrot.slane %v1570_v28, 1  ;;  %v3917_v43 = vld [vmem:[%s4900_s1 + $0x98] sm:$0xff]   ;;  %v3920_v28 = vld [vmem:[%s4900_s1 + $0xa0] sm:$0xff]  }
 0x196   : > { %3394 = vmatpush3.bf16.msra.mxu0 %v3891_v0  ;;  %3622 = vmatpush3.bf16.msra.mxu1 %v3890_v27  ;;  %v3910_v27 = vld [vmem:[%s4900_s1 + $0x48] sm:$0xff]   ;;  %v1568_v0 = vshrl.u32 %v4588_v40, 16  ;;  %v3937_v22 = vld [vmem:[%s4900_s1 + $0x1d0] sm:$0xff]   ;;  %v3941_v5 = vld [vmem:[%s4900_s1 + $0x218] sm:$0xff]  }
 0x197   : > { %3395 = vmatprep.subr.bf16.mxu0 %v3892_v61  ;;  %3623 = vmatprep.subr.bf16.mxu1 %v3893_v45  ;;  %v1565_v61 = vrot.slane %v1563_v39, 1  ;;  %v3919_v39 = vld [vmem:[%s4900_s1 + $0x60] sm:$0xff]   ;;  %v3935_v37 = vld [vmem:[%s4900_s1 + $0x208] sm:$0xff]   ;;  %v3939_v36 = vld [vmem:[%s4900_s1 + $0x190] sm:$0xff]  }
 0x198   : > { %v3942_v40 = vld [vmem:[%s4900_s1 + $0x198] sm:$0xff]  }
 0x19a   : > { %3396 = vmatpush3.bf16.msra.mxu0 %v3894_v47  ;;  %3624 = vmatpush3.bf16.msra.mxu1 %v3893_v45  ;;  %v4627_v45 = vcombine.low %v4093_v15, %v4095_v16  ;;  %v4631_v47 = vcombine.low %v4097_v17, %v4099_v18 }
 0x19b   : > { %3397 = vmatprep.subr.bf16.mxu0 %v3895_v50  ;;  %3625 = vmatprep.subr.bf16.mxu1 %v3896_v38  ;;  %v3063_v50 = vcombine.low %v4602_v4, %v4604_v62 }
 0x19c   : > { %v1588_v16 = vrot.slane %v4627_v45, 1  ;;  %v1665_v18 = vrot.slane %v4631_v47, 1  ;;  %v1661_v60 = vshll.u32 %v4631_v47, 16  ;;  %v1659_v33 = vshrl.u32 %v4631_v47, 16 }
 0x19e   : > { %3398 = vmatpush3.bf16.msra.mxu0 %v3897_v46  ;;  %3626 = vmatpush3.bf16.msra.mxu1 %v3896_v38  ;;  %v3067_v38 = vcombine.low %v1586_v42, %v1587_v57  ;;  %v3913_v46 = vld [vmem:[%s4900_s1 + $0x50] sm:$0xff]  }
 0x19f   : > { %3399 = vmatprep.subr.bf16.mxu0 %v3898_v29  ;;  %3627 = vmatprep.subr.bf16.mxu1 %v3899_v54  ;;  %v3002_v29 = vcombine.low %v4065_v1, %v4067_v2  ;;  %v3062_v2 = vcombine.low %v4077_v7, %v4081_v9 }
 0x1a1   : > { %v1581_v8 = vrot.slane %v3002_v29, 1 }
 0x1a2   : > { %3400 = vmatpush3.bf16.msra.mxu0 %v3900_v25  ;;  %3628 = vmatpush3.bf16.msra.mxu1 %v3899_v54  ;;  %v3914_v54 = vld [vmem:[%s4900_s1 + $0x90] sm:$0xff]   ;;  %v1577_v25 = vshll.u32 %v4627_v45, 16 }
 0x1a3   : > { %3401 = vmatprep.subr.bf16.mxu0 %v3901_v52  ;;  %3629 = vmatprep.subr.bf16.mxu1 %v3902_v58  ;;  %v4653_v52 = vor.u32 %v1565_v61, %v1561_v12  ;;  %v3097_v12 = vcombine.low %v1581_v8, %v1582_v49  ;;  %v1526_v61 = vshrl.u32 %v3002_v29, 16 }
 0x1a5   : > { %v3102_v7 = vcombine.low %v4604_v62, %v4653_v52  ;;  %v3101_v62 = vcombine.low %v4081_v9, %v4085_v11  ;;  %v3948_v9 = vld [vmem:[%s4900_s1 + $0x1a8] sm:$0xff]  }
 0x1a6   : > { %3402 = vmatpush3.bf16.msra.mxu0 %v3903_v55  ;;  %3630 = vmatpush3.bf16.msra.mxu1 %v3902_v58  ;;  %v4655_v58 = vor.u32 %v1572_v48, %v1568_v0  ;;  %v3915_v55 = vld [vmem:[%s4900_s1 + $0x10] sm:$0xff]   ;;  %v3923_v0 = vld [vmem:[%s4900_s1 + $0xa8] sm:$0xff]  }
 0x1a7   : > { %3403 = vmatprep.subr.bf16.mxu0 %v3904_v10  ;;  %3631 = vmatprep.subr.bf16.mxu1 %v3905_v23  ;;  %v3070_v10 = vcombine.low %v1588_v16, %v1665_v18  ;;  %v3925_v48 = vld [vmem:[%s4900_s1 + $0x70] sm:$0xff]  }
 0x1a8   : > { %v3066_v26 = vcombine.low %v4653_v52, %v4655_v58 }
 0x1aa   : > { %3404 = vmatpush3.bf16.msra.mxu0 %v3906_v44  ;;  %3632 = vmatpush3.bf16.msra.mxu1 %v3905_v23  ;;  %v1575_v23 = vshrl.u32 %v4627_v45, 16  ;;  %v1579_v44 = vrot.slane %v1577_v25, 1  ;;  %v3928_v25 = vld [vmem:[%s4900_s1 + $0x78] sm:$0xff]   ;;  %v3946_v45 = vld [vmem:[%s4900_s1 + $0x1e8] sm:$0xff]  }
 0x1ab   : > { %3441 = vmatprep.subr.bf16.mxu0 %v3907_v59  ;;  %3641 = vmatprep.subr.bf16.mxu1 %v3908_v14  ;;  %v1663_v59 = vrot.slane %v1661_v60, 1  ;;  %v3929_v60 = vld [vmem:[%s4900_s1 + $0xb8] sm:$0xff]  }
 0x1ac   : > { %v4688_v34 = vor.u32 %v1579_v44, %v1575_v23  ;;  %v3933_v23 = vld [vmem:[%s4900_s1 + $0x180] sm:$0xff]   ;;  %v3952_v44 = vld [vmem:[%s4900_s1 + $0x1f8] sm:$0xff]  }
 0x1ad   : > { %1918 = vmatmul.mubr.bf16.vlgmr.msra.gmra.mrb[0].mxu0 %v3059_v6  ;;  %3634 = vmatmul.mubr.bf16.vlgmr.msra.gmra.mrb[0].mxu1 %v3064_v63  ;;  %v4690_v49 = vor.u32 %v1663_v59, %v1659_v33  ;;  %v1528_v6 = vshll.u32 %v3002_v29, 16  ;;  %v3065_v63 = vcombine.low %v4085_v11, %v4089_v13  ;;  %v3068_v29 = vcombine.low %v4093_v15, %v4097_v17  ;;  %v3949_v11 = vld [vmem:[%s4900_s1 + $0x1f0] sm:$0xff]   ;;  %v3953_v59 = vld [vmem:[%s4900_s1 + $0x238] sm:$0xff]  }
 0x1ae   : > { %3442 = vmatpush3.bf16.msra.mxu0 %v3909_v24  ;;  %3642 = vmatpush3.bf16.msra.mxu1 %v3908_v14  ;;  %v3918_v14 = vld [vmem:[%s4900_s1 + $0x18] sm:$0xff]   ;;  %v3921_v24 = vld [vmem:[%s4900_s1 + $0x20] sm:$0xff]   ;;  %v3105_v52 = vcombine.low %v4655_v58, %v4688_v34  ;;  %v3950_v33 = vld [vmem:[%s4900_s1 + $0x230] sm:$0xff]   ;;  %v3104_v58 = vcombine.low %v4089_v13, %v4093_v15  ;;  %v3131_v15 = vcombine.low %v4101_v19, %v4103_v20 }
 0x1af   : > { %3443 = vmatprep.subr.bf16.mxu0 %v3910_v27  ;;  %3643 = vmatprep.subr.bf16.mxu1 %v3911_v30  ;;  %v3922_v27 = vld [vmem:[%s4900_s1 + $0x68] sm:$0xff]   ;;  %v3954_v13 = vld [vmem:[%s4900_s1 + $0x1b8] sm:$0xff]  }
 0x1b0   : > { %1925 = vmatprep.mubr.bf16.mxu0 %v3063_v50  ;;  %3637 = vmatprep.mubr.bf16.mxu1 %v3067_v38  ;;  %v3924_v50 = vld [vmem:[%s4900_s1 + $0x28] sm:$0xff]   ;;  %v3926_v38 = vld [vmem:[%s4900_s1 + $0xb0] sm:$0xff]  }
 0x1b2   : > { %3444 = vmatpush3.bf16.msra.mxu0 %v3912_v31  ;;  %3644 = vmatpush3.bf16.msra.mxu1 %v3911_v30  ;;  %v3069_v30 = vcombine.low %v4688_v34, %v4690_v49  ;;  %v1530_v31 = vrot.slane %v1528_v6, 1 }
 0x1b3   : > { %3445 = vmatprep.subr.bf16.mxu0 %v3913_v46  ;;  %3645 = vmatprep.subr.bf16.mxu1 %v3914_v54 }
 0x1b4   : > { %v1531_v46 = vor.u32 %v1530_v31, %v1526_v61 }
 0x1b5   : > { %1926 = vmatmul.mubr.bf16.gmra.mrb[4].mxu0 %v3062_v2  ;;  %3638 = vmatmul.mubr.bf16.gmra.mrb[4].mxu1 %v3070_v10  ;;  %v3930_v2 = vld [vmem:[%s4900_s1 + $0x38] sm:$0xff]   ;;  %v3932_v10 = vld [vmem:[%s4900_s1 + $0x200] sm:$0xff]  }
 0x1b6   : > { %3446 = vmatpush3.bf16.msra.mxu0 %v3915_v55  ;;  %3646 = vmatpush3.bf16.msra.mxu1 %v3914_v54  ;;  %v3927_v54 = vld [vmem:[%s4900_s1 + $0x30] sm:$0xff]   ;;  %v3096_v8 = vcombine.low %v1531_v46, %v4516_v32  ;;  %v3931_v55 = vld [vmem:[%s4900_s1 + $0x1c0] sm:$0xff]   ;;  %v3100_v32 = vcombine.low %v1583_v35, %v1584_v56  ;;  %v4752_v35 = vcombine.low %v4525_v51, %v4602_v4 }
 0x1b7   : > { %3447 = vmatprep.subr.bf16.mxu0 %v3916_v53  ;;  %3647 = vmatprep.subr.bf16.mxu1 %v3917_v43  ;;  %v3095_v53 = vcombine.low %v4065_v1, %v4069_v3  ;;  %v4758_v1 = vcombine.low %v1585_v21, %v1586_v42  ;;  %v3936_v3 = vld [vmem:[%s4900_s1 + $0x188] sm:$0xff]   ;;  %v3938_v51 = vld [vmem:[%s4900_s1 + $0x210] sm:$0xff]   ;;  %v3106_v56 = vcombine.low %v1587_v57, %v1588_v16  ;;  %v3940_v21 = vld [vmem:[%s4900_s1 + $0x1d8] sm:$0xff]  }
 0x1b8   : > { %1933 = vmatprep.mubr.bf16.mxu0 %v3066_v26  ;;  %3657 = vmatprep.mubr.bf16.mxu1 %v3097_v12  ;;  %v3943_v4 = vld [vmem:[%s4900_s1 + $0x1e0] sm:$0xff]   ;;  %v3947_v16 = vld [vmem:[%s4900_s1 + $0x228] sm:$0xff]   ;;  %v3951_v26 = vld [vmem:[%s4900_s1 + $0x1b0] sm:$0xff]   ;;  %v2325_v12 = vrot.slane %v3131_v15, 1 }
 0x1b9   : > { %v3944_v42 = vld [vmem:[%s4900_s1 + $0x220] sm:$0xff]  }
 0x1ba   : > { %3448 = vmatpush3.bf16.msra.mxu0 %v3918_v14  ;;  %3648 = vmatpush3.bf16.msra.mxu1 %v3917_v43  ;;  %v3934_v43 = vld [vmem:[%s4900_s1 + $0x1c8] sm:$0xff]   ;;  %v3945_v57 = vld [vmem:[%s4900_s1 + $0x1a0] sm:$0xff]   ;;  %v2321_v14 = vshll.u32 %v3131_v15, 16 }
 0x1bb   : > { %3449 = vmatprep.subr.bf16.mxu0 %v3919_v39  ;;  %3649 = vmatprep.subr.bf16.mxu1 %v3920_v28  ;;  %v3182_v39 = vcombine.low %v1665_v18, %v2325_v12 }
 0x1bc   : > { %v2323_v34 = vrot.slane %v2321_v14, 1  ;;  %v1478_v14 = vld [vmem:[%s4901_s2] sm:$0x1] }
 0x1bd   : > { %1934 = vmatmul.mubr.bf16.gmra.mrb[8].mxu0 %v3065_v63  ;;  %v3180_v63 = vcombine.low %v4097_v17, %v4101_v19  ;;  %v1471_v17 = vld [vmem:[#allocation2] sm:$0x1] }
 0x1be   : > { %3450 = vmatpush3.bf16.msra.mxu0 %v3921_v24  ;;  %3650 = vmatpush3.bf16.msra.mxu1 %v3920_v28  ;;  %v2319_v28 = vshrl.u32 %v3131_v15, 16 }
 0x1bf   : > { %3451 = vmatprep.subr.bf16.mxu0 %v3922_v27  ;;  %3651 = vmatprep.subr.bf16.mxu1 %v3923_v0 }
 0x1c0   : > { %1941 = vmatprep.mubr.bf16.mxu0 %v3069_v30  ;;  %v2324_v6 = vor.u32 %v2323_v34, %v2319_v28  ;;  %v2666_v28 = vlaneseq }
 0x1c2   : > { %3452 = vmatpush3.bf16.msra.mxu0 %v3924_v50  ;;  %3652 = vmatpush3.bf16.msra.mxu1 %v3923_v0  ;;  %v3181_v20 = vcombine.low %v4690_v49, %v2324_v6 }
 0x1c3   : > { %3453 = vmatprep.subr.bf16.mxu0 %v3925_v48  ;;  %3653 = vmatprep.subr.bf16.mxu1 %v3926_v38 }
 0x1c5   : > { %1942 = vmatmul.mubr.bf16.gmra.mrb[12].mxu0 %v3068_v29 }
 0x1c6   : > { %3454 = vmatpush3.bf16.msra.mxu0 %v3927_v54  ;;  %3654 = vmatpush3.bf16.msra.mxu1 %v3926_v38 }
 0x1c7   : > { %3455 = vmatprep.subr.bf16.mxu0 %v3928_v25  ;;  %3655 = vmatprep.subr.bf16.mxu1 %v3929_v60 }
 0x1c8   : > { %2215 = vmatprep.mubr.bf16.mxu0 %v3096_v8 }
 0x1ca   : > { %3456 = vmatpush3.bf16.msra.mxu0 %v3930_v2  ;;  %3656 = vmatpush3.bf16.msra.mxu1 %v3929_v60 }
 0x1cb   : > { %3493 = vmatprep.subr.bf16.mxu0 %v3931_v55  ;;  %3665 = vmatprep.subr.bf16.mxu1 %v3932_v10  ;;  %v1472_v55 = vmul.f32 0.0078125, %v1471_v17 }
 0x1cd   : > { %2216 = vmatmul.mubr.bf16.vlgmr.msra.gmra.mrb[16].mxu0 %v3095_v53  ;;  %3658 = vmatmul.mubr.bf16.vlgmr.msra.gmra.mrb[0].mxu1 %v3100_v32  ;;  %v1473_v53 = vld [vmem:[#allocation3] sm:$0x1] }
 0x1ce   : > { %3494 = vmatpush3.bf16.msra.mxu0 %v3933_v23  ;;  %3666 = vmatpush3.bf16.msra.mxu1 %v3932_v10 }
 0x1cf   : > { %3495 = vmatprep.subr.bf16.mxu0 %v3934_v43  ;;  %3667 = vmatprep.subr.bf16.mxu1 %v3935_v37 }
 0x1d0   : > { %2223 = vmatprep.mubr.bf16.mxu0 %v4752_v35  ;;  %3661 = vmatprep.mubr.bf16.mxu1 %v4758_v1 }
 0x1d2   : > { %3496 = vmatpush3.bf16.msra.mxu0 %v3936_v3  ;;  %3668 = vmatpush3.bf16.msra.mxu1 %v3935_v37  ;;  %v1474_v37 = vmul.f32 0.0078125, %v1473_v53 }
 0x1d3   : > { %3497 = vmatprep.subr.bf16.mxu0 %v3937_v22  ;;  %3669 = vmatprep.subr.bf16.mxu1 %v3938_v51 }
 0x1d5   : > { %2224 = vmatmul.mubr.bf16.gmra.mrb[20].mxu0 %v3098_v41  ;;  %3662 = vmatmul.mubr.bf16.gmra.mrb[4].mxu1 %v3106_v56 }
 0x1d6   : > { %3498 = vmatpush3.bf16.msra.mxu0 %v3939_v36  ;;  %3670 = vmatpush3.bf16.msra.mxu1 %v3938_v51 }
 0x1d7   : > { %3499 = vmatprep.subr.bf16.mxu0 %v3940_v21  ;;  %3671 = vmatprep.subr.bf16.mxu1 %v3941_v5 }
 0x1d8   : > { %2231 = vmatprep.mubr.bf16.mxu0 %v3102_v7  ;;  %3681 = vmatprep.mubr.bf16.mxu1 %v3100_v32 }
 0x1da   : > { %3500 = vmatpush3.bf16.msra.mxu0 %v3942_v40  ;;  %3672 = vmatpush3.bf16.msra.mxu1 %v3941_v5 }
 0x1db   : > { %3501 = vmatprep.subr.bf16.mxu0 %v3943_v4  ;;  %3673 = vmatprep.subr.bf16.mxu1 %v3944_v42 }
 0x1dd   : > { %2232 = vmatmul.mubr.bf16.gmra.mrb[24].mxu0 %v3101_v62 }
 0x1de   : > { %3502 = vmatpush3.bf16.msra.mxu0 %v3945_v57  ;;  %3674 = vmatpush3.bf16.msra.mxu1 %v3944_v42 }
 0x1df   : > { %3503 = vmatprep.subr.bf16.mxu0 %v3946_v45  ;;  %3675 = vmatprep.subr.bf16.mxu1 %v3947_v16 }
 0x1e0   : > { %2239 = vmatprep.mubr.bf16.mxu0 %v3105_v52 }
 0x1e2   : > { %3504 = vmatpush3.bf16.msra.mxu0 %v3948_v9  ;;  %3676 = vmatpush3.bf16.msra.mxu1 %v3947_v16 }
 0x1e3   : > { %3505 = vmatprep.subr.bf16.mxu0 %v3949_v11  ;;  %3677 = vmatprep.subr.bf16.mxu1 %v3950_v33 }
 0x1e5   : > { %2240 = vmatmul.mubr.bf16.gmra.mrb[28].mxu0 %v3104_v58 }
 0x1e6   : > { %3506 = vmatpush3.bf16.msra.mxu0 %v3951_v26  ;;  %3678 = vmatpush3.bf16.msra.mxu1 %v3950_v33 }
 0x1e7   : > { %3507 = vmatprep.subr.bf16.mxu0 %v3952_v44  ;;  %3679 = vmatprep.subr.bf16.mxu1 %v3953_v59 }
 0x1e8   : > { %2559 = vmatprep.mubr.bf16.mxu0 %v4752_v35  ;;  %v1475_v35 = vmul.f32 %v1472_v55, %v1472_v55 }
 0x1ea   : > { %3508 = vmatpush3.bf16.msra.mxu0 %v3954_v13  ;;  %3680 = vmatpush3.bf16.msra.mxu1 %v3953_v59  ;;  %v1476_v22 = vsub.f32 %v1474_v37, %v1475_v35 }
 0x1ec   : > { %v1477_v5 = vmax.f32 %v1476_v22, 0.0 }
 0x1ed   : > { %2560 = vmatmul.mubr.bf16.vlgmr.msra.gmra.mrb[32].mxu0 %v3098_v41  ;;  %3682 = vmatmul.mubr.bf16.vlgmr.msra.gmra.mrb[0].mxu1 %v4758_v1 }
 0x1ee   : > { %2567 = vmatprep.mubr.bf16.mxu0 %v3102_v7  ;;  %3685 = vmatprep.mubr.bf16.mxu1 %v3106_v56  ;;  %v1479_v42 = vadd.f32 1e-05, %v1477_v5 }
 0x1f0   : > { %3955 = vrsqrt.f32 %v1479_v42 }
 0x1f5   : > { %2568 = vmatmul.mubr.bf16.gmra.mrb[36].mxu0 %v3101_v62  ;;  %3686 = vmatmul.mubr.bf16.gmra.mrb[4].mxu1 %v3182_v39 }
 0x1f6   : > { %2575 = vmatprep.mubr.bf16.mxu0 %v3105_v52 }
 0x1fa   : > { %v3956_v12 = vpop.eup %3955 }
 0x1fd   : > { %2576 = vmatmul.mubr.bf16.gmra.mrb[40].mxu0 %v3104_v58 }
 0x1fe   : > { %2583 = vmatprep.mubr.bf16.mxu0 %v3181_v20 }
 0x205   : > { %2584 = vmatmul.mubr.bf16.gmra.mrb[44].mxu0 %v3180_v63  ;;  %v1481_v63 = vmul.f32 %v3956_v12, %v1478_v14 }
 0x280   : > { %v3405_v24 = vpop.f32.mrb[0].mxu0 }
 0x281   : > { %v3406_v27 = vpop.f32.mrb[1].mxu0 }
 0x282   : > { %v3407_v0 = vadd.f32 %v3406_v27, %v3405_v24  ;;  %v3408_v30 = vpop.f32.mrb[2].mxu0 }
 0x283   : > { %v3409_v47 = vpop.f32.mrb[3].mxu0 }
 0x284   : > { %v3410_v18 = vadd.f32 %v3409_v47, %v3408_v30  ;;  %v2667_v30 = vshrl.u32 %v2666_v28, 7 }
 0x288   : > { %v3411_v61 = vpop.f32.mrb[4].mxu0 }
 0x289   : > { %v3412_v31 = vpop.f32.mrb[5].mxu0 }
 0x28a   : > { %v3413_v50 = vadd.f32 %v3412_v31, %v3411_v61  ;;  %v3414_v48 = vpop.f32.mrb[6].mxu0  ;;  %v1482_v61 = vld [vmem:[%s4902_s3] sm:$0x1] }
 0x28b   : > { %v3415_v38 = vpop.f32.mrb[7].mxu0 }
 0x28c   : > { %v3416_v46 = vadd.f32 %v3415_v38, %v3414_v48  ;;  %v2668_v48 = vsub.s32 0, %v2667_v30 }
 0x290   : > { %v3417_v29 = vpop.f32.mrb[8].mxu0 }
 0x291   : > { %v3418_v49 = vpop.f32.mrb[9].mxu0 }
 0x292   : > { %v3419_v54 = vadd.f32 %v3418_v49, %v3417_v29  ;;  %v3420_v25 = vpop.f32.mrb[10].mxu0 }
 0x293   : > { %v3421_v60 = vpop.f32.mrb[11].mxu0 }
 0x294   : > { %v3422_v8 = vadd.f32 %v3421_v60, %v3420_v25 }
 0x298   : > { %v3423_v19 = vpop.f32.mrb[12].mxu0 }
 0x299   : > { %v3424_v2 = vpop.f32.mrb[13].mxu0 }
 0x29a   : > { %v3425_v10 = vadd.f32 %v3424_v2, %v3423_v19  ;;  %v3426_v32 = vpop.f32.mrb[14].mxu0  ;;  %v4856_v19 = vrot.slane %v1481_v63, %v2668_v48 }
 0x29b   : > { %v3427_v23 = vpop.f32.mrb[15].mxu0 }
 0x29c   : > { %v3428_v43 = vadd.f32 %v3427_v23, %v3426_v32 }
 0x2a0   : > { %v3457_v1 = vpop.f32.mrb[16].mxu0 }
 0x2a1   : > { %v3458_v3 = vpop.f32.mrb[17].mxu0 }
 0x2a2   : > { %v3459_v51 = vadd.f32 %v3458_v3, %v3457_v1  ;;  %v3460_v41 = vpop.f32.mrb[18].mxu0 }
 0x2a3   : > { %v3461_v56 = vpop.f32.mrb[19].mxu0 }
 0x2a4   : > { %v3732_v36 = vadd.f32 %v3459_v51, %v3407_v0  ;;  %v3462_v21 = vadd.f32 %v3461_v56, %v3460_v41 }
 0x2a6   : > { %v3738_v7 = vadd.f32 %v3462_v21, %v3410_v18  ;;  %v1483_v18 = vmul.f32 %v1481_v63, %v1472_v55 }
 0x2a8   : > { %v3463_v40 = vpop.f32.mrb[20].mxu0  ;;  %v1484_v49 = vsub.f32 %v1482_v61, %v1483_v18 }
 0x2a9   : > { %v3464_v4 = vpop.f32.mrb[21].mxu0 }
 0x2aa   : > { %v3465_v62 = vadd.f32 %v3464_v4, %v3463_v40  ;;  %v3466_v57 = vpop.f32.mrb[22].mxu0 }
 0x2ab   : > { %v3467_v45 = vpop.f32.mrb[23].mxu0 }
 0x2ac   : > { %v3729_v16 = vadd.f32 %v3465_v62, %v3413_v50  ;;  %v3468_v52 = vadd.f32 %v3467_v45, %v3466_v57 }
 0x2ae   : > { %v3735_v9 = vadd.f32 %v3468_v52, %v3416_v46 }
 0x2b0   : > { %v3469_v11 = vpop.f32.mrb[24].mxu0 }
 0x2b1   : > { %v3470_v33 = vpop.f32.mrb[25].mxu0 }
 0x2b2   : > { %v3471_v58 = vadd.f32 %v3470_v33, %v3469_v11  ;;  %v3472_v26 = vpop.f32.mrb[26].mxu0 }
 0x2b3   : > { %v3473_v44 = vpop.f32.mrb[27].mxu0 }
 0x2b4   : > { %v4842_v59 = vadd.f32 %v3471_v58, %v3419_v54  ;;  %v3474_v13 = vadd.f32 %v3473_v44, %v3472_v26 }
 0x2b6   : > { %v4844_v15 = vadd.f32 %v3474_v13, %v3422_v8 }
 0x2b8   : > { %v3475_v39 = vpop.f32.mrb[28].mxu0 }
 0x2b9   : > { %v3476_v34 = vpop.f32.mrb[29].mxu0 }
 0x2ba   : > { %v3477_v6 = vadd.f32 %v3476_v34, %v3475_v39  ;;  %v3478_v20 = vpop.f32.mrb[30].mxu0 }
 0x2bb   : > { %v3479_v24 = vpop.f32.mrb[31].mxu0 }
 0x2bc   : > { %v4849_v27 = vadd.f32 %v3477_v6, %v3425_v10  ;;  %v3480_v0 = vadd.f32 %v3479_v24, %v3478_v20  ;;  %v4858_v10 = vrot.slane %v1484_v49, %v2668_v48 }
 0x2be   : > { %v4851_v47 = vadd.f32 %v3480_v0, %v3428_v43 }
 0x2c0   : > { %v3509_v31 = vpop.f32.mrb[32].mxu0  ;;  %v3683_v50 = vpop.f32.mrb[0].mxu1 }
 0x2c1   : > { %v3510_v38 = vpop.f32.mrb[33].mxu0  ;;  %v2626_v46 = vpop.f32.mrb[1].mxu1 }
 0x2c2   : > { %v3511_v29 = vadd.f32 %v3510_v38, %v3509_v31  ;;  %v3512_v54 = vpop.f32.mrb[34].mxu0  ;;  %v3684_v25 = vpop.f32.mrb[2].mxu1 }
 0x2c3   : > { %v3513_v60 = vpop.f32.mrb[35].mxu0  ;;  %v2629_v8 = vpop.f32.mrb[3].mxu1 }
 0x2c4   : > { %v3733_v17 = vadd.f32 %v3732_v36, %v3511_v29  ;;  %v3514_v2 = vadd.f32 %v3513_v60, %v3512_v54 }
 0x2c6   : > { %v3734_v55 = vadd.f32 %v3733_v17, %v2626_v46  ;;  %v3739_v32 = vadd.f32 %v3738_v7, %v3514_v2 }
 0x2c8   : > { %v2671_v53 = vmul.f32 %v3734_v55, %v4856_v19  ;;  %v3740_v23 = vadd.f32 %v3739_v32, %v2629_v8  ;;  %v3515_v43 = vpop.f32.mrb[36].mxu0  ;;  %v3687_v37 = vpop.f32.mrb[4].mxu1 }
 0x2c9   : > { %v3516_v35 = vpop.f32.mrb[37].mxu0  ;;  %v2642_v1 = vpop.f32.mrb[5].mxu1 }
 0x2ca   : > { %v2685_v3 = vadd.f32 %v4858_v10, %v2671_v53  ;;  %v2672_v22 = vmul.f32 %v3740_v23, %v4856_v19  ;;  %v3517_v51 = vadd.f32 %v3516_v35, %v3515_v43  ;;  %v3518_v41 = vpop.f32.mrb[38].mxu0  ;;  %v3688_v56 = vpop.f32.mrb[6].mxu1 }
 0x2cb   : > { %v3519_v36 = vpop.f32.mrb[39].mxu0  ;;  %v2645_v21 = vpop.f32.mrb[7].mxu1 }
 0x2cc   : > { %v2686_v5 = vadd.f32 %v4858_v10, %v2672_v22  ;;  %v3730_v7 = vadd.f32 %v3729_v16, %v3517_v51  ;;  %v3520_v40 = vadd.f32 %v3519_v36, %v3518_v41  ;;  %v2693_v4 = vmax.f32 %v2685_v3, 0.0 }
 0x2ce   : > { %v2694_v42 = vmax.f32 %v2686_v5, 0.0  ;;  %v3731_v62 = vadd.f32 %v3730_v7, %v3683_v50  ;;  %v3736_v57 = vadd.f32 %v3735_v9, %v3520_v40 }
 0x2d0   : > { %v3213_v45 = vpack.c.bf16 %v2694_v42, %v2693_v4  ;;  %v2673_v52 = vmul.f32 %v3731_v62, %v4856_v19  ;;  %v3737_v11 = vadd.f32 %v3736_v57, %v3684_v25  ;;  %v3521_v33 = vpop.f32.mrb[40].mxu0 }
 0x2d1   : > { %v3522_v58 = vpop.f32.mrb[41].mxu0 }
 0x2d2   : > { %3214 = vst [vmem:[%s4063_s30] sm:$0xff] %v3213_v45   ;;  %v2687_v26 = vadd.f32 %v4858_v10, %v2673_v52  ;;  %v2674_v44 = vmul.f32 %v3737_v11, %v4856_v19  ;;  %v3523_v13 = vadd.f32 %v3522_v58, %v3521_v33  ;;  %v3524_v12 = vpop.f32.mrb[42].mxu0 }
 0x2d3   : > { %v3525_v16 = vpop.f32.mrb[43].mxu0 }
 0x2d4   : > { %v2688_v14 = vadd.f32 %v4858_v10, %v2674_v44  ;;  %v3745_v39 = vadd.f32 %v4842_v59, %v3523_v13  ;;  %v3526_v9 = vadd.f32 %v3525_v16, %v3524_v12  ;;  %v2695_v28 = vmax.f32 %v2687_v26, 0.0 }
 0x2d6   : > { %v2696_v34 = vmax.f32 %v2688_v14, 0.0  ;;  %v3746_v6 = vadd.f32 %v3745_v39, %v2642_v1  ;;  %v3751_v20 = vadd.f32 %v4844_v15, %v3526_v9 }
 0x2d8   : > { %v3218_v63 = vpack.c.bf16 %v2696_v34, %v2695_v28  ;;  %v2675_v24 = vmul.f32 %v3746_v6, %v4856_v19  ;;  %v3752_v0 = vadd.f32 %v3751_v20, %v2645_v21  ;;  %v3527_v30 = vpop.f32.mrb[44].mxu0 }
 0x2d9   : > { %v3528_v18 = vpop.f32.mrb[45].mxu0 }
 0x2da   : > { %3230 = vst [vmem:[%s4063_s30 + $0x8] sm:$0xff] %v3218_v63   ;;  %v2689_v61 = vadd.f32 %v4858_v10, %v2675_v24  ;;  %v2676_v31 = vmul.f32 %v3752_v0, %v4856_v19  ;;  %v3529_v50 = vadd.f32 %v3528_v18, %v3527_v30  ;;  %v3530_v59 = vpop.f32.mrb[46].mxu0 }
 0x2db   : > { %v3531_v48 = vpop.f32.mrb[47].mxu0 }
 0x2dc   : > { %v2690_v38 = vadd.f32 %v4858_v10, %v2676_v31  ;;  %v3742_v46 = vadd.f32 %v4849_v27, %v3529_v50  ;;  %v3532_v15 = vadd.f32 %v3531_v48, %v3530_v59  ;;  %v2697_v29 = vmax.f32 %v2689_v61, 0.0 }
 0x2de   : > { %v2698_v49 = vmax.f32 %v2690_v38, 0.0  ;;  %v3743_v54 = vadd.f32 %v3742_v46, %v3687_v37  ;;  %v3748_v25 = vadd.f32 %v4851_v47, %v3532_v15 }
 0x2e0   : > { %v3223_v60 = vpack.c.bf16 %v2698_v49, %v2697_v29  ;;  %v2677_v8 = vmul.f32 %v3743_v54, %v4856_v19  ;;  %v3749_v17 = vadd.f32 %v3748_v25, %v3688_v56 }
 0x2e2   : > { %3231 = vst [vmem:[%s4063_s30 + $0x10] sm:$0xff] %v3223_v60   ;;  %v2691_v2 = vadd.f32 %v4858_v10, %v2677_v8  ;;  %v2678_v55 = vmul.f32 %v3749_v17, %v4856_v19 }
 0x2e4   : > { %v2692_v32 = vadd.f32 %v4858_v10, %v2678_v55  ;;  %v2699_v53 = vmax.f32 %v2691_v2, 0.0 }
 0x2e6   : > { %v2700_v27 = vmax.f32 %v2692_v32, 0.0 }
 0x2e8   : > { %v3228_v23 = vpack.c.bf16 %v2700_v27, %v2699_v53 }
 0x2ea   : > { %3232 = vst [vmem:[%s4063_s30 + $0x18] sm:$0xff] %v3228_v23  }
 0x2eb PF: > { %s14_s19 = sadd.s32 1, %s3995_s19   ;;  %s4904_s15 = smov %s3987_s17 }
 0x2ec   : > { %p11_p12 = scmp.ge.s32.totalorder %s14_s19, 6   ;;  %s4905_s16 = smov %s3991_s18 }
 0x2ed   : > { %s4906_s17 = smov %s4909_s20  ;;  %s4907_s18 = smov %s4913_s21 }
 0x2ee   :  { %13 = sbr.rel (!%p11_p12) target bundleno = 3 (0x3), region = 82 }

</bundles_post_ra>
